<compile_context>
chip_gen: v6e
topology: v6e:2x2x1
jax: 0.10.0
libtpu: 0.0.40
codegen_flags: <defaults>
</compile_context>

<pallas_src>
import numpy as np
import jax
import jax.numpy as jnp
from jax.experimental import pallas as pl
from jax.experimental.pallas import tpu as pltpu

# ------------------------- configuration -------------------------
N_NODES = 16
N_EDGES = 64
C_IN = 8
C_OUT = 16
DIV = 4
C_MID = C_OUT // DIV            # 4
N_HEADS = 2
EDGE_DIM = 4
D_REP = 3                       # (2*1+1)*(2*0+1) for degree (1,0)
N_FREQ = 3                      # (2*min(1,1)+1)*(2*min(0,0)+1)
A_VK = 2 * C_MID                # ConvPartial('vk') output channels = f_mid_out ++ f_mid_in
MID = 32                        # RadialFunc hidden width
F_RAD = A_VK * C_IN * N_FREQ    # RadialFunc output features = out*in*num_freq = 192
LN_EPS = 1e-5

GPB = 2                         # graphs packed per kernel block (fills the 128-lane axis)
E_BLK = GPB * N_EDGES           # 128 edges on lanes per block
N_BLK = GPB * N_NODES           # 32 nodes per block


# ------------------------- kernel helpers -------------------------
def _leaky_relu(x):
    return jnp.where(x > 0, x, 0.2 * x)


def _layer_norm_cols(x, gamma, beta):
    # TODO(synk): BN(mid_dim, type='ln', scale=...) is not defined in the source; implemented
    # as a standard LayerNorm over the feature dim (axis 0 of the [feature, E] layout).
    mu = jnp.mean(x, axis=0, keepdims=True)
    var = jnp.mean((x - mu) ** 2, axis=0, keepdims=True)
    return (x - mu) * jax.lax.rsqrt(var + LN_EPS) * gamma + beta


# ------------------------- the fused Pallas kernel (one graph-block per grid step) ----------
def encode_layer_kernel(pos_ref, feat_ref, basis_ref, ohsrc_ref, ohdst_ref,
                        w1_ref, w2_ref, w3_ref, cp_ref, wq_ref, wpz_ref, wpf_ref, selh_ref,
                        o_ref):
    """EncodeLayer.forward (scale_deg=0 path) fully fused; edges (E_BLK=128) on the lane axis."""
    f32 = jnp.float32
    n_e = pos_ref.shape[-1]                                                  # E_BLK
    vk_rows = C_MID * C_IN                                                   # 32

    # packed column params: rows [0,192)=b3 (order f,a,i), then g1,be1,b2,g2,be2 (32 each)
    g1 = cp_ref[F_RAD:F_RAD + MID, :]
    be1 = cp_ref[F_RAD + MID:F_RAD + 2 * MID, :]
    b2 = cp_ref[F_RAD + 2 * MID:F_RAD + 3 * MID, :]
    g2 = cp_ref[F_RAD + 3 * MID:F_RAD + 4 * MID, :]
    be2 = cp_ref[F_RAD + 4 * MID:F_RAD + 5 * MID, :]

    # ---- RadialFunc trunk: Linear(4,32,no bias) -> LN -> LReLU -> Linear(32,32)+b -> LN -> LReLU
    h = jnp.dot(w1_ref[...], pos_ref[...], preferred_element_type=f32)       # [MID, E]
    h = _leaky_relu(_layer_norm_cols(h, g1, be1))
    h = jnp.dot(w2_ref[...], h, preferred_element_type=f32) + b2
    h = _leaky_relu(_layer_norm_cols(h, g2, be2))                            # [MID, E]

    # ---- gather source-node features onto edges with a single MXU matmul ----
    featv = feat_ref[...]                                                    # [(d,c)=24, Nb]
    oh_src = ohsrc_ref[...].astype(f32)                                      # [Nb, E] (exact 0/1)
    oh_dst = ohdst_ref[...].astype(f32)                                      # [Nb, E] read once, reused 4x
    x_src = jnp.dot(featv, oh_src, preferred_element_type=f32)               # [(j,i), E]
    x_src = x_src.reshape(D_REP, C_IN, n_e)                                  # [Dj, C_in, E] (tile aligned)

    # ---- ConvPartial('vk'): vk[b,a,e] = sum_{i,j,f} R[e,a,i,f] * basis[e,b,j,f] * x_src[e,i,j]
    # Radial output is produced per-frequency (64-row slabs) and the v/k split is folded into
    # the host-permuted weight rows -> no selection matmuls and small live-vreg set.
    v_acc = [jnp.zeros((C_MID, n_e), f32) for _ in range(D_REP)]
    k_acc = [jnp.zeros((C_MID, n_e), f32) for _ in range(D_REP)]
    for f in range(N_FREQ):
        yf = (jnp.dot(w3_ref[f * 2 * vk_rows:(f + 1) * 2 * vk_rows, :], h,
                      preferred_element_type=f32)
              + cp_ref[f * 2 * vk_rows:(f + 1) * 2 * vk_rows, :])             # [64, E]
        r_vf = yf[:vk_rows].reshape(C_MID, C_IN, n_e)                         # [4, 8, E] 'v' radial
        r_kf = yf[vk_rows:].reshape(C_MID, C_IN, n_e)                         # [4, 8, E] 'k' radial
        for b in range(D_REP):
            row0 = (f * D_REP + b) * D_REP                                    # basis rows (f, b, j)
            t_fb = (basis_ref[row0 + 0:row0 + 1, :] * x_src[0]
                    + basis_ref[row0 + 1:row0 + 2, :] * x_src[1]
                    + basis_ref[row0 + 2:row0 + 3, :] * x_src[2])             # [C_in, E]
            v_acc[b] = v_acc[b] + jnp.sum(r_vf * t_fb[None, :, :], axis=1)    # [C_MID, E]
            k_acc[b] = k_acc[b] + jnp.sum(r_kf * t_fb[None, :, :], axis=1)
    # TODO(synk): vk.get_sub_tensor(f_mid_in) split order assumed: leading C_MID channels -> v,
    # trailing C_MID channels -> k (that order is baked into the host-side w3 row permutation).
    v2 = jnp.concatenate(v_acc, axis=0)                                       # [D*C_MID, E]
    k2 = jnp.concatenate(k_acc, axis=0)                                       # [D*C_MID, E]

    # ---- GMAB['q']: GLinear(f_in -> f_mid_in) (attention scale folded into wq), gathered to dst
    q2 = jnp.dot(wq_ref[...], featv, preferred_element_type=f32)              # [D*C_MID, Nb]
    q_dst = jnp.dot(q2, oh_dst, preferred_element_type=f32)                   # [D*C_MID, E]

    # ---- Atten: joint-head scores + edge_softmax over destination nodes ----
    selh = selh_ref[...].astype(f32)                                          # [H, D*C_MID] 0/1
    s_h = jnp.dot(selh, k2 * q_dst, preferred_element_type=f32)               # [H, E]
    # softmax is shift-invariant per destination group, so a global per-head max is exactly
    # equivalent to edge_softmax's per-destination max (and avoids a [H, N, E] masked temp).
    m_h = jnp.max(s_h, axis=-1, keepdims=True)                                # [H, 1]
    p = jnp.exp(s_h - m_h)                                                    # [H, E]
    denom_n = jax.lax.dot_general(p, oh_dst, (((1,), (1,)), ((), ())),
                                  preferred_element_type=f32)                 # [H, Nb]
    denom_e = jnp.dot(denom_n, oh_dst, preferred_element_type=f32)            # [H, E]
    attn = p * pl.reciprocal(denom_e, approx=True)                            # [H, E]

    # broadcast per-head attention to the (d, c) value rows (head = c // cph), no extra operand
    cph = C_MID // N_HEADS
    blk = jnp.concatenate([attn[c // cph:c // cph + 1, :] for c in range(C_MID)], axis=0)
    a_full = jnp.concatenate([blk] * D_REP, axis=0)                           # [D*C_MID, E]

    # ---- update_all(a * v, sum): scatter-add weighted values to destination nodes ----
    z2 = jax.lax.dot_general(a_full * v2, oh_dst, (((1,), (1,)), ((), ())),
                             preferred_element_type=f32)                      # [D*C_MID, Nb]

    # ---- project: GLinear(f_mid_out ++ f_in -> f_out) on cat(z, features); no skip ----
    o_ref[...] = (jnp.dot(wpz_ref[...], z2, preferred_element_type=f32)
                  + jnp.dot(wpf_ref[...], featv, preferred_element_type=f32))  # [(d,o), Nb]


# ------------------------- one-time host-side parameter prep (hoisted) -------------------------
def prepare_params(params):
    """Pure-parameter layout prep, done once outside the per-call jit path."""
    radial_p, wq, wp = params
    w1, g1, be1, w2, b2, g2, be2, w3, b3 = radial_p

    # radial last-layer rows reordered (o, i, f) -> (f, o, i); within each 64-row f-slab the
    # first 32 rows (o < C_MID) are the 'v' radial and the last 32 the 'k' radial.
    w3p = w3.reshape(A_VK, C_IN, N_FREQ, MID).transpose(2, 0, 1, 3).reshape(F_RAD, MID)
    b3p = b3.reshape(A_VK, C_IN, N_FREQ).transpose(2, 0, 1).reshape(F_RAD)
    # pack all column params into ONE operand: [b3 | g1 | be1 | b2 | g2 | be2] -> [352, 1]
    colpar = jnp.concatenate([b3p, g1, be1, b2, g2, be2]).reshape(-1, 1)

    eye_d = jnp.eye(D_REP, dtype=jnp.float32)
    # TODO(synk): f_key.deg_size assumed to be the total key feature size per edge (C_MID * D_REP).
    scale = float(1.0 / np.sqrt(C_MID * D_REP))
    wq_big = jnp.kron(eye_d, wq) * scale                                      # scale folded into q
    wpz_big = jnp.kron(eye_d, wp[:, :C_MID])                                  # [D*C_OUT, D*C_MID]
    wpf_big = jnp.kron(eye_d, wp[:, C_MID:])                                  # [D*C_OUT, D*C_IN]

    head_sel = (jnp.arange(C_MID) // (C_MID // N_HEADS) ==
                jnp.arange(N_HEADS)[:, None])
    sel_h = jnp.tile(head_sel, (1, D_REP)).astype(jnp.bfloat16)               # [H, D*C_MID] 0/1 exact

    return (w1, w2, w3p, colpar, wq_big, wpz_big, wpf_big, sel_h)


# ------------------------- wrapper (single pallas_call, batch grid) -------------------------
def encode_layer_forward(feat, pos, basis, src, dst, prepped):
    """EncodeLayer.forward (scale_deg=0 path) for a batch of graphs."""
    w1, w2, w3p, colpar, wq_big, wpz_big, wpf_big, sel_h = prepped
    B = feat.shape[0]
    assert B % GPB == 0, "batch must be a multiple of graphs-per-block"
    nb = B // GPB

    # ---- per-block data layout: GPB graphs packed along the lane (edge / node) axes ----
    pos_blk = pos.reshape(nb, GPB, N_EDGES, EDGE_DIM).transpose(0, 3, 1, 2).reshape(nb, EDGE_DIM, E_BLK)
    feat_blk = feat.reshape(nb, GPB, N_NODES, C_IN, D_REP).transpose(0, 4, 3, 1, 2).reshape(
        nb, D_REP * C_IN, N_BLK)
    basis_blk = basis.reshape(nb, GPB, N_EDGES, D_REP, D_REP, N_FREQ).transpose(0, 5, 3, 4, 1, 2).reshape(
        nb, N_FREQ * D_REP * D_REP, E_BLK)
    offs = (jnp.arange(GPB, dtype=src.dtype) * N_NODES)[None, :, None]
    src_blk = (src.reshape(nb, GPB, N_EDGES) + offs).reshape(nb, E_BLK)
    dst_blk = (dst.reshape(nb, GPB, N_EDGES) + offs).reshape(nb, E_BLK)
    oh_src = jax.nn.one_hot(src_blk, N_BLK, dtype=jnp.bfloat16, axis=1)       # [nb, Nb, E] exact 0/1
    oh_dst = jax.nn.one_hot(dst_blk, N_BLK, dtype=jnp.bfloat16, axis=1)

    operands = (pos_blk, feat_blk, basis_blk, oh_src, oh_dst,
                w1, w2, w3p, colpar, wq_big, wpz_big, wpf_big, sel_h)

    data_spec = lambda shape: pl.BlockSpec((None,) + shape[1:], lambda g: (g, 0, 0))
    param_spec = lambda shape: pl.BlockSpec(shape, lambda g: (0,) * len(shape))
    in_specs = [data_spec(pos_blk.shape), data_spec(feat_blk.shape), data_spec(basis_blk.shape),
                data_spec(oh_src.shape), data_spec(oh_dst.shape),
                param_spec(w1.shape), param_spec(w2.shape), param_spec(w3p.shape),
                param_spec(colpar.shape), param_spec(wq_big.shape),
                param_spec(wpz_big.shape), param_spec(wpf_big.shape), param_spec(sel_h.shape)]
    out_spec = pl.BlockSpec((None, D_REP * C_OUT, N_BLK), lambda g: (g, 0, 0))

    # advisory cost estimate so XLA schedules around the custom call sensibly
    mm = 2 * (MID * EDGE_DIM + MID * MID + F_RAD * MID) * E_BLK                       # radial MLP
    mm += 2 * (D_REP * C_IN) * N_BLK * E_BLK                                           # src gather
    mm += 2 * N_FREQ * D_REP * (D_REP + 2 * C_MID) * C_IN * E_BLK                      # conv
    mm += 2 * (D_REP * C_MID) * ((C_IN * D_REP) * N_BLK + 2 * N_BLK * E_BLK + E_BLK)   # q / scatter
    mm += 2 * N_HEADS * (D_REP * C_MID + 2 * N_BLK) * E_BLK                            # scores+softmax
    mm += 2 * (D_REP * C_OUT) * (D_REP * (C_MID + C_IN)) * N_BLK                       # project
    bytes_accessed = sum(int(np.prod(a.shape)) * a.dtype.itemsize for a in operands)
    bytes_accessed += nb * D_REP * C_OUT * N_BLK * 4
    cost = pl.CostEstimate(flops=nb * mm, transcendentals=nb * N_HEADS * E_BLK * 2,
                           bytes_accessed=bytes_accessed)

    out_blocks = pl.pallas_call(
        encode_layer_kernel,
        grid=(nb,),
        in_specs=in_specs,
        out_specs=out_spec,
        out_shape=jax.ShapeDtypeStruct((nb, D_REP * C_OUT, N_BLK), jnp.float32),
        compiler_params=pltpu.CompilerParams(dimension_semantics=("parallel",)),
        cost_estimate=cost,
    )(*operands)

    # [nb, (d, o), (g, n)] -> [B, n, o, d]   (tiny final layout fix kept outside the kernel)
    out = out_blocks.reshape(nb, D_REP, C_OUT, GPB, N_NODES)
    return out.transpose(0, 3, 4, 2, 1).reshape(B, N_NODES, C_OUT, D_REP)


# ------------------------- pure-JAX reference (for sanity check, per graph) -------------------------
def encode_layer_reference(feat, pos, basis, src, dst, params):
    radial_p, wq, wp = params
    w1, g1, be1, w2, b2, g2, be2, w3, b3 = radial_p
    n_edge = pos.shape[0]
    n_node = feat.shape[0]

    def ln(x, g, b):
        mu = x.mean(-1, keepdims=True)
        var = ((x - mu) ** 2).mean(-1, keepdims=True)
        return (x - mu) / jnp.sqrt(var + LN_EPS) * g + b

    lrelu = lambda x: jnp.where(x > 0, x, 0.2 * x)
    h = lrelu(ln(pos @ w1.T, g1, be1))
    h = lrelu(ln(h @ w2.T + b2, g2, be2))
    y = h @ w3.T + b3
    R = y.reshape(n_edge, A_VK, C_IN, N_FREQ)
    xsrc = feat[src]
    vk = jnp.einsum('eaif,ebjf,eij->eab', R, basis, xsrc)
    v_e, k_e = vk[:, :C_MID], vk[:, C_MID:]
    q = jnp.einsum('oc,ncd->nod', wq, feat)
    q_dst = q[dst]
    cph = C_MID // N_HEADS
    kh = k_e.reshape(n_edge, N_HEADS, cph, D_REP)
    qh = q_dst.reshape(n_edge, N_HEADS, cph, D_REP)
    e_sc = jnp.einsum('ehcd,ehcd->eh', kh, qh) / np.sqrt(C_MID * D_REP)
    m = jax.ops.segment_max(e_sc, dst, num_segments=n_node)
    p = jnp.exp(e_sc - m[dst])
    denom = jax.ops.segment_sum(p, dst, num_segments=n_node)
    a = p / denom[dst]
    vh = v_e.reshape(n_edge, N_HEADS, cph, D_REP)
    zh = jax.ops.segment_sum(a[:, :, None, None] * vh, dst, num_segments=n_node)
    z = zh.reshape(n_node, C_MID, D_REP)
    zcat = jnp.concatenate([z, feat], axis=1)
    return jnp.einsum('oc,ncd->nod', wp, zcat)


# ------------------------- parameters -------------------------
def init_params(key):
    ks = jax.random.split(key, 7)

    def kaiming(k, shape):  # PyTorch layout [out, in]; fan_in = shape[1]
        bound = float(np.sqrt(6.0 / shape[1]))
        return jax.random.uniform(k, shape, jnp.float32, -bound, bound)

    w1 = kaiming(ks[0], (MID, EDGE_DIM))
    w2 = kaiming(ks[1], (MID, MID))
    w3 = kaiming(ks[2], (F_RAD, MID))
    bb = float(1.0 / np.sqrt(MID))
    b2 = jax.random.uniform(ks[3], (MID,), jnp.float32, -bb, bb)
    b3 = jax.random.uniform(ks[4], (F_RAD,), jnp.float32, -bb, bb)
    g1 = jnp.ones((MID,), jnp.float32)
    be1 = jnp.zeros((MID,), jnp.float32)
    g2 = jnp.ones((MID,), jnp.float32)
    be2 = jnp.zeros((MID,), jnp.float32)
    radial = (w1, g1, be1, w2, b2, g2, be2, w3, b3)
    # GLinear weights: randn(mo, mi) / sqrt(mi)
    wq = jax.random.normal(ks[5], (C_MID, C_IN), jnp.float32) / np.sqrt(C_IN)
    wp = jax.random.normal(ks[6], (C_OUT, C_MID + C_IN), jnp.float32) / np.sqrt(C_MID + C_IN)
    return radial, wq, wp


# ------------------------- main -------------------------
if __name__ == "__main__":
    B = 4
    key = jax.random.PRNGKey(0)
    k_feat, k_pos, k_basis, k_src, k_dst, k_param = jax.random.split(key, 6)

    feat = jax.random.normal(k_feat, (B, N_NODES, C_IN, D_REP), jnp.float32)     # node features [P,C,D]
    pos = jax.random.normal(k_pos, (B, N_EDGES, EDGE_DIM), jnp.float32)          # edge 'r' encoding
    basis = jax.random.normal(k_basis, (B, N_EDGES, D_REP, D_REP, N_FREQ), jnp.float32)  # Q*Y basis
    src = jax.random.randint(k_src, (B, N_EDGES), 0, N_NODES)
    dst = jax.random.randint(k_dst, (B, N_EDGES), 0, N_NODES)
    params = init_params(k_param)

    prepped = prepare_params(params)            # one-time parameter layout prep (hoisted)
    fwd = jax.jit(encode_layer_forward)
    out = fwd(feat, pos, basis, src, dst, prepped)
    jax.block_until_ready(out)

    ref = jax.vmap(lambda f_, p_, b_, s_, d_: encode_layer_reference(f_, p_, b_, s_, d_, params)
                   )(feat, pos, basis, src, dst)
    err = float(jnp.max(jnp.abs(out - ref)))
    tol = 1e-2 * (1.0 + float(jnp.max(jnp.abs(ref))))   # headroom for approx reciprocal in softmax
    assert out.shape == (B, N_NODES, C_OUT, D_REP), out.shape
    assert err < tol, f"max abs error vs reference too large: {err} (tol {tol})"
    print("KERNEL_OK")
</pallas_src>

<mosaic_0001>
module attributes {stable_mosaic.version = 11 : i64} {
  func.func @encode_layer_kernel(%arg0: i32, %arg1: memref<1x4x128xf32, #tpu.memory_space<vmem>>, %arg2: memref<1x24x32xf32, #tpu.memory_space<vmem>>, %arg3: memref<1x27x128xf32, #tpu.memory_space<vmem>>, %arg4: memref<1x32x128xbf16, #tpu.memory_space<vmem>>, %arg5: memref<1x32x128xbf16, #tpu.memory_space<vmem>>, %arg6: memref<32x4xf32, #tpu.memory_space<vmem>>, %arg7: memref<32x32xf32, #tpu.memory_space<vmem>>, %arg8: memref<192x32xf32, #tpu.memory_space<vmem>>, %arg9: memref<352x1xf32, #tpu.memory_space<vmem>>, %arg10: memref<12x24xf32, #tpu.memory_space<vmem>>, %arg11: memref<48x12xf32, #tpu.memory_space<vmem>>, %arg12: memref<48x24xf32, #tpu.memory_space<vmem>>, %arg13: memref<2x12xbf16, #tpu.memory_space<vmem>>, %arg14: memref<1x48x32xf32, #tpu.memory_space<vmem>>) attributes {dimension_semantics = [#tpu.dimension_semantics<parallel>], iteration_bounds = array<i64: 2>, scalar_prefetch = 0 : i64, scratch_operands = 0 : i64, tpu.core_type = #tpu.core_type<tc>, window_params = [{transform_indices = @transform_0, window_bounds = array<i64: 1, 4, 128>}, {transform_indices = @transform_1, window_bounds = array<i64: 1, 24, 32>}, {transform_indices = @transform_2, window_bounds = array<i64: 1, 27, 128>}, {transform_indices = @transform_3, window_bounds = array<i64: 1, 32, 128>}, {transform_indices = @transform_4, window_bounds = array<i64: 1, 32, 128>}, {pipeline_mode = #tpu.pipeline_mode<synchronous>, transform_indices = @transform_5, window_bounds = array<i64: 32, 4>}, {pipeline_mode = #tpu.pipeline_mode<synchronous>, transform_indices = @transform_6, window_bounds = array<i64: 32, 32>}, {pipeline_mode = #tpu.pipeline_mode<synchronous>, transform_indices = @transform_7, window_bounds = array<i64: 192, 32>}, {pipeline_mode = #tpu.pipeline_mode<synchronous>, transform_indices = @transform_8, window_bounds = array<i64: 352, 1>}, {pipeline_mode = #tpu.pipeline_mode<synchronous>, transform_indices = @transform_9, window_bounds = array<i64: 12, 24>}, {pipeline_mode = #tpu.pipeline_mode<synchronous>, transform_indices = @transform_10, window_bounds = array<i64: 48, 12>}, {pipeline_mode = #tpu.pipeline_mode<synchronous>, transform_indices = @transform_11, window_bounds = array<i64: 48, 24>}, {pipeline_mode = #tpu.pipeline_mode<synchronous>, transform_indices = @transform_12, window_bounds = array<i64: 2, 12>}, {transform_indices = @transform_13, window_bounds = array<i64: 1, 48, 32>}]} {
    %c192 = arith.constant 192 : index
    %c0 = arith.constant 0 : index
    %0 = vector.load %arg9[%c192, %c0] : memref<352x1xf32, #tpu.memory_space<vmem>>, vector<32x1xf32>
    %c224 = arith.constant 224 : index
    %c0_0 = arith.constant 0 : index
    %1 = vector.load %arg9[%c224, %c0_0] : memref<352x1xf32, #tpu.memory_space<vmem>>, vector<32x1xf32>
    %c256 = arith.constant 256 : index
    %c0_1 = arith.constant 0 : index
    %2 = vector.load %arg9[%c256, %c0_1] : memref<352x1xf32, #tpu.memory_space<vmem>>, vector<32x1xf32>
    %c288 = arith.constant 288 : index
    %c0_2 = arith.constant 0 : index
    %3 = vector.load %arg9[%c288, %c0_2] : memref<352x1xf32, #tpu.memory_space<vmem>>, vector<32x1xf32>
    %c320 = arith.constant 320 : index
    %c0_3 = arith.constant 0 : index
    %4 = vector.load %arg9[%c320, %c0_3] : memref<352x1xf32, #tpu.memory_space<vmem>>, vector<32x1xf32>
    %c0_4 = arith.constant 0 : index
    %c0_5 = arith.constant 0 : index
    %5 = vector.load %arg6[%c0_4, %c0_5] : memref<32x4xf32, #tpu.memory_space<vmem>>, vector<32x4xf32>
    %c0_6 = arith.constant 0 : index
    %c0_7 = arith.constant 0 : index
    %c0_8 = arith.constant 0 : index
    %6 = vector.load %arg1[%c0_6, %c0_7, %c0_8] : memref<1x4x128xf32, #tpu.memory_space<vmem>>, vector<1x4x128xf32>
    %7 = vector.shape_cast %6 : vector<1x4x128xf32> to vector<4x128xf32>
    %cst = arith.constant dense<0.000000e+00> : vector<32x128xf32>
    %8 = tpu.matmul %5, %7, %cst {dimension_numbers = #tpu.dot_dimension_numbers<[1], [0], [0], [1], [0, 0, 1, 1], [], []>} : vector<32x4xf32>, vector<4x128xf32>, vector<32x128xf32> -> vector<32x128xf32>
    %cst_9 = arith.constant dense<0.000000e+00> : vector<128xf32>
    %9 = vector.multi_reduction <add>, %8, %cst_9 [0] : vector<32x128xf32> to vector<128xf32>
    %10 = vector.shape_cast %9 : vector<128xf32> to vector<1x128xf32>
    %cst_10 = arith.constant 3.200000e+01 : f32
    %11 = vector.broadcast %cst_10 : f32 to vector<1x128xf32>
    %12 = arith.divf %10, %11 : vector<1x128xf32>
    %13 = vector.broadcast %12 : vector<1x128xf32> to vector<32x128xf32>
    %14 = arith.subf %8, %13 : vector<32x128xf32>
    %15 = arith.mulf %14, %14 : vector<32x128xf32>
    %cst_11 = arith.constant dense<0.000000e+00> : vector<128xf32>
    %16 = vector.multi_reduction <add>, %15, %cst_11 [0] : vector<32x128xf32> to vector<128xf32>
    %17 = vector.shape_cast %16 : vector<128xf32> to vector<1x128xf32>
    %cst_12 = arith.constant 3.200000e+01 : f32
    %18 = vector.broadcast %cst_12 : f32 to vector<1x128xf32>
    %19 = arith.divf %17, %18 : vector<1x128xf32>
    %20 = vector.broadcast %12 : vector<1x128xf32> to vector<32x128xf32>
    %21 = arith.subf %8, %20 : vector<32x128xf32>
    %cst_13 = arith.constant 9.99999974E-6 : f32
    %22 = vector.broadcast %cst_13 : f32 to vector<1x128xf32>
    %23 = arith.addf %19, %22 : vector<1x128xf32>
    %24 = math.rsqrt %23 : vector<1x128xf32>
    %25 = vector.broadcast %24 : vector<1x128xf32> to vector<32x128xf32>
    %26 = arith.mulf %21, %25 : vector<32x128xf32>
    %27 = vector.broadcast %0 : vector<32x1xf32> to vector<32x128xf32>
    %28 = arith.mulf %26, %27 : vector<32x128xf32>
    %29 = vector.broadcast %1 : vector<32x1xf32> to vector<32x128xf32>
    %30 = arith.addf %28, %29 : vector<32x128xf32>
    %cst_14 = arith.constant 0.000000e+00 : f32
    %31 = vector.broadcast %cst_14 : f32 to vector<32x128xf32>
    %32 = arith.cmpf ogt, %30, %31 : vector<32x128xf32>
    %cst_15 = arith.constant 2.000000e-01 : f32
    %33 = vector.broadcast %cst_15 : f32 to vector<32x128xf32>
    %34 = arith.mulf %33, %30 : vector<32x128xf32>
    %35 = arith.select %32, %30, %34 : vector<32x128xi1>, vector<32x128xf32>
    %c0_16 = arith.constant 0 : index
    %c0_17 = arith.constant 0 : index
    %36 = vector.load %arg7[%c0_16, %c0_17] : memref<32x32xf32, #tpu.memory_space<vmem>>, vector<32x32xf32>
    %cst_18 = arith.constant dense<0.000000e+00> : vector<32x128xf32>
    %37 = tpu.matmul %36, %35, %cst_18 {dimension_numbers = #tpu.dot_dimension_numbers<[1], [0], [0], [1], [0, 0, 1, 1], [], []>} : vector<32x32xf32>, vector<32x128xf32>, vector<32x128xf32> -> vector<32x128xf32>
    %38 = vector.broadcast %2 : vector<32x1xf32> to vector<32x128xf32>
    %39 = arith.addf %37, %38 : vector<32x128xf32>
    %cst_19 = arith.constant dense<0.000000e+00> : vector<128xf32>
    %40 = vector.multi_reduction <add>, %39, %cst_19 [0] : vector<32x128xf32> to vector<128xf32>
    %41 = vector.shape_cast %40 : vector<128xf32> to vector<1x128xf32>
    %cst_20 = arith.constant 3.200000e+01 : f32
    %42 = vector.broadcast %cst_20 : f32 to vector<1x128xf32>
    %43 = arith.divf %41, %42 : vector<1x128xf32>
    %44 = vector.broadcast %43 : vector<1x128xf32> to vector<32x128xf32>
    %45 = arith.subf %39, %44 : vector<32x128xf32>
    %46 = arith.mulf %45, %45 : vector<32x128xf32>
    %cst_21 = arith.constant dense<0.000000e+00> : vector<128xf32>
    %47 = vector.multi_reduction <add>, %46, %cst_21 [0] : vector<32x128xf32> to vector<128xf32>
    %48 = vector.shape_cast %47 : vector<128xf32> to vector<1x128xf32>
    %cst_22 = arith.constant 3.200000e+01 : f32
    %49 = vector.broadcast %cst_22 : f32 to vector<1x128xf32>
    %50 = arith.divf %48, %49 : vector<1x128xf32>
    %51 = vector.broadcast %43 : vector<1x128xf32> to vector<32x128xf32>
    %52 = arith.subf %39, %51 : vector<32x128xf32>
    %cst_23 = arith.constant 9.99999974E-6 : f32
    %53 = vector.broadcast %cst_23 : f32 to vector<1x128xf32>
    %54 = arith.addf %50, %53 : vector<1x128xf32>
    %55 = math.rsqrt %54 : vector<1x128xf32>
    %56 = vector.broadcast %55 : vector<1x128xf32> to vector<32x128xf32>
    %57 = arith.mulf %52, %56 : vector<32x128xf32>
    %58 = vector.broadcast %3 : vector<32x1xf32> to vector<32x128xf32>
    %59 = arith.mulf %57, %58 : vector<32x128xf32>
    %60 = vector.broadcast %4 : vector<32x1xf32> to vector<32x128xf32>
    %61 = arith.addf %59, %60 : vector<32x128xf32>
    %cst_24 = arith.constant 0.000000e+00 : f32
    %62 = vector.broadcast %cst_24 : f32 to vector<32x128xf32>
    %63 = arith.cmpf ogt, %61, %62 : vector<32x128xf32>
    %cst_25 = arith.constant 2.000000e-01 : f32
    %64 = vector.broadcast %cst_25 : f32 to vector<32x128xf32>
    %65 = arith.mulf %64, %61 : vector<32x128xf32>
    %66 = arith.select %63, %61, %65 : vector<32x128xi1>, vector<32x128xf32>
    %c0_26 = arith.constant 0 : index
    %c0_27 = arith.constant 0 : index
    %c0_28 = arith.constant 0 : index
    %67 = vector.load %arg2[%c0_26, %c0_27, %c0_28] : memref<1x24x32xf32, #tpu.memory_space<vmem>>, vector<1x24x32xf32>
    %68 = vector.shape_cast %67 : vector<1x24x32xf32> to vector<24x32xf32>
    %c0_29 = arith.constant 0 : index
    %c0_30 = arith.constant 0 : index
    %c0_31 = arith.constant 0 : index
    %69 = vector.load %arg4[%c0_29, %c0_30, %c0_31] : memref<1x32x128xbf16, #tpu.memory_space<vmem>>, vector<1x32x128xbf16>
    %70 = vector.shape_cast %69 : vector<1x32x128xbf16> to vector<32x128xbf16>
    %71 = arith.extf %70 : vector<32x128xbf16> to vector<32x128xf32>
    %c0_32 = arith.constant 0 : index
    %c0_33 = arith.constant 0 : index
    %c0_34 = arith.constant 0 : index
    %72 = vector.load %arg5[%c0_32, %c0_33, %c0_34] : memref<1x32x128xbf16, #tpu.memory_space<vmem>>, vector<1x32x128xbf16>
    %73 = vector.shape_cast %72 : vector<1x32x128xbf16> to vector<32x128xbf16>
    %74 = arith.extf %73 : vector<32x128xbf16> to vector<32x128xf32>
    %cst_35 = arith.constant dense<0.000000e+00> : vector<24x128xf32>
    %75 = tpu.matmul %68, %71, %cst_35 {dimension_numbers = #tpu.dot_dimension_numbers<[1], [0], [0], [1], [0, 0, 1, 1], [], []>} : vector<24x32xf32>, vector<32x128xf32>, vector<24x128xf32> -> vector<24x128xf32>
    %76 = vector.shape_cast %75 : vector<24x128xf32> to vector<3x8x128xf32>
    %cst_36 = arith.constant 0.000000e+00 : f32
    %77 = vector.broadcast %cst_36 : f32 to vector<4x128xf32>
    %cst_37 = arith.constant 0.000000e+00 : f32
    %78 = vector.broadcast %cst_37 : f32 to vector<4x128xf32>
    %cst_38 = arith.constant 0.000000e+00 : f32
    %79 = vector.broadcast %cst_38 : f32 to vector<4x128xf32>
    %cst_39 = arith.constant 0.000000e+00 : f32
    %80 = vector.broadcast %cst_39 : f32 to vector<4x128xf32>
    %cst_40 = arith.constant 0.000000e+00 : f32
    %81 = vector.broadcast %cst_40 : f32 to vector<4x128xf32>
    %cst_41 = arith.constant 0.000000e+00 : f32
    %82 = vector.broadcast %cst_41 : f32 to vector<4x128xf32>
    %c0_42 = arith.constant 0 : index
    %c0_43 = arith.constant 0 : index
    %83 = vector.load %arg8[%c0_42, %c0_43] : memref<192x32xf32, #tpu.memory_space<vmem>>, vector<64x32xf32>
    %cst_44 = arith.constant dense<0.000000e+00> : vector<64x128xf32>
    %84 = tpu.matmul %83, %66, %cst_44 {dimension_numbers = #tpu.dot_dimension_numbers<[1], [0], [0], [1], [0, 0, 1, 1], [], []>} : vector<64x32xf32>, vector<32x128xf32>, vector<64x128xf32> -> vector<64x128xf32>
    %c0_45 = arith.constant 0 : index
    %c0_46 = arith.constant 0 : index
    %85 = vector.load %arg9[%c0_45, %c0_46] : memref<352x1xf32, #tpu.memory_space<vmem>>, vector<64x1xf32>
    %86 = vector.broadcast %85 : vector<64x1xf32> to vector<64x128xf32>
    %87 = arith.addf %84, %86 : vector<64x128xf32>
    %88 = vector.extract_strided_slice %87 {offsets = [0, 0], sizes = [32, 128], strides = [1, 1]} : vector<64x128xf32> to vector<32x128xf32>
    %89 = vector.shape_cast %88 : vector<32x128xf32> to vector<4x8x128xf32>
    %90 = vector.extract_strided_slice %87 {offsets = [32, 0], sizes = [32, 128], strides = [1, 1]} : vector<64x128xf32> to vector<32x128xf32>
    %91 = vector.shape_cast %90 : vector<32x128xf32> to vector<4x8x128xf32>
    %c0_47 = arith.constant 0 : index
    %c0_48 = arith.constant 0 : index
    %c0_49 = arith.constant 0 : index
    %92 = vector.load %arg3[%c0_47, %c0_48, %c0_49] : memref<1x27x128xf32, #tpu.memory_space<vmem>>, vector<1x1x128xf32>
    %93 = vector.shape_cast %92 : vector<1x1x128xf32> to vector<1x128xf32>
    %94 = vector.extract_strided_slice %76 {offsets = [0, 0, 0], sizes = [1, 8, 128], strides = [1, 1, 1]} : vector<3x8x128xf32> to vector<1x8x128xf32>
    %95 = vector.shape_cast %94 : vector<1x8x128xf32> to vector<8x128xf32>
    %96 = vector.broadcast %93 : vector<1x128xf32> to vector<8x128xf32>
    %97 = arith.mulf %96, %95 : vector<8x128xf32>
    %c0_50 = arith.constant 0 : index
    %c1 = arith.constant 1 : index
    %c0_51 = arith.constant 0 : index
    %98 = vector.load %arg3[%c0_50, %c1, %c0_51] : memref<1x27x128xf32, #tpu.memory_space<vmem>>, vector<1x1x128xf32>
    %99 = vector.shape_cast %98 : vector<1x1x128xf32> to vector<1x128xf32>
    %100 = vector.extract_strided_slice %76 {offsets = [1, 0, 0], sizes = [1, 8, 128], strides = [1, 1, 1]} : vector<3x8x128xf32> to vector<1x8x128xf32>
    %101 = vector.shape_cast %100 : vector<1x8x128xf32> to vector<8x128xf32>
    %102 = vector.broadcast %99 : vector<1x128xf32> to vector<8x128xf32>
    %103 = arith.mulf %102, %101 : vector<8x128xf32>
    %104 = arith.addf %97, %103 : vector<8x128xf32>
    %c0_52 = arith.constant 0 : index
    %c2 = arith.constant 2 : index
    %c0_53 = arith.constant 0 : index
    %105 = vector.load %arg3[%c0_52, %c2, %c0_53] : memref<1x27x128xf32, #tpu.memory_space<vmem>>, vector<1x1x128xf32>
    %106 = vector.shape_cast %105 : vector<1x1x128xf32> to vector<1x128xf32>
    %107 = vector.extract_strided_slice %76 {offsets = [2, 0, 0], sizes = [1, 8, 128], strides = [1, 1, 1]} : vector<3x8x128xf32> to vector<1x8x128xf32>
    %108 = vector.shape_cast %107 : vector<1x8x128xf32> to vector<8x128xf32>
    %109 = vector.broadcast %106 : vector<1x128xf32> to vector<8x128xf32>
    %110 = arith.mulf %109, %108 : vector<8x128xf32>
    %111 = arith.addf %104, %110 : vector<8x128xf32>
    %112 = vector.shape_cast %111 : vector<8x128xf32> to vector<1x8x128xf32>
    %113 = vector.broadcast %112 : vector<1x8x128xf32> to vector<4x8x128xf32>
    %114 = arith.mulf %89, %113 : vector<4x8x128xf32>
    %cst_54 = arith.constant dense<0.000000e+00> : vector<4x128xf32>
    %115 = vector.multi_reduction <add>, %114, %cst_54 [1] : vector<4x8x128xf32> to vector<4x128xf32>
    %116 = arith.addf %77, %115 : vector<4x128xf32>
    %117 = vector.shape_cast %111 : vector<8x128xf32> to vector<1x8x128xf32>
    %118 = vector.broadcast %117 : vector<1x8x128xf32> to vector<4x8x128xf32>
    %119 = arith.mulf %91, %118 : vector<4x8x128xf32>
    %cst_55 = arith.constant dense<0.000000e+00> : vector<4x128xf32>
    %120 = vector.multi_reduction <add>, %119, %cst_55 [1] : vector<4x8x128xf32> to vector<4x128xf32>
    %121 = arith.addf %80, %120 : vector<4x128xf32>
    %c0_56 = arith.constant 0 : index
    %c3 = arith.constant 3 : index
    %c0_57 = arith.constant 0 : index
    %122 = vector.load %arg3[%c0_56, %c3, %c0_57] : memref<1x27x128xf32, #tpu.memory_space<vmem>>, vector<1x1x128xf32>
    %123 = vector.shape_cast %122 : vector<1x1x128xf32> to vector<1x128xf32>
    %124 = vector.extract_strided_slice %76 {offsets = [0, 0, 0], sizes = [1, 8, 128], strides = [1, 1, 1]} : vector<3x8x128xf32> to vector<1x8x128xf32>
    %125 = vector.shape_cast %124 : vector<1x8x128xf32> to vector<8x128xf32>
    %126 = vector.broadcast %123 : vector<1x128xf32> to vector<8x128xf32>
    %127 = arith.mulf %126, %125 : vector<8x128xf32>
    %c0_58 = arith.constant 0 : index
    %c4 = arith.constant 4 : index
    %c0_59 = arith.constant 0 : index
    %128 = vector.load %arg3[%c0_58, %c4, %c0_59] : memref<1x27x128xf32, #tpu.memory_space<vmem>>, vector<1x1x128xf32>
    %129 = vector.shape_cast %128 : vector<1x1x128xf32> to vector<1x128xf32>
    %130 = vector.extract_strided_slice %76 {offsets = [1, 0, 0], sizes = [1, 8, 128], strides = [1, 1, 1]} : vector<3x8x128xf32> to vector<1x8x128xf32>
    %131 = vector.shape_cast %130 : vector<1x8x128xf32> to vector<8x128xf32>
    %132 = vector.broadcast %129 : vector<1x128xf32> to vector<8x128xf32>
    %133 = arith.mulf %132, %131 : vector<8x128xf32>
    %134 = arith.addf %127, %133 : vector<8x128xf32>
    %c0_60 = arith.constant 0 : index
    %c5 = arith.constant 5 : index
    %c0_61 = arith.constant 0 : index
    %135 = vector.load %arg3[%c0_60, %c5, %c0_61] : memref<1x27x128xf32, #tpu.memory_space<vmem>>, vector<1x1x128xf32>
    %136 = vector.shape_cast %135 : vector<1x1x128xf32> to vector<1x128xf32>
    %137 = vector.extract_strided_slice %76 {offsets = [2, 0, 0], sizes = [1, 8, 128], strides = [1, 1, 1]} : vector<3x8x128xf32> to vector<1x8x128xf32>
    %138 = vector.shape_cast %137 : vector<1x8x128xf32> to vector<8x128xf32>
    %139 = vector.broadcast %136 : vector<1x128xf32> to vector<8x128xf32>
    %140 = arith.mulf %139, %138 : vector<8x128xf32>
    %141 = arith.addf %134, %140 : vector<8x128xf32>
    %142 = vector.shape_cast %141 : vector<8x128xf32> to vector<1x8x128xf32>
    %143 = vector.broadcast %142 : vector<1x8x128xf32> to vector<4x8x128xf32>
    %144 = arith.mulf %89, %143 : vector<4x8x128xf32>
    %cst_62 = arith.constant dense<0.000000e+00> : vector<4x128xf32>
    %145 = vector.multi_reduction <add>, %144, %cst_62 [1] : vector<4x8x128xf32> to vector<4x128xf32>
    %146 = arith.addf %78, %145 : vector<4x128xf32>
    %147 = vector.shape_cast %141 : vector<8x128xf32> to vector<1x8x128xf32>
    %148 = vector.broadcast %147 : vector<1x8x128xf32> to vector<4x8x128xf32>
    %149 = arith.mulf %91, %148 : vector<4x8x128xf32>
    %cst_63 = arith.constant dense<0.000000e+00> : vector<4x128xf32>
    %150 = vector.multi_reduction <add>, %149, %cst_63 [1] : vector<4x8x128xf32> to vector<4x128xf32>
    %151 = arith.addf %81, %150 : vector<4x128xf32>
    %c0_64 = arith.constant 0 : index
    %c6 = arith.constant 6 : index
    %c0_65 = arith.constant 0 : index
    %152 = vector.load %arg3[%c0_64, %c6, %c0_65] : memref<1x27x128xf32, #tpu.memory_space<vmem>>, vector<1x1x128xf32>
    %153 = vector.shape_cast %152 : vector<1x1x128xf32> to vector<1x128xf32>
    %154 = vector.extract_strided_slice %76 {offsets = [0, 0, 0], sizes = [1, 8, 128], strides = [1, 1, 1]} : vector<3x8x128xf32> to vector<1x8x128xf32>
    %155 = vector.shape_cast %154 : vector<1x8x128xf32> to vector<8x128xf32>
    %156 = vector.broadcast %153 : vector<1x128xf32> to vector<8x128xf32>
    %157 = arith.mulf %156, %155 : vector<8x128xf32>
    %c0_66 = arith.constant 0 : index
    %c7 = arith.constant 7 : index
    %c0_67 = arith.constant 0 : index
    %158 = vector.load %arg3[%c0_66, %c7, %c0_67] : memref<1x27x128xf32, #tpu.memory_space<vmem>>, vector<1x1x128xf32>
    %159 = vector.shape_cast %158 : vector<1x1x128xf32> to vector<1x128xf32>
    %160 = vector.extract_strided_slice %76 {offsets = [1, 0, 0], sizes = [1, 8, 128], strides = [1, 1, 1]} : vector<3x8x128xf32> to vector<1x8x128xf32>
    %161 = vector.shape_cast %160 : vector<1x8x128xf32> to vector<8x128xf32>
    %162 = vector.broadcast %159 : vector<1x128xf32> to vector<8x128xf32>
    %163 = arith.mulf %162, %161 : vector<8x128xf32>
    %164 = arith.addf %157, %163 : vector<8x128xf32>
    %c0_68 = arith.constant 0 : index
    %c8 = arith.constant 8 : index
    %c0_69 = arith.constant 0 : index
    %165 = vector.load %arg3[%c0_68, %c8, %c0_69] : memref<1x27x128xf32, #tpu.memory_space<vmem>>, vector<1x1x128xf32>
    %166 = vector.shape_cast %165 : vector<1x1x128xf32> to vector<1x128xf32>
    %167 = vector.extract_strided_slice %76 {offsets = [2, 0, 0], sizes = [1, 8, 128], strides = [1, 1, 1]} : vector<3x8x128xf32> to vector<1x8x128xf32>
    %168 = vector.shape_cast %167 : vector<1x8x128xf32> to vector<8x128xf32>
    %169 = vector.broadcast %166 : vector<1x128xf32> to vector<8x128xf32>
    %170 = arith.mulf %169, %168 : vector<8x128xf32>
    %171 = arith.addf %164, %170 : vector<8x128xf32>
    %172 = vector.shape_cast %171 : vector<8x128xf32> to vector<1x8x128xf32>
    %173 = vector.broadcast %172 : vector<1x8x128xf32> to vector<4x8x128xf32>
    %174 = arith.mulf %89, %173 : vector<4x8x128xf32>
    %cst_70 = arith.constant dense<0.000000e+00> : vector<4x128xf32>
    %175 = vector.multi_reduction <add>, %174, %cst_70 [1] : vector<4x8x128xf32> to vector<4x128xf32>
    %176 = arith.addf %79, %175 : vector<4x128xf32>
    %177 = vector.shape_cast %171 : vector<8x128xf32> to vector<1x8x128xf32>
    %178 = vector.broadcast %177 : vector<1x8x128xf32> to vector<4x8x128xf32>
    %179 = arith.mulf %91, %178 : vector<4x8x128xf32>
    %cst_71 = arith.constant dense<0.000000e+00> : vector<4x128xf32>
    %180 = vector.multi_reduction <add>, %179, %cst_71 [1] : vector<4x8x128xf32> to vector<4x128xf32>
    %181 = arith.addf %82, %180 : vector<4x128xf32>
    %c64 = arith.constant 64 : index
    %c0_72 = arith.constant 0 : index
    %182 = vector.load %arg8[%c64, %c0_72] : memref<192x32xf32, #tpu.memory_space<vmem>>, vector<64x32xf32>
    %cst_73 = arith.constant dense<0.000000e+00> : vector<64x128xf32>
    %183 = tpu.matmul %182, %66, %cst_73 {dimension_numbers = #tpu.dot_dimension_numbers<[1], [0], [0], [1], [0, 0, 1, 1], [], []>} : vector<64x32xf32>, vector<32x128xf32>, vector<64x128xf32> -> vector<64x128xf32>
    %c64_74 = arith.constant 64 : index
    %c0_75 = arith.constant 0 : index
    %184 = vector.load %arg9[%c64_74, %c0_75] : memref<352x1xf32, #tpu.memory_space<vmem>>, vector<64x1xf32>
    %185 = vector.broadcast %184 : vector<64x1xf32> to vector<64x128xf32>
    %186 = arith.addf %183, %185 : vector<64x128xf32>
    %187 = vector.extract_strided_slice %186 {offsets = [0, 0], sizes = [32, 128], strides = [1, 1]} : vector<64x128xf32> to vector<32x128xf32>
    %188 = vector.shape_cast %187 : vector<32x128xf32> to vector<4x8x128xf32>
    %189 = vector.extract_strided_slice %186 {offsets = [32, 0], sizes = [32, 128], strides = [1, 1]} : vector<64x128xf32> to vector<32x128xf32>
    %190 = vector.shape_cast %189 : vector<32x128xf32> to vector<4x8x128xf32>
    %c0_76 = arith.constant 0 : index
    %c9 = arith.constant 9 : index
    %c0_77 = arith.constant 0 : index
    %191 = vector.load %arg3[%c0_76, %c9, %c0_77] : memref<1x27x128xf32, #tpu.memory_space<vmem>>, vector<1x1x128xf32>
    %192 = vector.shape_cast %191 : vector<1x1x128xf32> to vector<1x128xf32>
    %193 = vector.extract_strided_slice %76 {offsets = [0, 0, 0], sizes = [1, 8, 128], strides = [1, 1, 1]} : vector<3x8x128xf32> to vector<1x8x128xf32>
    %194 = vector.shape_cast %193 : vector<1x8x128xf32> to vector<8x128xf32>
    %195 = vector.broadcast %192 : vector<1x128xf32> to vector<8x128xf32>
    %196 = arith.mulf %195, %194 : vector<8x128xf32>
    %c0_78 = arith.constant 0 : index
    %c10 = arith.constant 10 : index
    %c0_79 = arith.constant 0 : index
    %197 = vector.load %arg3[%c0_78, %c10, %c0_79] : memref<1x27x128xf32, #tpu.memory_space<vmem>>, vector<1x1x128xf32>
    %198 = vector.shape_cast %197 : vector<1x1x128xf32> to vector<1x128xf32>
    %199 = vector.extract_strided_slice %76 {offsets = [1, 0, 0], sizes = [1, 8, 128], strides = [1, 1, 1]} : vector<3x8x128xf32> to vector<1x8x128xf32>
    %200 = vector.shape_cast %199 : vector<1x8x128xf32> to vector<8x128xf32>
    %201 = vector.broadcast %198 : vector<1x128xf32> to vector<8x128xf32>
    %202 = arith.mulf %201, %200 : vector<8x128xf32>
    %203 = arith.addf %196, %202 : vector<8x128xf32>
    %c0_80 = arith.constant 0 : index
    %c11 = arith.constant 11 : index
    %c0_81 = arith.constant 0 : index
    %204 = vector.load %arg3[%c0_80, %c11, %c0_81] : memref<1x27x128xf32, #tpu.memory_space<vmem>>, vector<1x1x128xf32>
    %205 = vector.shape_cast %204 : vector<1x1x128xf32> to vector<1x128xf32>
    %206 = vector.extract_strided_slice %76 {offsets = [2, 0, 0], sizes = [1, 8, 128], strides = [1, 1, 1]} : vector<3x8x128xf32> to vector<1x8x128xf32>
    %207 = vector.shape_cast %206 : vector<1x8x128xf32> to vector<8x128xf32>
    %208 = vector.broadcast %205 : vector<1x128xf32> to vector<8x128xf32>
    %209 = arith.mulf %208, %207 : vector<8x128xf32>
    %210 = arith.addf %203, %209 : vector<8x128xf32>
    %211 = vector.shape_cast %210 : vector<8x128xf32> to vector<1x8x128xf32>
    %212 = vector.broadcast %211 : vector<1x8x128xf32> to vector<4x8x128xf32>
    %213 = arith.mulf %188, %212 : vector<4x8x128xf32>
    %cst_82 = arith.constant dense<0.000000e+00> : vector<4x128xf32>
    %214 = vector.multi_reduction <add>, %213, %cst_82 [1] : vector<4x8x128xf32> to vector<4x128xf32>
    %215 = arith.addf %116, %214 : vector<4x128xf32>
    %216 = vector.shape_cast %210 : vector<8x128xf32> to vector<1x8x128xf32>
    %217 = vector.broadcast %216 : vector<1x8x128xf32> to vector<4x8x128xf32>
    %218 = arith.mulf %190, %217 : vector<4x8x128xf32>
    %cst_83 = arith.constant dense<0.000000e+00> : vector<4x128xf32>
    %219 = vector.multi_reduction <add>, %218, %cst_83 [1] : vector<4x8x128xf32> to vector<4x128xf32>
    %220 = arith.addf %121, %219 : vector<4x128xf32>
    %c0_84 = arith.constant 0 : index
    %c12 = arith.constant 12 : index
    %c0_85 = arith.constant 0 : index
    %221 = vector.load %arg3[%c0_84, %c12, %c0_85] : memref<1x27x128xf32, #tpu.memory_space<vmem>>, vector<1x1x128xf32>
    %222 = vector.shape_cast %221 : vector<1x1x128xf32> to vector<1x128xf32>
    %223 = vector.extract_strided_slice %76 {offsets = [0, 0, 0], sizes = [1, 8, 128], strides = [1, 1, 1]} : vector<3x8x128xf32> to vector<1x8x128xf32>
    %224 = vector.shape_cast %223 : vector<1x8x128xf32> to vector<8x128xf32>
    %225 = vector.broadcast %222 : vector<1x128xf32> to vector<8x128xf32>
    %226 = arith.mulf %225, %224 : vector<8x128xf32>
    %c0_86 = arith.constant 0 : index
    %c13 = arith.constant 13 : index
    %c0_87 = arith.constant 0 : index
    %227 = vector.load %arg3[%c0_86, %c13, %c0_87] : memref<1x27x128xf32, #tpu.memory_space<vmem>>, vector<1x1x128xf32>
    %228 = vector.shape_cast %227 : vector<1x1x128xf32> to vector<1x128xf32>
    %229 = vector.extract_strided_slice %76 {offsets = [1, 0, 0], sizes = [1, 8, 128], strides = [1, 1, 1]} : vector<3x8x128xf32> to vector<1x8x128xf32>
    %230 = vector.shape_cast %229 : vector<1x8x128xf32> to vector<8x128xf32>
    %231 = vector.broadcast %228 : vector<1x128xf32> to vector<8x128xf32>
    %232 = arith.mulf %231, %230 : vector<8x128xf32>
    %233 = arith.addf %226, %232 : vector<8x128xf32>
    %c0_88 = arith.constant 0 : index
    %c14 = arith.constant 14 : index
    %c0_89 = arith.constant 0 : index
    %234 = vector.load %arg3[%c0_88, %c14, %c0_89] : memref<1x27x128xf32, #tpu.memory_space<vmem>>, vector<1x1x128xf32>
    %235 = vector.shape_cast %234 : vector<1x1x128xf32> to vector<1x128xf32>
    %236 = vector.extract_strided_slice %76 {offsets = [2, 0, 0], sizes = [1, 8, 128], strides = [1, 1, 1]} : vector<3x8x128xf32> to vector<1x8x128xf32>
    %237 = vector.shape_cast %236 : vector<1x8x128xf32> to vector<8x128xf32>
    %238 = vector.broadcast %235 : vector<1x128xf32> to vector<8x128xf32>
    %239 = arith.mulf %238, %237 : vector<8x128xf32>
    %240 = arith.addf %233, %239 : vector<8x128xf32>
    %241 = vector.shape_cast %240 : vector<8x128xf32> to vector<1x8x128xf32>
    %242 = vector.broadcast %241 : vector<1x8x128xf32> to vector<4x8x128xf32>
    %243 = arith.mulf %188, %242 : vector<4x8x128xf32>
    %cst_90 = arith.constant dense<0.000000e+00> : vector<4x128xf32>
    %244 = vector.multi_reduction <add>, %243, %cst_90 [1] : vector<4x8x128xf32> to vector<4x128xf32>
    %245 = arith.addf %146, %244 : vector<4x128xf32>
    %246 = vector.shape_cast %240 : vector<8x128xf32> to vector<1x8x128xf32>
    %247 = vector.broadcast %246 : vector<1x8x128xf32> to vector<4x8x128xf32>
    %248 = arith.mulf %190, %247 : vector<4x8x128xf32>
    %cst_91 = arith.constant dense<0.000000e+00> : vector<4x128xf32>
    %249 = vector.multi_reduction <add>, %248, %cst_91 [1] : vector<4x8x128xf32> to vector<4x128xf32>
    %250 = arith.addf %151, %249 : vector<4x128xf32>
    %c0_92 = arith.constant 0 : index
    %c15 = arith.constant 15 : index
    %c0_93 = arith.constant 0 : index
    %251 = vector.load %arg3[%c0_92, %c15, %c0_93] : memref<1x27x128xf32, #tpu.memory_space<vmem>>, vector<1x1x128xf32>
    %252 = vector.shape_cast %251 : vector<1x1x128xf32> to vector<1x128xf32>
    %253 = vector.extract_strided_slice %76 {offsets = [0, 0, 0], sizes = [1, 8, 128], strides = [1, 1, 1]} : vector<3x8x128xf32> to vector<1x8x128xf32>
    %254 = vector.shape_cast %253 : vector<1x8x128xf32> to vector<8x128xf32>
    %255 = vector.broadcast %252 : vector<1x128xf32> to vector<8x128xf32>
    %256 = arith.mulf %255, %254 : vector<8x128xf32>
    %c0_94 = arith.constant 0 : index
    %c16 = arith.constant 16 : index
    %c0_95 = arith.constant 0 : index
    %257 = vector.load %arg3[%c0_94, %c16, %c0_95] : memref<1x27x128xf32, #tpu.memory_space<vmem>>, vector<1x1x128xf32>
    %258 = vector.shape_cast %257 : vector<1x1x128xf32> to vector<1x128xf32>
    %259 = vector.extract_strided_slice %76 {offsets = [1, 0, 0], sizes = [1, 8, 128], strides = [1, 1, 1]} : vector<3x8x128xf32> to vector<1x8x128xf32>
    %260 = vector.shape_cast %259 : vector<1x8x128xf32> to vector<8x128xf32>
    %261 = vector.broadcast %258 : vector<1x128xf32> to vector<8x128xf32>
    %262 = arith.mulf %261, %260 : vector<8x128xf32>
    %263 = arith.addf %256, %262 : vector<8x128xf32>
    %c0_96 = arith.constant 0 : index
    %c17 = arith.constant 17 : index
    %c0_97 = arith.constant 0 : index
    %264 = vector.load %arg3[%c0_96, %c17, %c0_97] : memref<1x27x128xf32, #tpu.memory_space<vmem>>, vector<1x1x128xf32>
    %265 = vector.shape_cast %264 : vector<1x1x128xf32> to vector<1x128xf32>
    %266 = vector.extract_strided_slice %76 {offsets = [2, 0, 0], sizes = [1, 8, 128], strides = [1, 1, 1]} : vector<3x8x128xf32> to vector<1x8x128xf32>
    %267 = vector.shape_cast %266 : vector<1x8x128xf32> to vector<8x128xf32>
    %268 = vector.broadcast %265 : vector<1x128xf32> to vector<8x128xf32>
    %269 = arith.mulf %268, %267 : vector<8x128xf32>
    %270 = arith.addf %263, %269 : vector<8x128xf32>
    %271 = vector.shape_cast %270 : vector<8x128xf32> to vector<1x8x128xf32>
    %272 = vector.broadcast %271 : vector<1x8x128xf32> to vector<4x8x128xf32>
    %273 = arith.mulf %188, %272 : vector<4x8x128xf32>
    %cst_98 = arith.constant dense<0.000000e+00> : vector<4x128xf32>
    %274 = vector.multi_reduction <add>, %273, %cst_98 [1] : vector<4x8x128xf32> to vector<4x128xf32>
    %275 = arith.addf %176, %274 : vector<4x128xf32>
    %276 = vector.shape_cast %270 : vector<8x128xf32> to vector<1x8x128xf32>
    %277 = vector.broadcast %276 : vector<1x8x128xf32> to vector<4x8x128xf32>
    %278 = arith.mulf %190, %277 : vector<4x8x128xf32>
    %cst_99 = arith.constant dense<0.000000e+00> : vector<4x128xf32>
    %279 = vector.multi_reduction <add>, %278, %cst_99 [1] : vector<4x8x128xf32> to vector<4x128xf32>
    %280 = arith.addf %181, %279 : vector<4x128xf32>
    %c128 = arith.constant 128 : index
    %c0_100 = arith.constant 0 : index
    %281 = vector.load %arg8[%c128, %c0_100] : memref<192x32xf32, #tpu.memory_space<vmem>>, vector<64x32xf32>
    %cst_101 = arith.constant dense<0.000000e+00> : vector<64x128xf32>
    %282 = tpu.matmul %281, %66, %cst_101 {dimension_numbers = #tpu.dot_dimension_numbers<[1], [0], [0], [1], [0, 0, 1, 1], [], []>} : vector<64x32xf32>, vector<32x128xf32>, vector<64x128xf32> -> vector<64x128xf32>
    %c128_102 = arith.constant 128 : index
    %c0_103 = arith.constant 0 : index
    %283 = vector.load %arg9[%c128_102, %c0_103] : memref<352x1xf32, #tpu.memory_space<vmem>>, vector<64x1xf32>
    %284 = vector.broadcast %283 : vector<64x1xf32> to vector<64x128xf32>
    %285 = arith.addf %282, %284 : vector<64x128xf32>
    %286 = vector.extract_strided_slice %285 {offsets = [0, 0], sizes = [32, 128], strides = [1, 1]} : vector<64x128xf32> to vector<32x128xf32>
    %287 = vector.shape_cast %286 : vector<32x128xf32> to vector<4x8x128xf32>
    %288 = vector.extract_strided_slice %285 {offsets = [32, 0], sizes = [32, 128], strides = [1, 1]} : vector<64x128xf32> to vector<32x128xf32>
    %289 = vector.shape_cast %288 : vector<32x128xf32> to vector<4x8x128xf32>
    %c0_104 = arith.constant 0 : index
    %c18 = arith.constant 18 : index
    %c0_105 = arith.constant 0 : index
    %290 = vector.load %arg3[%c0_104, %c18, %c0_105] : memref<1x27x128xf32, #tpu.memory_space<vmem>>, vector<1x1x128xf32>
    %291 = vector.shape_cast %290 : vector<1x1x128xf32> to vector<1x128xf32>
    %292 = vector.extract_strided_slice %76 {offsets = [0, 0, 0], sizes = [1, 8, 128], strides = [1, 1, 1]} : vector<3x8x128xf32> to vector<1x8x128xf32>
    %293 = vector.shape_cast %292 : vector<1x8x128xf32> to vector<8x128xf32>
    %294 = vector.broadcast %291 : vector<1x128xf32> to vector<8x128xf32>
    %295 = arith.mulf %294, %293 : vector<8x128xf32>
    %c0_106 = arith.constant 0 : index
    %c19 = arith.constant 19 : index
    %c0_107 = arith.constant 0 : index
    %296 = vector.load %arg3[%c0_106, %c19, %c0_107] : memref<1x27x128xf32, #tpu.memory_space<vmem>>, vector<1x1x128xf32>
    %297 = vector.shape_cast %296 : vector<1x1x128xf32> to vector<1x128xf32>
    %298 = vector.extract_strided_slice %76 {offsets = [1, 0, 0], sizes = [1, 8, 128], strides = [1, 1, 1]} : vector<3x8x128xf32> to vector<1x8x128xf32>
    %299 = vector.shape_cast %298 : vector<1x8x128xf32> to vector<8x128xf32>
    %300 = vector.broadcast %297 : vector<1x128xf32> to vector<8x128xf32>
    %301 = arith.mulf %300, %299 : vector<8x128xf32>
    %302 = arith.addf %295, %301 : vector<8x128xf32>
    %c0_108 = arith.constant 0 : index
    %c20 = arith.constant 20 : index
    %c0_109 = arith.constant 0 : index
    %303 = vector.load %arg3[%c0_108, %c20, %c0_109] : memref<1x27x128xf32, #tpu.memory_space<vmem>>, vector<1x1x128xf32>
    %304 = vector.shape_cast %303 : vector<1x1x128xf32> to vector<1x128xf32>
    %305 = vector.extract_strided_slice %76 {offsets = [2, 0, 0], sizes = [1, 8, 128], strides = [1, 1, 1]} : vector<3x8x128xf32> to vector<1x8x128xf32>
    %306 = vector.shape_cast %305 : vector<1x8x128xf32> to vector<8x128xf32>
    %307 = vector.broadcast %304 : vector<1x128xf32> to vector<8x128xf32>
    %308 = arith.mulf %307, %306 : vector<8x128xf32>
    %309 = arith.addf %302, %308 : vector<8x128xf32>
    %310 = vector.shape_cast %309 : vector<8x128xf32> to vector<1x8x128xf32>
    %311 = vector.broadcast %310 : vector<1x8x128xf32> to vector<4x8x128xf32>
    %312 = arith.mulf %287, %311 : vector<4x8x128xf32>
    %cst_110 = arith.constant dense<0.000000e+00> : vector<4x128xf32>
    %313 = vector.multi_reduction <add>, %312, %cst_110 [1] : vector<4x8x128xf32> to vector<4x128xf32>
    %314 = arith.addf %215, %313 : vector<4x128xf32>
    %315 = vector.shape_cast %309 : vector<8x128xf32> to vector<1x8x128xf32>
    %316 = vector.broadcast %315 : vector<1x8x128xf32> to vector<4x8x128xf32>
    %317 = arith.mulf %289, %316 : vector<4x8x128xf32>
    %cst_111 = arith.constant dense<0.000000e+00> : vector<4x128xf32>
    %318 = vector.multi_reduction <add>, %317, %cst_111 [1] : vector<4x8x128xf32> to vector<4x128xf32>
    %319 = arith.addf %220, %318 : vector<4x128xf32>
    %c0_112 = arith.constant 0 : index
    %c21 = arith.constant 21 : index
    %c0_113 = arith.constant 0 : index
    %320 = vector.load %arg3[%c0_112, %c21, %c0_113] : memref<1x27x128xf32, #tpu.memory_space<vmem>>, vector<1x1x128xf32>
    %321 = vector.shape_cast %320 : vector<1x1x128xf32> to vector<1x128xf32>
    %322 = vector.extract_strided_slice %76 {offsets = [0, 0, 0], sizes = [1, 8, 128], strides = [1, 1, 1]} : vector<3x8x128xf32> to vector<1x8x128xf32>
    %323 = vector.shape_cast %322 : vector<1x8x128xf32> to vector<8x128xf32>
    %324 = vector.broadcast %321 : vector<1x128xf32> to vector<8x128xf32>
    %325 = arith.mulf %324, %323 : vector<8x128xf32>
    %c0_114 = arith.constant 0 : index
    %c22 = arith.constant 22 : index
    %c0_115 = arith.constant 0 : index
    %326 = vector.load %arg3[%c0_114, %c22, %c0_115] : memref<1x27x128xf32, #tpu.memory_space<vmem>>, vector<1x1x128xf32>
    %327 = vector.shape_cast %326 : vector<1x1x128xf32> to vector<1x128xf32>
    %328 = vector.extract_strided_slice %76 {offsets = [1, 0, 0], sizes = [1, 8, 128], strides = [1, 1, 1]} : vector<3x8x128xf32> to vector<1x8x128xf32>
    %329 = vector.shape_cast %328 : vector<1x8x128xf32> to vector<8x128xf32>
    %330 = vector.broadcast %327 : vector<1x128xf32> to vector<8x128xf32>
    %331 = arith.mulf %330, %329 : vector<8x128xf32>
    %332 = arith.addf %325, %331 : vector<8x128xf32>
    %c0_116 = arith.constant 0 : index
    %c23 = arith.constant 23 : index
    %c0_117 = arith.constant 0 : index
    %333 = vector.load %arg3[%c0_116, %c23, %c0_117] : memref<1x27x128xf32, #tpu.memory_space<vmem>>, vector<1x1x128xf32>
    %334 = vector.shape_cast %333 : vector<1x1x128xf32> to vector<1x128xf32>
    %335 = vector.extract_strided_slice %76 {offsets = [2, 0, 0], sizes = [1, 8, 128], strides = [1, 1, 1]} : vector<3x8x128xf32> to vector<1x8x128xf32>
    %336 = vector.shape_cast %335 : vector<1x8x128xf32> to vector<8x128xf32>
    %337 = vector.broadcast %334 : vector<1x128xf32> to vector<8x128xf32>
    %338 = arith.mulf %337, %336 : vector<8x128xf32>
    %339 = arith.addf %332, %338 : vector<8x128xf32>
    %340 = vector.shape_cast %339 : vector<8x128xf32> to vector<1x8x128xf32>
    %341 = vector.broadcast %340 : vector<1x8x128xf32> to vector<4x8x128xf32>
    %342 = arith.mulf %287, %341 : vector<4x8x128xf32>
    %cst_118 = arith.constant dense<0.000000e+00> : vector<4x128xf32>
    %343 = vector.multi_reduction <add>, %342, %cst_118 [1] : vector<4x8x128xf32> to vector<4x128xf32>
    %344 = arith.addf %245, %343 : vector<4x128xf32>
    %345 = vector.shape_cast %339 : vector<8x128xf32> to vector<1x8x128xf32>
    %346 = vector.broadcast %345 : vector<1x8x128xf32> to vector<4x8x128xf32>
    %347 = arith.mulf %289, %346 : vector<4x8x128xf32>
    %cst_119 = arith.constant dense<0.000000e+00> : vector<4x128xf32>
    %348 = vector.multi_reduction <add>, %347, %cst_119 [1] : vector<4x8x128xf32> to vector<4x128xf32>
    %349 = arith.addf %250, %348 : vector<4x128xf32>
    %c0_120 = arith.constant 0 : index
    %c24 = arith.constant 24 : index
    %c0_121 = arith.constant 0 : index
    %350 = vector.load %arg3[%c0_120, %c24, %c0_121] : memref<1x27x128xf32, #tpu.memory_space<vmem>>, vector<1x1x128xf32>
    %351 = vector.shape_cast %350 : vector<1x1x128xf32> to vector<1x128xf32>
    %352 = vector.extract_strided_slice %76 {offsets = [0, 0, 0], sizes = [1, 8, 128], strides = [1, 1, 1]} : vector<3x8x128xf32> to vector<1x8x128xf32>
    %353 = vector.shape_cast %352 : vector<1x8x128xf32> to vector<8x128xf32>
    %354 = vector.broadcast %351 : vector<1x128xf32> to vector<8x128xf32>
    %355 = arith.mulf %354, %353 : vector<8x128xf32>
    %c0_122 = arith.constant 0 : index
    %c25 = arith.constant 25 : index
    %c0_123 = arith.constant 0 : index
    %356 = vector.load %arg3[%c0_122, %c25, %c0_123] : memref<1x27x128xf32, #tpu.memory_space<vmem>>, vector<1x1x128xf32>
    %357 = vector.shape_cast %356 : vector<1x1x128xf32> to vector<1x128xf32>
    %358 = vector.extract_strided_slice %76 {offsets = [1, 0, 0], sizes = [1, 8, 128], strides = [1, 1, 1]} : vector<3x8x128xf32> to vector<1x8x128xf32>
    %359 = vector.shape_cast %358 : vector<1x8x128xf32> to vector<8x128xf32>
    %360 = vector.broadcast %357 : vector<1x128xf32> to vector<8x128xf32>
    %361 = arith.mulf %360, %359 : vector<8x128xf32>
    %362 = arith.addf %355, %361 : vector<8x128xf32>
    %c0_124 = arith.constant 0 : index
    %c26 = arith.constant 26 : index
    %c0_125 = arith.constant 0 : index
    %363 = vector.load %arg3[%c0_124, %c26, %c0_125] : memref<1x27x128xf32, #tpu.memory_space<vmem>>, vector<1x1x128xf32>
    %364 = vector.shape_cast %363 : vector<1x1x128xf32> to vector<1x128xf32>
    %365 = vector.extract_strided_slice %76 {offsets = [2, 0, 0], sizes = [1, 8, 128], strides = [1, 1, 1]} : vector<3x8x128xf32> to vector<1x8x128xf32>
    %366 = vector.shape_cast %365 : vector<1x8x128xf32> to vector<8x128xf32>
    %367 = vector.broadcast %364 : vector<1x128xf32> to vector<8x128xf32>
    %368 = arith.mulf %367, %366 : vector<8x128xf32>
    %369 = arith.addf %362, %368 : vector<8x128xf32>
    %370 = vector.shape_cast %369 : vector<8x128xf32> to vector<1x8x128xf32>
    %371 = vector.broadcast %370 : vector<1x8x128xf32> to vector<4x8x128xf32>
    %372 = arith.mulf %287, %371 : vector<4x8x128xf32>
    %cst_126 = arith.constant dense<0.000000e+00> : vector<4x128xf32>
    %373 = vector.multi_reduction <add>, %372, %cst_126 [1] : vector<4x8x128xf32> to vector<4x128xf32>
    %374 = arith.addf %275, %373 : vector<4x128xf32>
    %375 = vector.shape_cast %369 : vector<8x128xf32> to vector<1x8x128xf32>
    %376 = vector.broadcast %375 : vector<1x8x128xf32> to vector<4x8x128xf32>
    %377 = arith.mulf %289, %376 : vector<4x8x128xf32>
    %cst_127 = arith.constant dense<0.000000e+00> : vector<4x128xf32>
    %378 = vector.multi_reduction <add>, %377, %cst_127 [1] : vector<4x8x128xf32> to vector<4x128xf32>
    %379 = arith.addf %280, %378 : vector<4x128xf32>
    %380 = tpu.concatenate %314, %344, %374 in 0 : vector<4x128xf32>, vector<4x128xf32>, vector<4x128xf32> -> vector<12x128xf32>
    %381 = tpu.concatenate %319, %349, %379 in 0 : vector<4x128xf32>, vector<4x128xf32>, vector<4x128xf32> -> vector<12x128xf32>
    %c0_128 = arith.constant 0 : index
    %c0_129 = arith.constant 0 : index
    %382 = vector.load %arg10[%c0_128, %c0_129] : memref<12x24xf32, #tpu.memory_space<vmem>>, vector<12x24xf32>
    %cst_130 = arith.constant dense<0.000000e+00> : vector<12x32xf32>
    %383 = tpu.matmul %382, %68, %cst_130 {dimension_numbers = #tpu.dot_dimension_numbers<[1], [0], [0], [1], [0, 0, 1, 1], [], []>} : vector<12x24xf32>, vector<24x32xf32>, vector<12x32xf32> -> vector<12x32xf32>
    %cst_131 = arith.constant dense<0.000000e+00> : vector<12x128xf32>
    %384 = tpu.matmul %383, %74, %cst_131 {dimension_numbers = #tpu.dot_dimension_numbers<[1], [0], [0], [1], [0, 0, 1, 1], [], []>} : vector<12x32xf32>, vector<32x128xf32>, vector<12x128xf32> -> vector<12x128xf32>
    %c0_132 = arith.constant 0 : index
    %c0_133 = arith.constant 0 : index
    %385 = vector.load %arg13[%c0_132, %c0_133] : memref<2x12xbf16, #tpu.memory_space<vmem>>, vector<2x12xbf16>
    %386 = arith.extf %385 : vector<2x12xbf16> to vector<2x12xf32>
    %387 = arith.mulf %381, %384 : vector<12x128xf32>
    %cst_134 = arith.constant dense<0.000000e+00> : vector<2x128xf32>
    %388 = tpu.matmul %386, %387, %cst_134 {dimension_numbers = #tpu.dot_dimension_numbers<[1], [0], [0], [1], [0, 0, 1, 1], [], []>} : vector<2x12xf32>, vector<12x128xf32>, vector<2x128xf32> -> vector<2x128xf32>
    %cst_135 = arith.constant dense<0xFF800000> : vector<2xf32>
    %389 = vector.multi_reduction <maximumf>, %388, %cst_135 [1] : vector<2x128xf32> to vector<2xf32>
    %390 = vector.shape_cast %389 : vector<2xf32> to vector<2x1xf32>
    %391 = vector.broadcast %390 : vector<2x1xf32> to vector<2x128xf32>
    %392 = arith.subf %388, %391 : vector<2x128xf32>
    %393 = math.exp %392 : vector<2x128xf32>
    %cst_136 = arith.constant dense<0.000000e+00> : vector<2x32xf32>
    %394 = tpu.matmul %393, %74, %cst_136 {dimension_numbers = #tpu.dot_dimension_numbers<[1], [1], [0], [0], [0, 0, 1, 0], [], []>} : vector<2x128xf32>, vector<32x128xf32>, vector<2x32xf32> -> vector<2x32xf32>
    %cst_137 = arith.constant dense<0.000000e+00> : vector<2x128xf32>
    %395 = tpu.matmul %394, %74, %cst_137 {dimension_numbers = #tpu.dot_dimension_numbers<[1], [0], [0], [1], [0, 0, 1, 1], [], []>} : vector<2x32xf32>, vector<32x128xf32>, vector<2x128xf32> -> vector<2x128xf32>
    %396 = tpu.reciprocal %395 {approx = true} : vector<2x128xf32> -> vector<2x128xf32>
    %397 = arith.mulf %393, %396 : vector<2x128xf32>
    %398 = vector.extract_strided_slice %397 {offsets = [0, 0], sizes = [1, 128], strides = [1, 1]} : vector<2x128xf32> to vector<1x128xf32>
    %399 = vector.extract_strided_slice %397 {offsets = [0, 0], sizes = [1, 128], strides = [1, 1]} : vector<2x128xf32> to vector<1x128xf32>
    %400 = vector.extract_strided_slice %397 {offsets = [1, 0], sizes = [1, 128], strides = [1, 1]} : vector<2x128xf32> to vector<1x128xf32>
    %401 = vector.extract_strided_slice %397 {offsets = [1, 0], sizes = [1, 128], strides = [1, 1]} : vector<2x128xf32> to vector<1x128xf32>
    %402 = tpu.concatenate %398, %399, %400, %401 in 0 : vector<1x128xf32>, vector<1x128xf32>, vector<1x128xf32>, vector<1x128xf32> -> vector<4x128xf32>
    %403 = tpu.concatenate %402, %402, %402 in 0 : vector<4x128xf32>, vector<4x128xf32>, vector<4x128xf32> -> vector<12x128xf32>
    %404 = arith.mulf %403, %380 : vector<12x128xf32>
    %cst_138 = arith.constant dense<0.000000e+00> : vector<12x32xf32>
    %405 = tpu.matmul %404, %74, %cst_138 {dimension_numbers = #tpu.dot_dimension_numbers<[1], [1], [0], [0], [0, 0, 1, 0], [], []>} : vector<12x128xf32>, vector<32x128xf32>, vector<12x32xf32> -> vector<12x32xf32>
    %c0_139 = arith.constant 0 : index
    %c0_140 = arith.constant 0 : index
    %406 = vector.load %arg11[%c0_139, %c0_140] : memref<48x12xf32, #tpu.memory_space<vmem>>, vector<48x12xf32>
    %cst_141 = arith.constant dense<0.000000e+00> : vector<48x32xf32>
    %407 = tpu.matmul %406, %405, %cst_141 {dimension_numbers = #tpu.dot_dimension_numbers<[1], [0], [0], [1], [0, 0, 1, 1], [], []>} : vector<48x12xf32>, vector<12x32xf32>, vector<48x32xf32> -> vector<48x32xf32>
    %c0_142 = arith.constant 0 : index
    %c0_143 = arith.constant 0 : index
    %408 = vector.load %arg12[%c0_142, %c0_143] : memref<48x24xf32, #tpu.memory_space<vmem>>, vector<48x24xf32>
    %cst_144 = arith.constant dense<0.000000e+00> : vector<48x32xf32>
    %409 = tpu.matmul %408, %68, %cst_144 {dimension_numbers = #tpu.dot_dimension_numbers<[1], [0], [0], [1], [0, 0, 1, 1], [], []>} : vector<48x24xf32>, vector<24x32xf32>, vector<48x32xf32> -> vector<48x32xf32>
    %410 = arith.addf %407, %409 : vector<48x32xf32>
    %c0_145 = arith.constant 0 : index
    %c0_146 = arith.constant 0 : index
    %c0_147 = arith.constant 0 : index
    %411 = vector.load %arg14[%c0_145, %c0_146, %c0_147] : memref<1x48x32xf32, #tpu.memory_space<vmem>>, vector<1x48x32xf32>
    %412 = vector.shape_cast %411 : vector<1x48x32xf32> to vector<48x32xf32>
    %413 = vector.shape_cast %410 : vector<48x32xf32> to vector<1x48x32xf32>
    tpu.vector_store %arg14[%c0_145, %c0_146, %c0_147], %413 {strides = array<i32>} : memref<1x48x32xf32, #tpu.memory_space<vmem>>, vector<1x48x32xf32>,
    return
  }
  func.func @transform_0(%arg0: i32) -> (i32, i32, i32) {
    %c0_i32 = arith.constant 0 : i32
    %c0_i32_0 = arith.constant 0 : i32
    %c0_i32_1 = arith.constant 0 : i32
    return %arg0, %c0_i32, %c0_i32_0 : i32, i32, i32
  }
  func.func @transform_1(%arg0: i32) -> (i32, i32, i32) {
    %c0_i32 = arith.constant 0 : i32
    %c0_i32_0 = arith.constant 0 : i32
    %c0_i32_1 = arith.constant 0 : i32
    return %arg0, %c0_i32, %c0_i32_0 : i32, i32, i32
  }
  func.func @transform_2(%arg0: i32) -> (i32, i32, i32) {
    %c0_i32 = arith.constant 0 : i32
    %c0_i32_0 = arith.constant 0 : i32
    %c0_i32_1 = arith.constant 0 : i32
    return %arg0, %c0_i32, %c0_i32_0 : i32, i32, i32
  }
  func.func @transform_3(%arg0: i32) -> (i32, i32, i32) {
    %c0_i32 = arith.constant 0 : i32
    %c0_i32_0 = arith.constant 0 : i32
    %c0_i32_1 = arith.constant 0 : i32
    return %arg0, %c0_i32, %c0_i32_0 : i32, i32, i32
  }
  func.func @transform_4(%arg0: i32) -> (i32, i32, i32) {
    %c0_i32 = arith.constant 0 : i32
    %c0_i32_0 = arith.constant 0 : i32
    %c0_i32_1 = arith.constant 0 : i32
    return %arg0, %c0_i32, %c0_i32_0 : i32, i32, i32
  }
  func.func @transform_5(%arg0: i32) -> (i32, i32) {
    %c0_i32 = arith.constant 0 : i32
    %c0_i32_0 = arith.constant 0 : i32
    %c0_i32_1 = arith.constant 0 : i32
    return %c0_i32, %c0_i32_0 : i32, i32
  }
  func.func @transform_6(%arg0: i32) -> (i32, i32) {
    %c0_i32 = arith.constant 0 : i32
    %c0_i32_0 = arith.constant 0 : i32
    %c0_i32_1 = arith.constant 0 : i32
    return %c0_i32, %c0_i32_0 : i32, i32
  }
  func.func @transform_7(%arg0: i32) -> (i32, i32) {
    %c0_i32 = arith.constant 0 : i32
    %c0_i32_0 = arith.constant 0 : i32
    %c0_i32_1 = arith.constant 0 : i32
    return %c0_i32, %c0_i32_0 : i32, i32
  }
  func.func @transform_8(%arg0: i32) -> (i32, i32) {
    %c0_i32 = arith.constant 0 : i32
    %c0_i32_0 = arith.constant 0 : i32
    %c0_i32_1 = arith.constant 0 : i32
    return %c0_i32, %c0_i32_0 : i32, i32
  }
  func.func @transform_9(%arg0: i32) -> (i32, i32) {
    %c0_i32 = arith.constant 0 : i32
    %c0_i32_0 = arith.constant 0 : i32
    %c0_i32_1 = arith.constant 0 : i32
    return %c0_i32, %c0_i32_0 : i32, i32
  }
  func.func @transform_10(%arg0: i32) -> (i32, i32) {
    %c0_i32 = arith.constant 0 : i32
    %c0_i32_0 = arith.constant 0 : i32
    %c0_i32_1 = arith.constant 0 : i32
    return %c0_i32, %c0_i32_0 : i32, i32
  }
  func.func @transform_11(%arg0: i32) -> (i32, i32) {
    %c0_i32 = arith.constant 0 : i32
    %c0_i32_0 = arith.constant 0 : i32
    %c0_i32_1 = arith.constant 0 : i32
    return %c0_i32, %c0_i32_0 : i32, i32
  }
  func.func @transform_12(%arg0: i32) -> (i32, i32) {
    %c0_i32 = arith.constant 0 : i32
    %c0_i32_0 = arith.constant 0 : i32
    %c0_i32_1 = arith.constant 0 : i32
    return %c0_i32, %c0_i32_0 : i32, i32
  }
  func.func @transform_13(%arg0: i32) -> (i32, i32, i32) {
    %c0_i32 = arith.constant 0 : i32
    %c0_i32_0 = arith.constant 0 : i32
    %c0_i32_1 = arith.constant 0 : i32
    return %arg0, %c0_i32, %c0_i32_0 : i32, i32, i32
  }
}

</mosaic_0001>

<bundles_post_ra>
// kernel: encode_layer_forward.1
= control target key start
LH: loop header
LB: loop body
LE: loop exit
PB: predicated region body
PF: predicated region fallthrough
CT: control target
= control target key end

     0   :  { %s3787_s25 = smov 0   ;;  %s4615_s0 = inlined_call_operand.vmem [shape: f32[2,4,128], index: 0, kind: input, shape index: {}]   ;;  %s4616_s1 = inlined_call_operand.vmem [shape: f32[2,24,32], index: 1, kind: input, shape index: {}]   ;;  %s4617_s2 = inlined_call_operand.vmem [shape: f32[2,27,128], index: 2, kind: input, shape index: {}]   ;;  %s4618_s3 = inlined_call_operand.vmem [shape: bf16[2,32,128], index: 3, kind: input, shape index: {}]   ;;  %s4619_s4 = inlined_call_operand.vmem [shape: bf16[2,32,128], index: 4, kind: input, shape index: {}]   ;;  %s4620_s5 = inlined_call_operand.vmem [shape: f32[32,4], index: 5, kind: input, shape index: {}]   ;;  %s4621_s6 = inlined_call_operand.vmem [shape: f32[32,32], index: 6, kind: input, shape index: {}]   ;;  %s4622_s7 = inlined_call_operand.vmem [shape: f32[192,32], index: 7, kind: input, shape index: {}]   ;;  %s4623_s8 = inlined_call_operand.vmem [shape: f32[352,1], index: 8, kind: input, shape index: {}]   ;;  %s4624_s9 = inlined_call_operand.vmem [shape: f32[12,24], index: 9, kind: input, shape index: {}]   ;;  %s4625_s10 = inlined_call_operand.vmem [shape: f32[48,12], index: 10, kind: input, shape index: {}]   ;;  %s4626_s11 = inlined_call_operand.vmem [shape: f32[48,24], index: 11, kind: input, shape index: {}]   ;;  %s4627_s12 = inlined_call_operand.vmem [shape: bf16[2,12], index: 12, kind: input, shape index: {}]   ;;  %s4628_s13 = inlined_call_operand.vmem [shape: f32[2,48,32], index: 13, kind: output, shape index: {}]  }
   0x1 LB: > { %s3270_s26 = sadd.s32 4294967295, %s3712_s25   ;;  %p3274_p0 = scmp.ge.s32.totalorder %s3712_s25, 1  ;;  %s3712_s25 = sphi %s3787_s25, %s23_s25  }
   0x2   : > { %p426_p1 = scmp.lt.s32.totalorder %s3712_s25, 3 }
   0x4   : > { %p427_p2 = pnand %p3274_p0, %p426_p1 }
   0x6   : > { %430 = sbr.rel (%p427_p2) target bundleno = 2146 (0x862), region = 72 }
   0xb   : > { %p489_p3 = scmp.lt.s32.totalorder %s3270_s26, 1  ;;  %v538_v0 = vld [vmem:[%s4620_s5] sm:$0xff]  ;;  %vm543_vm0 = vcmask 31744   ;;  %v525_v1 = vld [vmem:[%s4623_s8 + $0xf8] sm:$0xff]  ;;  %v3714_v2 = vmov 0   ;;  %vm556_vm1 = vcmask 1043456  }
   0xc   : > { %3495 = vmatprep.mubr.msk.f32.mxu1 %vm543_vm0, %v538_v0  ;;  %3694 = vset.pattern.permute.xlu1 %v3714_v2  ;;  %v519_v3 = vld [vmem:[%s4623_s8 + $0xc8] sm:$0xff]  ;;  %v521_v4 = vld [vmem:[%s4623_s8 + $0xd8] sm:$0xff]  ;;  %v540_v7 = vld [vmem:[%s4620_s5 + $0x10] sm:$0xff]  ;;  %vm764_vm2 = vcmask 261120   ;;  %vm3716_vm7 = vmmov 0   ;;  %vm2433_vm12 = vcmask 195584  }
   0xd   : > { %s4671_s26 = smov (!%p489_p3, %s3270_s26), 1  ;;  %3693 = vset.pattern.permute.xlu0 %v3714_v2  ;;  %721 = vperm.xlu1 %3694, %v525_v1   ;;  %v539_v6 = vld [vmem:[%s4620_s5 + $0x8] sm:$0xff]  ;;  %v520_v8 = vld [vmem:[%s4623_s8 + $0xd0] sm:$0xff]  ;;  %v518_v9 = vld [vmem:[%s4623_s8 + $0xc0] sm:$0xff]  ;;  %vm2379_vm13 = vcmask 1041409   ;;  %vm2381_vm14 = vcmask 1042434  }
   0xe   : > { %s3275_s14 = sshll.u32 %s4671_s26, 2  ;;  %697 = vperm.xlu0 %3693, %v521_v4   ;;  %v541_v10 = vld [vmem:[%s4620_s5 + $0x18] sm:$0xff]  ;;  %v524_v11 = vld [vmem:[%s4623_s8 + $0xf0] sm:$0xff]  ;;  %v522_v12 = vld [vmem:[%s4623_s8 + $0xe0] sm:$0xff]  ;;  %s3370_s28 = sshll.u32 %s4671_s26, 4  ;;  %vm2383_vm15 = vcmask 1043459  }
   0xf   : > { %s492_s19 = scalar_lea.vmem %s4615_s0, %s3275_s14  ;;  %v523_v13 = vld [vmem:[%s4623_s8 + $0xe8] sm:$0xff]  ;;  %v526_v15 = vld [vmem:[%s4623_s8 + $0x100] sm:$0xff]  ;;  %v529_v16 = vld [vmem:[%s4623_s8 + $0x118] sm:$0xff]  ;;  %s507_s14 = scalar_lea.vmem %s4618_s3, %s3370_s28 }
  0x10   : > { %v542_v5 = vld [vmem:[%s492_s19] sm:$0xf]  ;;  %v527_v14 = vld [vmem:[%s4623_s8 + $0x108] sm:$0xff]  ;;  %v528_v17 = vld [vmem:[%s4623_s8 + $0x110] sm:$0xff]  ;;  %s3680_s15 = smul.u32 24, %s4671_s26  ;;  %s4041_s29 = scalar_lea.vmem %s4619_s4, %s3370_s28 }
  0x11   : > { %3493 = vmatprep.subr.msk.mxu1 %vm556_vm1, %v542_v5  ;;  %687 = vperm.xlu1 %3694, %v519_v3   ;;  %v532_v18 = vld [vmem:[%s4623_s8 + $0x130] sm:$0xff]  ;;  %v533_v19 = vld [vmem:[%s4623_s8 + $0x138] sm:$0xff]  ;;  %v531_v20 = vld [vmem:[%s4623_s8 + $0x128] sm:$0xff]  ;;  %s3369_s20 = sshll.u32 %s4671_s26, 5  ;;  %s3681_s22 = smul.u32 48, %s4671_s26 }
  0x12   : > { %3494 = vmatpush3.msk.msra.mxu1 %vm556_vm1, %v542_v5  ;;  %692 = vperm.xlu0 %3693, %v520_v8   ;;  %v537_v21 = vld [vmem:[%s4623_s8 + $0x158] sm:$0xff]  ;;  %v530_v22 = vld [vmem:[%s4623_s8 + $0x120] sm:$0xff]  ;;  %v536_v23 = vld [vmem:[%s4623_s8 + $0x150] sm:$0xff]  ;;  %s3978_s18 = scalar_lea.vmem %s4616_s1, %s3680_s15  ;;  %s4152_s23 = scalar_lea.vmem %s4617_s2, %s3369_s20 }
  0x13   : > { %3496 = vmatmul.mubr.msk.f32.vlgmr.msra.gmra.mxu1 %vm543_vm0, %v539_v6  ;;  %v534_v24 = vld [vmem:[%s4623_s8 + $0x140] sm:$0xff]  ;;  %v535_v25 = vld [vmem:[%s4623_s8 + $0x148] sm:$0xff]  ;;  %v1515_v30 = vld [vmem:[%s4623_s8 + $0x70] sm:$0xff]  ;;  %s517_s24 = scalar_lea.vmem %s4628_s13, %s3681_s22 }
  0x14   : > { %3498 = vmatprep.mubr.msk.f32.mxu1 %vm543_vm0, %v540_v7  ;;  %v1077_v26 = vld [vmem:[%s4623_s8 + $0x28] sm:$0xff]  ;;  %v1076_v27 = vld [vmem:[%s4623_s8 + $0x20] sm:$0xff]  ;;  %v1078_v31 = vld [vmem:[%s4623_s8 + $0x30] sm:$0xff] }
  0x15   : > { %682 = vperm.xlu1 %3694, %v518_v9   ;;  %v1514_v28 = vld [vmem:[%s4623_s8 + $0x68] sm:$0xff]  ;;  %v1513_v29 = vld [vmem:[%s4623_s8 + $0x60] sm:$0xff]  ;;  %v1516_v32 = vld [vmem:[%s4623_s8 + $0x78] sm:$0xff] }
  0x16   : > { %716 = vperm.xlu0 %3693, %v524_v11   ;;  %v1079_v33 = vld [vmem:[%s4623_s8 + $0x38] sm:$0xff]  ;;  %v1951_v34 = vld [vmem:[%s4623_s8 + $0xa8] sm:$0xff]  ;;  %v1950_v35 = vld [vmem:[%s4623_s8 + $0xa0] sm:$0xff] }
  0x17   : > { %3499 = vmatmul.mubr.msk.f32.gmra.mxu1 %vm543_vm0, %v541_v10  ;;  %v1953_v36 = vld [vmem:[%s4623_s8 + $0xb8] sm:$0xff]  ;;  %v1952_v37 = vld [vmem:[%s4623_s8 + $0xb0] sm:$0xff]  ;;  %v1072_v38 = vld [vmem:[%s4623_s8] sm:$0xff]  ;;  %vm2390_vm0 = vcmask 1045509  }
  0x18   : > { %v1073_v39 = vld [vmem:[%s4623_s8 + $0x8] sm:$0xff]  ;;  %v1509_v40 = vld [vmem:[%s4623_s8 + $0x40] sm:$0xff]  ;;  %v1074_v42 = vld [vmem:[%s4623_s8 + $0x10] sm:$0xff] }
  0x19   : > { %706 = vperm.xlu1 %3694, %v522_v12   ;;  %v1510_v41 = vld [vmem:[%s4623_s8 + $0x48] sm:$0xff]  ;;  %v1511_v43 = vld [vmem:[%s4623_s8 + $0x50] sm:$0xff]  ;;  %v1075_v44 = vld [vmem:[%s4623_s8 + $0x18] sm:$0xff] }
  0x1a   : > { %711 = vperm.xlu0 %3693, %v523_v13   ;;  %v1512_v45 = vld [vmem:[%s4623_s8 + $0x58] sm:$0xff]  ;;  %v1947_v46 = vld [vmem:[%s4623_s8 + $0x88] sm:$0xff]  ;;  %v1948_v47 = vld [vmem:[%s4623_s8 + $0x90] sm:$0xff] }
  0x1b   : > { %v1949_v48 = vld [vmem:[%s4623_s8 + $0x98] sm:$0xff]  ;;  %v740_v49 = vld [vmem:[%s4621_s6] sm:$0xff] }
  0x1c   : > { %3509 = vmatprep.mubr.msk.f32.mxu1 %vm764_vm2, %v740_v49  ;;  %v742_v49 = vld [vmem:[%s4621_s6 + $0x10] sm:$0xff] }
  0x1d   : > { %751 = vperm.xlu1 %3694, %v527_v14  }
  0x1e   : > { %746 = vperm.xlu0 %3693, %v526_v15  }
  0x21   : > { %761 = vperm.xlu1 %3694, %v529_v16  }
  0x22   : > { %756 = vperm.xlu0 %3693, %v528_v17  }
  0x25   : > { %908 = vperm.xlu1 %3694, %v532_v18  }
  0x26   : > { %913 = vperm.xlu0 %3693, %v533_v19  }
  0x29   : > { %903 = vperm.xlu1 %3694, %v531_v20  }
  0x2a   : > { %937 = vperm.xlu0 %3693, %v537_v21  }
  0x2d   : > { %898 = vperm.xlu1 %3694, %v530_v22  }
  0x2e   : > { %932 = vperm.xlu0 %3693, %v536_v23  }
  0x31   : > { %922 = vperm.xlu1 %3694, %v534_v24  }
  0x32   : > { %927 = vperm.xlu0 %3693, %v535_v25  }
  0x35   : > { %1107 = vperm.xlu1 %3694, %v1077_v26  }
  0x36   : > { %1102 = vperm.xlu0 %3693, %v1076_v27  }
  0x39   : > { %1544 = vperm.xlu1 %3694, %v1514_v28  }
  0x3a   : > { %1539 = vperm.xlu0 %3693, %v1513_v29  }
  0x3d   : > { %1549 = vperm.xlu1 %3694, %v1515_v30  }
  0x3e   : > { %1112 = vperm.xlu0 %3693, %v1078_v31  }
  0x41   : > { %1554 = vperm.xlu1 %3694, %v1516_v32  }
  0x42   : > { %1117 = vperm.xlu0 %3693, %v1079_v33  }
  0x45   : > { %1981 = vperm.xlu1 %3694, %v1951_v34  }
  0x46   : > { %1976 = vperm.xlu0 %3693, %v1950_v35  }
  0x49   : > { %1991 = vperm.xlu1 %3694, %v1953_v36  }
  0x4a   : > { %1986 = vperm.xlu0 %3693, %v1952_v37  }
  0x4d   : > { %1082 = vperm.xlu1 %3694, %v1072_v38  }
  0x51   : > { %1087 = vperm.xlu1 %3694, %v1073_v39  }
  0x55   : > { %1519 = vperm.xlu1 %3694, %v1509_v40  }
  0x59   : > { %1524 = vperm.xlu1 %3694, %v1510_v41  }
  0x5d   : > { %1092 = vperm.xlu1 %3694, %v1074_v42  }
  0x61   : > { %1529 = vperm.xlu1 %3694, %v1511_v43  }
  0x65   : > { %1097 = vperm.xlu1 %3694, %v1075_v44  }
  0x69   : > { %1534 = vperm.xlu1 %3694, %v1512_v45  }
  0x6d   : > { %1961 = vperm.xlu1 %3694, %v1947_v46  }
  0x71   : > { %1966 = vperm.xlu1 %3694, %v1948_v47  }
  0x75   : > { %1971 = vperm.xlu1 %3694, %v1949_v48   ;;  %v741_v48 = vld [vmem:[%s4621_s6 + $0x8] sm:$0xff] }
  0x88   : > { %v722_v20 = vpop.permute.xlu1 %721 }
  0x89   : > { %v698_v19 = vpop.permute.xlu0 %697 }
  0x8c   : > { %v688_v22 = vpop.permute.xlu1 %687 }
  0x8d   : > { %v693_v21 = vpop.permute.xlu0 %692 }
  0x90   : > { %v683_v25 = vpop.permute.xlu1 %682 }
  0x91   : > { %v717_v23 = vpop.permute.xlu0 %716 }
  0x94   : > { %v707_v38 = vpop.permute.xlu1 %706 }
  0x95   : > { %v712_v35 = vpop.permute.xlu0 %711 }
  0xd3   : > { %v3497_v50 = vpop.f32.mrf.mxu1 }
  0xd5   : > { %v626_v51 = vpop.f32.mrf.mxu1 }
  0xd6   : > { %v645_v53 = vadd.f32 %v3497_v50, %v626_v51 }
  0xd7   : > { %v3500_v52 = vpop.f32.mrf.mxu1 }
  0xd9   : > { %v636_v54 = vpop.f32.mrf.mxu1 }
  0xda   : > { %v646_v55 = vadd.f32 %v645_v53, %v636_v54  ;;  %v4629_v53 = vmov 0.0  }
  0xdb   : > { %3515 = vmatprep.subr.mxu0 %v4629_v53  ;;  %3523 = vmatprep.mubr.msk.f32.mxu0 %vm3716_vm7, %v4629_v53 }
  0xdc   : > { %v647_v56 = vadd.f32 %v3500_v52, %v646_v55  ;;  %v3373_v55 = vld [vmem:[%s507_s14] sm:$0xff]  }
  0xde   : > { %v648_v57 = vrot.slane %v647_v56, 4 }
  0xe0   : > { %v649_v58 = vadd.f32 %v648_v57, %v647_v56  ;;  %v3375_v56 = vunpack.c.h.bf16 %v3373_v55  ;;  %v3374_v57 = vunpack.c.l.bf16 %v3373_v55 }
  0xe2   : > { %v650_v59 = vrot.slane %v649_v58, 2 }
  0xe4   : > { %v651_v60 = vadd.f32 %v650_v59, %v649_v58  ;;  %v3983_v58 = vld [vmem:[%s3978_s18] sm:$0xff]  ;;  %v3990_v59 = vld [vmem:[%s3978_s18 + $0x8] sm:$0xff] }
  0xe6   : > { %v652_v61 = vrot.slane %v651_v60, 1 }
  0xe8   : > { %v653_v62 = vadd.f32 %v652_v61, %v651_v60  ;;  %v3997_v60 = vld [vmem:[%s3978_s18 + $0x10] sm:$0xff]  ;;  %v1064_v61 = vld [vmem:[%s4622_s7] sm:$0xff] }
  0xea   : > { %v655_v63 = vmul.f32 0.03125, %v653_v62  ;;  %v1501_v62 = vld [vmem:[%s4622_s7 + $0x40] sm:$0xff] }
  0xec   : > { %v656_v0 = vsub.f32 %v626_v51, %v655_v63  ;;  %v657_v1 = vsub.f32 %v3497_v50, %v655_v63  ;;  %v658_v2 = vsub.f32 %v636_v54, %v655_v63  ;;  %v659_v3 = vsub.f32 %v3500_v52, %v655_v63  ;;  %v743_v50 = vld [vmem:[%s4621_s6 + $0x18] sm:$0xff]  ;;  %v3388_v51 = vld [vmem:[%s507_s14 + $0x8] sm:$0xff]   ;;  %v747_v63 = vpop.permute.xlu0 %746 }
  0xed   : > { %v3379_v52 = vunpack.c.h.bf16 %v3388_v51  ;;  %v3378_v54 = vunpack.c.l.bf16 %v3388_v51 }
  0xee   : > { %v660_v4 = vmul.f32 %v656_v0, %v656_v0  ;;  %v661_v5 = vmul.f32 %v657_v1, %v657_v1  ;;  %v662_v6 = vmul.f32 %v658_v2, %v658_v2  ;;  %v663_v8 = vmul.f32 %v659_v3, %v659_v3 }
  0xef   : > { %3516 = vmatpush3.msra.mxu0 %v3379_v52 }
  0xf0   : > { %v664_v7 = vadd.f32 %v661_v5, %v660_v4  ;;  %3517 = vmatprep.subr.mxu0 %v4629_v53 }
  0xf1   : > { %3518 = vmatpush3.msra.mxu0 %v3378_v54 }
  0xf2   : > { %v665_v9 = vadd.f32 %v664_v7, %v662_v6  ;;  %3519 = vmatprep.subr.mxu0 %v4629_v53  ;;  %v757_v6 = vpop.permute.xlu0 %756 }
  0xf3   : > { %3520 = vmatpush3.msra.mxu0 %v3375_v56 }
  0xf4   : > { %v666_v10 = vadd.f32 %v665_v9, %v663_v8  ;;  %3521 = vmatprep.subr.mxu0 %v4629_v53 }
  0xf5   : > { %3522 = vmatpush3.msra.mxu0 %v3374_v57 }
  0xf6   : > { %v667_v11 = vrot.slane %v666_v10, 4  ;;  %3524 = vmatmul.mubr.msk.f32.vlgmr.msra.gmra.mxu0 %vm764_vm2, %v3983_v58 }
  0xf7   : > { %3526 = vmatprep.mubr.msk.f32.mxu0 %vm3716_vm7, %v4629_v53 }
  0xf8   : > { %v668_v12 = vadd.f32 %v667_v11, %v666_v10 }
  0xfa   : > { %v669_v13 = vrot.slane %v668_v12, 2  ;;  %3527 = vmatmul.mubr.msk.f32.gmra.mxu0 %vm764_vm2, %v3990_v59 }
  0xfb   : > { %3529 = vmatprep.mubr.msk.f32.mxu0 %vm3716_vm7, %v4629_v53 }
  0xfc   : > { %v670_v14 = vadd.f32 %v669_v13, %v668_v12 }
  0xfe   : > { %v671_v15 = vrot.slane %v670_v14, 1  ;;  %3530 = vmatmul.mubr.msk.f32.gmra.mxu0 %vm764_vm2, %v3997_v60 }
  0xff   : > { %3560 = vmatprep.mubr.msk.f32.mxu0 %vm764_vm2, %v1501_v62 }
 0x100   : > { %v672_v16 = vadd.f32 %v671_v15, %v670_v14 }
 0x102   : > { %v673_v17 = vmul.f32 0.03125, %v672_v16 }
 0x104   : > { %v674_v18 = vadd.f32 1e-05, %v673_v17 }
 0x106   : > { %3695 = vrsqrt.f32 %v674_v18 }
 0x113   : > { %v3696_v24 = vpop.eup %3695 }
 0x114   : > { %v678_v26 = vmul.f32 %v3696_v24, %v658_v2  ;;  %v677_v27 = vmul.f32 %v3696_v24, %v657_v1  ;;  %v679_v28 = vmul.f32 %v3696_v24, %v659_v3  ;;  %v676_v29 = vmul.f32 %v3696_v24, %v656_v0  ;;  %v752_v1 = vpop.permute.xlu1 %751 }
 0x116   : > { %v702_v30 = vmul.f32 %v693_v21, %v678_v26  ;;  %v701_v31 = vmul.f32 %v688_v22, %v677_v27  ;;  %v703_v32 = vmul.f32 %v698_v19, %v679_v28  ;;  %v700_v33 = vmul.f32 %v683_v25, %v676_v29 }
 0x118   : > { %v726_v34 = vadd.f32 %v717_v23, %v702_v30  ;;  %v727_v36 = vadd.f32 %v722_v20, %v703_v32  ;;  %v725_v37 = vadd.f32 %v712_v35, %v701_v31  ;;  %v724_v41 = vadd.f32 %v707_v38, %v700_v33  ;;  %v762_v10 = vpop.permute.xlu1 %761 }
 0x11a   : > { %vm731_vm3 = vcmp.gt.f32.partialorder %v727_v36, 0.0  ;;  %v734_v39 = vmul.f32 0.2, %v726_v34  ;;  %v735_v40 = vmul.f32 0.2, %v727_v36  ;;  %vm730_vm4 = vcmp.gt.f32.partialorder %v726_v34, 0.0 }
 0x11b   : > { %v733_v42 = vmul.f32 0.2, %v725_v37  ;;  %vm729_vm5 = vcmp.gt.f32.partialorder %v725_v37, 0.0  ;;  %v732_v45 = vmul.f32 0.2, %v724_v41  ;;  %vm728_vm6 = vcmp.gt.f32.partialorder %v724_v41, 0.0 }
 0x11c   : > { %v739_v43 = vsel %vm731_vm3, %v727_v36, %v735_v40  ;;  %v738_v44 = vsel %vm730_vm4, %v726_v34, %v734_v39  ;;  %v914_v40 = vpop.permute.xlu0 %913  ;;  %vm2392_vm3 = vcmask 1046534   ;;  %vm2394_vm4 = vcmask 1047559  }
 0x11d   : > { %3501 = vmatprep.subr.mxu1 %v739_v43  ;;  %v737_v46 = vsel %vm729_vm5, %v725_v37, %v733_v42  ;;  %v736_v47 = vsel %vm728_vm6, %v724_v41, %v732_v45  ;;  %v909_v41 = vpop.permute.xlu1 %908  ;;  %vm2600_vm5 = vcmask 97280   ;;  %vm2677_vm6 = vcmask 1041408  }
 0x11e   : > { %3502 = vmatpush3.msra.mxu1 %v739_v43 }
 0x11f   : > { %3503 = vmatprep.subr.mxu1 %v738_v44 }
 0x120   : > { %3504 = vmatpush3.msra.mxu1 %v738_v44  ;;  %v938_v42 = vpop.permute.xlu0 %937 }
 0x121   : > { %3505 = vmatprep.subr.mxu1 %v737_v46  ;;  %v904_v43 = vpop.permute.xlu1 %903 }
 0x122   : > { %3506 = vmatpush3.msra.mxu1 %v737_v46 }
 0x123   : > { %3507 = vmatprep.subr.mxu1 %v736_v47 }
 0x124   : > { %3508 = vmatpush3.msra.mxu1 %v736_v47  ;;  %v933_v44 = vpop.permute.xlu0 %932 }
 0x125   : > { %3510 = vmatmul.mubr.msk.f32.vlgmr.msra.gmra.mxu1 %vm764_vm2, %v741_v48  ;;  %v899_v46 = vpop.permute.xlu1 %898 }
 0x126   : > { %3512 = vmatprep.mubr.msk.f32.mxu1 %vm764_vm2, %v742_v49 }
 0x128   : > { %v928_v56 = vpop.permute.xlu0 %927 }
 0x129   : > { %3513 = vmatmul.mubr.msk.f32.gmra.mxu1 %vm764_vm2, %v743_v50 }
 0x12a   : > { %3540 = vmatprep.mubr.msk.f32.mxu1 %vm764_vm2, %v1064_v61 }
 0x1e5   : > { %v3511_v0 = vpop.f32.mrf.mxu1 }
 0x1e6   : > { %v849_v5 = vadd.f32 %v3511_v0, %v752_v1 }
 0x1e7   : > { %v843_v2 = vpop.f32.mrf.mxu1 }
 0x1e8   : > { %v844_v3 = vadd.f32 %v843_v2, %v747_v63  ;;  %v923_v63 = vpop.permute.xlu1 %922 }
 0x1e9   : > { %v3514_v4 = vpop.f32.mrf.mxu1 }
 0x1ea   : > { %v862_v8 = vadd.f32 %v849_v5, %v844_v3  ;;  %v859_v11 = vadd.f32 %v3514_v4, %v762_v10  ;;  %v1502_v10 = vld [vmem:[%s4622_s7 + $0x48] sm:$0xff] }
 0x1eb   : > { %v853_v7 = vpop.f32.mrf.mxu1 }
 0x1ec   : > { %v854_v9 = vadd.f32 %v853_v7, %v757_v6 }
 0x1ee   : > { %v863_v12 = vadd.f32 %v862_v8, %v854_v9 }
 0x1f0   : > { %v864_v13 = vadd.f32 %v863_v12, %v859_v11  ;;  %v1503_v12 = vld [vmem:[%s4622_s7 + $0x50] sm:$0xff] }
 0x1f2   : > { %v865_v14 = vrot.slane %v864_v13, 4 }
 0x1f4   : > { %v866_v15 = vadd.f32 %v865_v14, %v864_v13  ;;  %v1504_v13 = vld [vmem:[%s4622_s7 + $0x58] sm:$0xff] }
 0x1f5   : > { %v1067_v14 = vld [vmem:[%s4622_s7 + $0x18] sm:$0xff] }
 0x1f6   : > { %v867_v16 = vrot.slane %v866_v15, 2 }
 0x1f8   : > { %v868_v17 = vadd.f32 %v867_v16, %v866_v15  ;;  %v1068_v15 = vld [vmem:[%s4622_s7 + $0x20] sm:$0xff] }
 0x1f9   : > { %v1505_v16 = vld [vmem:[%s4622_s7 + $0x60] sm:$0xff] }
 0x1fa   : > { %v869_v18 = vrot.slane %v868_v17, 1 }
 0x1fc   : > { %v870_v19 = vadd.f32 %v869_v18, %v868_v17  ;;  %v1069_v17 = vld [vmem:[%s4622_s7 + $0x28] sm:$0xff] }
 0x1fd   : > { %v1506_v18 = vld [vmem:[%s4622_s7 + $0x68] sm:$0xff] }
 0x1fe   : > { %v871_v20 = vmul.f32 0.03125, %v870_v19  ;;  %v1070_v19 = vld [vmem:[%s4622_s7 + $0x30] sm:$0xff] }
 0x200   : > { %v872_v21 = vsub.f32 %v844_v3, %v871_v20  ;;  %v873_v22 = vsub.f32 %v849_v5, %v871_v20  ;;  %v874_v23 = vsub.f32 %v854_v9, %v871_v20  ;;  %v875_v24 = vsub.f32 %v859_v11, %v871_v20  ;;  %v1065_v9 = vld [vmem:[%s4622_s7 + $0x8] sm:$0xff]  ;;  %v1066_v11 = vld [vmem:[%s4622_s7 + $0x10] sm:$0xff] }
 0x201   : > { %v3389_v20 = vld [vmem:[%s4041_s29 + $0x8] sm:$0xff]  }
 0x202   : > { %v876_v25 = vmul.f32 %v872_v21, %v872_v21  ;;  %v877_v26 = vmul.f32 %v873_v22, %v873_v22  ;;  %v878_v27 = vmul.f32 %v874_v23, %v874_v23  ;;  %v879_v29 = vmul.f32 %v875_v24, %v875_v24 }
 0x204   : > { %v880_v28 = vadd.f32 %v877_v26, %v876_v25  ;;  %v2431_v25 = vld [vmem:[%s4624_s9] sm:$0xff] }
 0x205   : > { %v3381_v26 = vld [vmem:[%s4041_s29] sm:$0xff]  }
 0x206   : > { %v881_v30 = vadd.f32 %v880_v28, %v878_v27  ;;  %v2432_v27 = vld [vmem:[%s4624_s9 + $0x8] sm:$0xf]  ;;  %v4096_v28 = vunpack.c.l.bf16 %v3389_v20 }
 0x208   : > { %v882_v31 = vadd.f32 %v881_v30, %v879_v29  ;;  %4640 = vst [vmem:[#allocation3_spill] sm:$0xff] %v4096_v28  ;;  %v1940_v29 = vld [vmem:[%s4622_s7 + $0x90] sm:$0xff]  ;;  %v4103_v30 = vunpack.c.h.bf16 %v3381_v26 }
 0x20a   : > { %v883_v32 = vrot.slane %v882_v31, 4  ;;  %4641 = vst [vmem:[#allocation4_spill] sm:$0xff] %v4103_v30 }
 0x20c   : > { %v884_v33 = vadd.f32 %v883_v32, %v882_v31  ;;  %v4112_v31 = vunpack.c.l.bf16 %v3381_v26  ;;  %v1942_v32 = vld [vmem:[%s4622_s7 + $0xa0] sm:$0xff] }
 0x20e   : > { %v885_v34 = vrot.slane %v884_v33, 2  ;;  %4642 = vst [vmem:[#allocation5_spill] sm:$0xff] %v4112_v31 }
 0x210   : > { %v886_v35 = vadd.f32 %v885_v34, %v884_v33  ;;  %v1943_v33 = vld [vmem:[%s4622_s7 + $0xa8] sm:$0xff]  ;;  %v1944_v34 = vld [vmem:[%s4622_s7 + $0xb0] sm:$0xff] }
 0x212   : > { %v887_v36 = vrot.slane %v886_v35, 1 }
 0x214   : > { %v888_v37 = vadd.f32 %v887_v36, %v886_v35  ;;  %v1945_v35 = vld [vmem:[%s4622_s7 + $0xb8] sm:$0xff]  ;;  %v3304_v36 = vld [vmem:[%s4152_s23] ss:$0 sm:$0xff] }
 0x216   : > { %v889_v38 = vmul.f32 0.03125, %v888_v37  ;;  %v3307_v37 = vld [vmem:[%s4152_s23 + $0x3] ss:$0 sm:$0xff] }
 0x218   : > { %v890_v39 = vadd.f32 1e-05, %v889_v38  ;;  %v3310_v38 = vld [vmem:[%s4152_s23 + $0x6] ss:$0 sm:$0xff] }
 0x21a   : > { %3697 = vrsqrt.f32 %v890_v39  ;;  %v3321_v39 = vld [vmem:[%s4152_s23 + $0x9] ss:$0 sm:$0xff] }
 0x227   : > { %v3698_v45 = vpop.eup %3697 }
 0x228   : > { %v892_v47 = vmul.f32 %v3698_v45, %v872_v21  ;;  %v893_v48 = vmul.f32 %v3698_v45, %v873_v22  ;;  %v894_v49 = vmul.f32 %v3698_v45, %v874_v23  ;;  %v895_v50 = vmul.f32 %v3698_v45, %v875_v24  ;;  %v1071_v21 = vld [vmem:[%s4622_s7 + $0x38] sm:$0xff]  ;;  %v1938_v24 = vld [vmem:[%s4622_s7 + $0x80] sm:$0xff] }
 0x229   : > { %v1508_v22 = vld [vmem:[%s4622_s7 + $0x78] sm:$0xff]  ;;  %v4073_v23 = vunpack.c.h.bf16 %v3389_v20 }
 0x22a   : > { %v918_v51 = vmul.f32 %v909_v41, %v894_v49  ;;  %v919_v52 = vmul.f32 %v914_v40, %v895_v50  ;;  %v917_v54 = vmul.f32 %v904_v43, %v893_v48  ;;  %v916_v55 = vmul.f32 %v899_v46, %v892_v47  ;;  %v3324_v40 = vld [vmem:[%s4152_s23 + $0xc] ss:$0 sm:$0xff]  ;;  %v1050_v41 = vpop.f32.mrf.mxu0  ;;  %v3338_v43 = vld [vmem:[%s4152_s23 + $0x12] ss:$0 sm:$0xff]  ;;  %v3344_v45 = vld [vmem:[%s4152_s23 + $0x18] ss:$0 sm:$0xff] }
 0x22b   : > { %4639 = vst [vmem:[#allocation2_spill] sm:$0xff] %v4073_v23  ;;  %v3305_v46 = vld [vmem:[%s4152_s23 + $0x1] ss:$0 sm:$0xff]  ;;  %v3308_v47 = vld [vmem:[%s4152_s23 + $0x4] ss:$0 sm:$0xff]  ;;  %v1254_v48 = vmul.f32 %v3304_v36, %v1050_v41 }
 0x22c   : > { %v942_v57 = vadd.f32 %v933_v44, %v918_v51  ;;  %v943_v61 = vadd.f32 %v938_v42, %v919_v52  ;;  %v941_v62 = vadd.f32 %v928_v56, %v917_v54  ;;  %v940_v2 = vadd.f32 %v923_v63, %v916_v55  ;;  %v3327_v42 = vld [vmem:[%s4152_s23 + $0xf] ss:$0 sm:$0xff]  ;;  %v3341_v44 = vld [vmem:[%s4152_s23 + $0x15] ss:$0 sm:$0xff]  ;;  %v3525_v49 = vpop.f32.mrf.mxu0  ;;  %v3311_v50 = vld [vmem:[%s4152_s23 + $0x7] ss:$0 sm:$0xff] }
 0x22d   : > { %v3322_v51 = vld [vmem:[%s4152_s23 + $0xa] ss:$0 sm:$0xff]  ;;  %v3325_v52 = vld [vmem:[%s4152_s23 + $0xd] ss:$0 sm:$0xff]  ;;  %v1338_v54 = vmul.f32 %v3307_v37, %v1050_v41  ;;  %v1422_v55 = vmul.f32 %v3310_v38, %v1050_v41  ;;  %v1691_v56 = vmul.f32 %v3321_v39, %v1050_v41  ;;  %v3342_v63 = vld [vmem:[%s4152_s23 + $0x16] ss:$0 sm:$0xff] }
 0x22e   : > { %vm947_vm8 = vcmp.gt.f32.partialorder %v943_v61, 0.0  ;;  %v951_v0 = vmul.f32 0.2, %v943_v61  ;;  %v950_v1 = vmul.f32 0.2, %v942_v57  ;;  %vm946_vm9 = vcmp.gt.f32.partialorder %v942_v57, 0.0 }
 0x22f   : > { %v949_v4 = vmul.f32 0.2, %v941_v62  ;;  %vm945_vm10 = vcmp.gt.f32.partialorder %v941_v62, 0.0  ;;  %v948_v6 = vmul.f32 0.2, %v940_v2  ;;  %vm944_vm11 = vcmp.gt.f32.partialorder %v940_v2, 0.0 }
 0x230   : > { %v955_v3 = vsel %vm947_vm8, %v943_v61, %v951_v0  ;;  %v954_v5 = vsel %vm946_vm9, %v942_v57, %v950_v1  ;;  %v1775_v57 = vmul.f32 %v3324_v40, %v1050_v41  ;;  %v3328_v61 = vld [vmem:[%s4152_s23 + $0x10] ss:$0 sm:$0xff]  ;;  %v1859_v0 = vmul.f32 %v3327_v42, %v1050_v41  ;;  %v3343_v40 = vld [vmem:[%s4152_s23 + $0x17] ss:$0 sm:$0xff] }
 0x231   : > { %3532 = vmatprep.subr.mxu1 %v955_v3  ;;  %3552 = vmatprep.subr.mxu0 %v955_v3  ;;  %v953_v7 = vsel %vm945_vm10, %v941_v62, %v949_v4  ;;  %v952_v8 = vsel %vm944_vm11, %v940_v2, %v948_v6  ;;  %v3339_v62 = vld [vmem:[%s4152_s23 + $0x13] ss:$0 sm:$0xff]  ;;  %v2128_v1 = vmul.f32 %v3338_v43, %v1050_v41  ;;  %v1055_v4 = vpop.f32.mrf.mxu0  ;;  %vm2837_vm8 = vcmask 1042432  }
 0x232   : > { %3533 = vmatpush3.msra.mxu1 %v955_v3  ;;  %3553 = vmatpush3.msra.mxu0 %v955_v3  ;;  %v2212_v2 = vmul.f32 %v3341_v44, %v1050_v41  ;;  %v1344_v6 = vmul.f32 %v3308_v47, %v1055_v4 }
 0x233   : > { %3534 = vmatprep.subr.mxu1 %v954_v5  ;;  %3554 = vmatprep.subr.mxu0 %v954_v5 }
 0x234   : > { %3535 = vmatpush3.msra.mxu1 %v954_v5  ;;  %3555 = vmatpush3.msra.mxu0 %v954_v5  ;;  %v1345_v20 = vadd.f32 %v1344_v6, %v1338_v54 }
 0x235   : > { %3536 = vmatprep.subr.mxu1 %v953_v7  ;;  %3556 = vmatprep.subr.mxu0 %v953_v7 }
 0x236   : > { %3537 = vmatpush3.msra.mxu1 %v953_v7  ;;  %3557 = vmatpush3.msra.mxu0 %v953_v7 }
 0x237   : > { %3538 = vmatprep.subr.mxu1 %v952_v8  ;;  %3558 = vmatprep.subr.mxu0 %v952_v8 }
 0x238   : > { %3539 = vmatpush3.msra.mxu1 %v952_v8  ;;  %3559 = vmatpush3.msra.mxu0 %v952_v8 }
 0x239   : > { %3541 = vmatmul.mubr.msk.f32.vlgmr.msra.gmra.mxu1 %vm764_vm2, %v1065_v9  ;;  %3561 = vmatmul.mubr.msk.f32.vlgmr.msra.gmra.mxu0 %vm764_vm2, %v1502_v10  ;;  %v3345_v9 = vld [vmem:[%s4152_s23 + $0x19] ss:$0 sm:$0xff]  ;;  %v3306_v10 = vld [vmem:[%s4152_s23 + $0x2] ss:$0 sm:$0xff] }
 0x23a   : > { %3572 = vmatprep.subr.mxu1 %v955_v3  ;;  %3543 = vmatprep.mubr.msk.f32.mxu1 %vm764_vm2, %v1066_v11  ;;  %v1781_v11 = vmul.f32 %v3325_v52, %v1055_v4 }
 0x23b   : > { %3573 = vmatpush3.msra.mxu1 %v955_v3  ;;  %3563 = vmatprep.mubr.msk.f32.mxu0 %vm764_vm2, %v1503_v12  ;;  %v2296_v3 = vmul.f32 %v3344_v45, %v1050_v41  ;;  %v1865_v12 = vmul.f32 %v3328_v61, %v1055_v4  ;;  %v3346_v41 = vld [vmem:[%s4152_s23 + $0x1a] ss:$0 sm:$0xff] }
 0x23c   : > { %3574 = vmatprep.subr.mxu1 %v954_v5  ;;  %3592 = vmatprep.subr.mxu0 %v3997_v60  ;;  %v1782_v26 = vadd.f32 %v1781_v11, %v1775_v57 }
 0x23d   : > { %3575 = vmatpush3.msra.mxu1 %v954_v5  ;;  %3564 = vmatmul.mubr.msk.f32.gmra.mxu0 %vm764_vm2, %v1504_v13  ;;  %v1260_v5 = vmul.f32 %v3305_v46, %v1055_v4  ;;  %v2134_v13 = vmul.f32 %v3339_v62, %v1055_v4 }
 0x23e   : > { %3544 = vmatmul.mubr.msk.f32.gmra.mxu1 %vm764_vm2, %v1067_v14  ;;  %3576 = vmatprep.subr.mxu1 %v953_v7  ;;  %v2218_v14 = vmul.f32 %v3342_v63, %v1055_v4 }
 0x23f   : > { %3577 = vmatpush3.msra.mxu1 %v953_v7  ;;  %3593 = vmatpush3.msra.mxu0 %v3997_v60  ;;  %v1507_v60 = vld [vmem:[%s4622_s7 + $0x70] sm:$0xff]  ;;  %v1428_v7 = vmul.f32 %v3311_v50, %v1055_v4 }
 0x240   : > { %3578 = vmatprep.subr.mxu1 %v952_v8  ;;  %3546 = vmatprep.mubr.msk.f32.mxu1 %vm764_vm2, %v1068_v15  ;;  %v3528_v15 = vpop.f32.mrf.mxu0 }
 0x241   : > { %3566 = vmatprep.mubr.msk.f32.mxu0 %vm764_vm2, %v1505_v16  ;;  %3579 = vmatpush3.msra.mxu1 %v952_v8  ;;  %v1697_v8 = vmul.f32 %v3322_v51, %v1055_v4  ;;  %v3309_v16 = vld [vmem:[%s4152_s23 + $0x5] ss:$0 sm:$0xff] }
 0x242   : > { %3547 = vmatmul.mubr.msk.f32.gmra.mxu1 %vm764_vm2, %v1069_v17  ;;  %3567 = vmatmul.mubr.msk.f32.gmra.mxu0 %vm764_vm2, %v1506_v18  ;;  %v3312_v17 = vld [vmem:[%s4152_s23 + $0x8] ss:$0 sm:$0xff]  ;;  %v3323_v18 = vld [vmem:[%s4152_s23 + $0xb] ss:$0 sm:$0xff] }
 0x243   : > { %3594 = vmatprep.subr.mxu0 %v3990_v59  ;;  %3549 = vmatprep.mubr.msk.f32.mxu1 %vm764_vm2, %v1070_v19  ;;  %v1261_v19 = vadd.f32 %v1260_v5, %v1254_v48 }
 0x244   : > { %3569 = vmatprep.mubr.msk.f32.mxu0 %vm764_vm2, %v1507_v60  ;;  %3595 = vmatpush3.msra.mxu0 %v3990_v59  ;;  %v1939_v59 = vld [vmem:[%s4622_s7 + $0x88] sm:$0xff]  ;;  %v1429_v60 = vadd.f32 %v1428_v7, %v1422_v55 }
 0x245   : > { %3596 = vmatprep.subr.mxu0 %v3983_v58  ;;  %3630 = vmatprep.subr.mxu1 %v4629_v53 }
 0x246   : > { %3550 = vmatmul.mubr.msk.f32.gmra.mxu1 %vm764_vm2, %v1071_v21  ;;  %3570 = vmatmul.mubr.msk.f32.gmra.mxu0 %vm764_vm2, %v1508_v22  ;;  %v1698_v21 = vadd.f32 %v1697_v8, %v1691_v56  ;;  %v3326_v22 = vld [vmem:[%s4152_s23 + $0xe] ss:$0 sm:$0xff]  ;;  %v4199_v56 = vpop.permute.xlu1 %1107 }
 0x247   : > { %3580 = vmatprep.mubr.msk.f32.mxu1 %vm764_vm2, %v1938_v24  ;;  %3597 = vmatpush3.msra.mxu0 %v3983_v58  ;;  %v1941_v58 = vld [vmem:[%s4622_s7 + $0x98] sm:$0xff]  ;;  %v3329_v24 = vld [vmem:[%s4152_s23 + $0x11] ss:$0 sm:$0xff] }
 0x248   : > { %3598 = vmatprep.mubr.msk.f32.mxu0 %vm2433_vm12, %v2431_v25  ;;  %3601 = vmatprep.subr.mxu0 %v4073_v23  ;;  %v3340_v25 = vld [vmem:[%s4152_s23 + $0x14] ss:$0 sm:$0xff] }
 0x24a   : > { %3581 = vmatmul.mubr.msk.f32.vlgmr.msra.gmra.mxu1 %vm764_vm2, %v1939_v59  ;;  %3599 = vmatmul.mubr.msk.f32.vlgmr.msra.gmra.mxu0 %vm2433_vm12, %v2432_v27  ;;  %v1866_v59 = vadd.f32 %v1865_v12, %v1859_v0  ;;  %v2135_v27 = vadd.f32 %v2134_v13, %v2128_v1  ;;  %v4201_v57 = vpop.permute.xlu1 %1544 }
 0x24b   : > { %3583 = vmatprep.mubr.msk.f32.mxu1 %vm764_vm2, %v1940_v29  ;;  %3602 = vmatpush3.msra.mxu0 %v4073_v23  ;;  %v2219_v29 = vadd.f32 %v2218_v14, %v2212_v2 }
 0x24c   : > { %3603 = vmatprep.subr.mxu0 %v4096_v28  ;;  %3631 = vmatpush3.msra.mxu1 %v4073_v23 }
 0x24d   : > { %3604 = vmatpush3.msra.mxu0 %v4096_v28  ;;  %3632 = vmatprep.subr.mxu1 %v4629_v53 }
 0x24e   : > { %3584 = vmatmul.mubr.msk.f32.gmra.mxu1 %vm764_vm2, %v1941_v58  ;;  %3605 = vmatprep.subr.mxu0 %v4103_v30  ;;  %v1060_v58 = vpop.f32.mrf.mxu0  ;;  %v4203_v61 = vpop.permute.xlu1 %1549 }
 0x24f   : > { %3586 = vmatprep.mubr.msk.f32.mxu1 %vm764_vm2, %v1942_v32  ;;  %3606 = vmatpush3.msra.mxu0 %v4103_v30  ;;  %v2302_v32 = vmul.f32 %v3345_v9, %v1055_v4  ;;  %v1704_v36 = vmul.f32 %v3323_v18, %v1060_v58  ;;  %v1788_v37 = vmul.f32 %v3326_v22, %v1060_v58 }
 0x250   : > { %3607 = vmatprep.subr.mxu0 %v4112_v31  ;;  %3633 = vmatpush3.msra.mxu1 %v4096_v28  ;;  %v1872_v38 = vmul.f32 %v3329_v24, %v1060_v58  ;;  %v2141_v39 = vmul.f32 %v3340_v25, %v1060_v58  ;;  %v3531_v42 = vpop.f32.mrf.mxu0  ;;  %v2225_v51 = vmul.f32 %v3343_v40, %v1060_v58 }
 0x251   : > { %3608 = vmatpush3.msra.mxu0 %v4112_v31  ;;  %3634 = vmatprep.subr.mxu1 %v4629_v53  ;;  %v2303_v43 = vadd.f32 %v2302_v32, %v2296_v3  ;;  %v4187_v47 = vadd.f32 %v1704_v36, %v1698_v21  ;;  %v4189_v48 = vadd.f32 %v1788_v37, %v1782_v26 }
 0x252   : > { %3587 = vmatmul.mubr.msk.f32.gmra.mxu1 %vm764_vm2, %v1943_v33  ;;  %3612 = vmatprep.subr.mxu0 %v4629_v53  ;;  %v1267_v33 = vmul.f32 %v3306_v10, %v1060_v58  ;;  %v4191_v49 = vadd.f32 %v1872_v38, %v1866_v59  ;;  %v4193_v50 = vadd.f32 %v2141_v39, %v2135_v27  ;;  %v4205_v62 = vpop.permute.xlu1 %1554 }
 0x253   : > { %3589 = vmatprep.mubr.msk.f32.mxu1 %vm764_vm2, %v1944_v34  ;;  %3635 = vmatpush3.msra.mxu1 %v4103_v30  ;;  %v1351_v34 = vmul.f32 %v3309_v16, %v1060_v58  ;;  %v2309_v52 = vmul.f32 %v3346_v41, %v1060_v58  ;;  %v4195_v54 = vadd.f32 %v2225_v51, %v2219_v29 }
 0x254   : > { %3636 = vmatprep.subr.mxu1 %v4629_v53  ;;  %v4181_v44 = vadd.f32 %v1267_v33, %v1261_v19 }
 0x255   : > { %3637 = vmatpush3.msra.mxu1 %v4112_v31  ;;  %v4183_v45 = vadd.f32 %v1351_v34, %v1345_v20  ;;  %v4197_v55 = vadd.f32 %v2309_v52, %v2303_v43 }
 0x256   : > { %3590 = vmatmul.mubr.msk.f32.gmra.mxu1 %vm764_vm2, %v1945_v35  ;;  %3641 = vmatprep.subr.mxu1 %v4073_v23  ;;  %v1435_v35 = vmul.f32 %v3312_v17, %v1060_v58  ;;  %v4207_v63 = vpop.permute.xlu1 %1981 }
 0x257   : > { %3638 = vmatprep.mubr.msk.f32.mxu1 %vm3716_vm7, %v4629_v53 }
 0x258   : > { %v4185_v46 = vadd.f32 %v1435_v35, %v1429_v60 }
 0x25a   : > { %v4209_v0 = vpop.permute.xlu1 %1991 }
 0x25e   : > { %v1083_v1 = vpop.permute.xlu1 %1082 }
 0x262   : > { %v1088_v2 = vpop.permute.xlu1 %1087 }
 0x266   : > { %v1520_v3 = vpop.permute.xlu1 %1519 }
 0x26a   : > { %v1525_v4 = vpop.permute.xlu1 %1524 }
 0x26e   : > { %v4211_v5 = vpop.permute.xlu1 %1092 }
 0x272   : > { %v4223_v25 = vpop.permute.xlu1 %1529 }
 0x2f9   : > { %v3542_v6 = vpop.f32.mrf.mxu1  ;;  %v3562_v7 = vpop.f32.mrf.mxu0 }
 0x2fa   : > { %v1216_v8 = vadd.f32 %v3542_v6, %v1088_v2  ;;  %v1653_v9 = vadd.f32 %v3562_v7, %v1525_v4 }
 0x2fb   : > { %v1210_v10 = vpop.f32.mrf.mxu1  ;;  %v1647_v11 = vpop.f32.mrf.mxu0 }
 0x2fc   : > { %v1270_v12 = vmul.f32 %v4181_v44, %v1216_v8  ;;  %v1354_v13 = vmul.f32 %v4183_v45, %v1216_v8  ;;  %v1438_v14 = vmul.f32 %v4185_v46, %v1216_v8  ;;  %v1707_v15 = vmul.f32 %v4187_v47, %v1653_v9 }
 0x2fd   : > { %v1791_v16 = vmul.f32 %v4189_v48, %v1653_v9  ;;  %v1875_v17 = vmul.f32 %v4191_v49, %v1653_v9  ;;  %v1211_v18 = vadd.f32 %v1210_v10, %v1083_v1  ;;  %v4219_v19 = vadd.f32 %v1647_v11, %v1520_v3  ;;  %v4221_v20 = vpop.f32.mrf.mxu0  ;;  %v1098_v10 = vpop.permute.xlu1 %1097 }
 0x2fe   : > { %v1279_v60 = vrot.slane %v1270_v12, 4  ;;  %v1363_v21 = vrot.slane %v1354_v13, 4  ;;  %v1447_v22 = vrot.slane %v1438_v14, 4  ;;  %v1716_v24 = vrot.slane %v1707_v15, 4 }
 0x2ff   : > { %v1800_v26 = vrot.slane %v1791_v16, 4  ;;  %v1884_v59 = vrot.slane %v1875_v17, 4  ;;  %v1269_v27 = vmul.f32 %v4181_v44, %v1211_v18  ;;  %v1353_v29 = vmul.f32 %v4183_v45, %v1211_v18  ;;  %v4227_v58 = vpop.f32.mrf.mxu0 }
 0x300   : > { %v1280_v32 = vadd.f32 %v1279_v60, %v1270_v12  ;;  %v1364_v33 = vadd.f32 %v1363_v21, %v1354_v13  ;;  %v1448_v34 = vadd.f32 %v1447_v22, %v1438_v14  ;;  %v1717_v35 = vadd.f32 %v1716_v24, %v1707_v15  ;;  %v3545_v21 = vpop.f32.mrf.mxu1 }
 0x301   : > { %v1801_v36 = vadd.f32 %v1800_v26, %v1791_v16  ;;  %v1885_v37 = vadd.f32 %v1884_v59, %v1875_v17  ;;  %v1273_v38 = vrot.slane %v1269_v27, 4  ;;  %v1357_v39 = vrot.slane %v1353_v29, 4 }
 0x302   : > { %v1281_v40 = vrot.slane %v1280_v32, 2  ;;  %v1365_v41 = vrot.slane %v1364_v33, 2  ;;  %v1449_v42 = vrot.slane %v1448_v34, 2  ;;  %v1718_v43 = vrot.slane %v1717_v35, 2  ;;  %v4229_v51 = vpop.f32.mrf.mxu0 }
 0x303   : > { %v1802_v52 = vrot.slane %v1801_v36, 2  ;;  %v1886_v1 = vrot.slane %v1885_v37, 2  ;;  %v1274_v2 = vadd.f32 %v1273_v38, %v1269_v27  ;;  %v1358_v3 = vadd.f32 %v1357_v39, %v1353_v29 }
 0x304   : > { %v1282_v4 = vadd.f32 %v1281_v40, %v1280_v32  ;;  %v1366_v6 = vadd.f32 %v1365_v41, %v1364_v33  ;;  %v1450_v7 = vadd.f32 %v1449_v42, %v1448_v34  ;;  %v1719_v8 = vadd.f32 %v1718_v43, %v1717_v35  ;;  %v4231_v9 = vpop.f32.mrf.mxu0 }
 0x305   : > { %v1803_v11 = vadd.f32 %v1802_v52, %v1801_v36  ;;  %v1887_v12 = vadd.f32 %v1886_v1, %v1885_v37  ;;  %v1275_v13 = vrot.slane %v1274_v2, 2  ;;  %v1359_v14 = vrot.slane %v1358_v3, 2  ;;  %v1220_v52 = vpop.f32.mrf.mxu1 }
 0x306   : > { %v1283_v15 = vrot.slane %v1282_v4, 1  ;;  %v1367_v16 = vrot.slane %v1366_v6, 1  ;;  %v1451_v17 = vrot.slane %v1450_v7, 1  ;;  %v1720_v60 = vrot.slane %v1719_v8, 1  ;;  %v4233_v22 = vpop.f32.mrf.mxu0 }
 0x307   : > { %v1804_v24 = vrot.slane %v1803_v11, 1  ;;  %v1888_v26 = vrot.slane %v1887_v12, 1  ;;  %v1276_v59 = vadd.f32 %v1275_v13, %v1274_v2  ;;  %v1360_v27 = vadd.f32 %v1359_v14, %v1358_v3 }
 0x308   : > { %v1284_v29 = vadd.f32 %v1283_v15, %v1282_v4  ;;  %v1368_v32 = vadd.f32 %v1367_v16, %v1366_v6  ;;  %v1452_v33 = vadd.f32 %v1451_v17, %v1450_v7  ;;  %v1721_v34 = vadd.f32 %v1720_v60, %v1719_v8  ;;  %v4235_v35 = vpop.f32.mrf.mxu0  ;;  %v1535_v7 = vpop.permute.xlu1 %1534 }
 0x309   : > { %v1805_v36 = vadd.f32 %v1804_v24, %v1803_v11  ;;  %v1889_v37 = vadd.f32 %v1888_v26, %v1887_v12  ;;  %v1277_v38 = vrot.slane %v1276_v59, 1  ;;  %v1361_v39 = vrot.slane %v1360_v27, 1 }
 0x30a   : > { %v4237_v40 = vadd.f32 %v1721_v34, %v1284_v29  ;;  %v1437_v41 = vmul.f32 %v4185_v46, %v1211_v18  ;;  %v1706_v42 = vmul.f32 %v4187_v47, %v4219_v19  ;;  %v1790_v43 = vmul.f32 %v4189_v48, %v4219_v19  ;;  %v3600_v1 = vpop.f32.mrf.mxu0 }
 0x30b   : > { %v4244_v2 = vadd.f32 %v1805_v36, %v1368_v32  ;;  %v4246_v3 = vadd.f32 %v1889_v37, %v1452_v33  ;;  %v1278_v4 = vadd.f32 %v1277_v38, %v1276_v59  ;;  %v1362_v6 = vadd.f32 %v1361_v39, %v1360_v27 }
 0x30c   : > { %v1441_v8 = vrot.slane %v1437_v41, 4  ;;  %v1710_v11 = vrot.slane %v1706_v42, 4  ;;  %v1794_v12 = vrot.slane %v1790_v43, 4  ;;  %v1874_v18 = vmul.f32 %v4191_v49, %v4219_v19  ;;  %v2506_v13 = vpop.f32.mrf.mxu0 }
 0x30d   : > { %v1226_v14 = vadd.f32 %v3545_v21, %v1098_v10  ;;  %v1663_v15 = vadd.f32 %v4221_v20, %v1535_v7  ;;  %v4252_v16 = vadd.f32 %v1220_v52, %v4211_v5  ;;  %v4256_v17 = vadd.f32 %v4227_v58, %v4223_v25  ;;  %3609 = vmatprep.mubr.msk.f32.mxu0 %vm764_vm2, %v2506_v13 }
 0x30e   : > { %v1442_v60 = vadd.f32 %v1441_v8, %v1437_v41  ;;  %v1711_v24 = vadd.f32 %v1710_v11, %v1706_v42  ;;  %v1795_v26 = vadd.f32 %v1794_v12, %v1790_v43  ;;  %v1878_v59 = vrot.slane %v1874_v18, 4  ;;  %3610 = vmatmul.mubr.msk.f32.vlgmr.msra.gmra.mxu0 %vm764_vm2, %v3600_v1 }
 0x30f   : > { %v1272_v19 = vmul.f32 %v4181_v44, %v1226_v14  ;;  %v1356_v10 = vmul.f32 %v4183_v45, %v1226_v14  ;;  %v1440_v20 = vmul.f32 %v4185_v46, %v1226_v14  ;;  %v1709_v5 = vmul.f32 %v4187_v47, %v1663_v15  ;;  %3616 = vmatprep.mubr.msk.f32.mxu0 %vm3716_vm7, %v4629_v53 }
 0x310   : > { %v1443_v25 = vrot.slane %v1442_v60, 2  ;;  %v1712_v58 = vrot.slane %v1711_v24, 2  ;;  %v1796_v21 = vrot.slane %v1795_v26, 2  ;;  %v1879_v27 = vadd.f32 %v1878_v59, %v1874_v18 }
 0x311   : > { %v1291_v29 = vrot.slane %v1272_v19, 4  ;;  %v1375_v32 = vrot.slane %v1356_v10, 4  ;;  %v1459_v33 = vrot.slane %v1440_v20, 4  ;;  %v1728_v34 = vrot.slane %v1709_v5, 4 }
 0x312   : > { %v1444_v36 = vadd.f32 %v1443_v25, %v1442_v60  ;;  %v1713_v37 = vadd.f32 %v1712_v58, %v1711_v24  ;;  %v1797_v38 = vadd.f32 %v1796_v21, %v1795_v26  ;;  %v1880_v39 = vrot.slane %v1879_v27, 2 }
 0x313   : > { %v1292_v41 = vadd.f32 %v1291_v29, %v1272_v19  ;;  %v1376_v42 = vadd.f32 %v1375_v32, %v1356_v10  ;;  %v1460_v43 = vadd.f32 %v1459_v33, %v1440_v20  ;;  %v1729_v52 = vadd.f32 %v1728_v34, %v1709_v5 }
 0x314   : > { %v1445_v1 = vrot.slane %v1444_v36, 1  ;;  %v1714_v7 = vrot.slane %v1713_v37, 1  ;;  %v1798_v8 = vrot.slane %v1797_v38, 1  ;;  %v1881_v11 = vadd.f32 %v1880_v39, %v1879_v27 }
 0x315   : > { %v1293_v12 = vrot.slane %v1292_v41, 2  ;;  %v1377_v13 = vrot.slane %v1376_v42, 2  ;;  %v1461_v14 = vrot.slane %v1460_v43, 2  ;;  %v1730_v18 = vrot.slane %v1729_v52, 2 }
 0x316   : > { %v1446_v59 = vadd.f32 %v1445_v1, %v1444_v36  ;;  %v1715_v53 = vadd.f32 %v1714_v7, %v1713_v37  ;;  %v1799_v31 = vadd.f32 %v1798_v8, %v1797_v38  ;;  %v1882_v30 = vrot.slane %v1881_v11, 1 }
 0x317   : > { %v1294_v60 = vadd.f32 %v1293_v12, %v1292_v41  ;;  %v1378_v24 = vadd.f32 %v1377_v13, %v1376_v42  ;;  %v1462_v26 = vadd.f32 %v1461_v14, %v1460_v43  ;;  %v1731_v25 = vadd.f32 %v1730_v18, %v1729_v52 }
 0x318   : > { %v4266_v19 = vadd.f32 %v1715_v53, %v1278_v4  ;;  %v4268_v10 = vadd.f32 %v1799_v31, %v1362_v6  ;;  %v1883_v20 = vadd.f32 %v1882_v30, %v1881_v11  ;;  %v1793_v5 = vmul.f32 %v4189_v48, %v1663_v15 }
 0x319   : > { %v1295_v58 = vrot.slane %v1294_v60, 1  ;;  %v1379_v21 = vrot.slane %v1378_v24, 1  ;;  %v1463_v27 = vrot.slane %v1462_v26, 1  ;;  %v1732_v29 = vrot.slane %v1731_v25, 1 }
 0x31a   : > { %4643 = vst [vmem:[#allocation6_spill] sm:$0xff] %v4266_v19  ;;  %4644 = vst [vmem:[#allocation7_spill] sm:$0xff] %v4268_v10  ;;  %v4271_v32 = vadd.f32 %v1883_v20, %v1446_v59  ;;  %v1812_v33 = vrot.slane %v1793_v5, 4  ;;  %v1877_v34 = vmul.f32 %v4191_v49, %v1663_v15  ;;  %v1271_v36 = vmul.f32 %v4181_v44, %v4252_v16 }
 0x31b   : > { %v1296_v37 = vadd.f32 %v1295_v58, %v1294_v60  ;;  %v1380_v53 = vadd.f32 %v1379_v21, %v1378_v24  ;;  %v1464_v4 = vadd.f32 %v1463_v27, %v1462_v26  ;;  %v1733_v31 = vadd.f32 %v1732_v29, %v1731_v25 }
 0x31c   : > { %4645 = vst [vmem:[#allocation8_spill] sm:$0xff] %v4271_v32  ;;  %v1813_v6 = vadd.f32 %v1812_v33, %v1793_v5  ;;  %v1896_v30 = vrot.slane %v1877_v34, 4  ;;  %v1285_v38 = vrot.slane %v1271_v36, 4  ;;  %v1355_v39 = vmul.f32 %v4183_v45, %v4252_v16 }
 0x31d   : > { %v4278_v41 = vadd.f32 %v1733_v31, %v1296_v37  ;;  %v1439_v42 = vmul.f32 %v4185_v46, %v4252_v16  ;;  %v1708_v15 = vmul.f32 %v4187_v47, %v4256_v17  ;;  %v1792_v43 = vmul.f32 %v4189_v48, %v4256_v17 }
 0x31e   : > { %v1814_v52 = vrot.slane %v1813_v6, 2  ;;  %v1897_v1 = vadd.f32 %v1896_v30, %v1877_v34  ;;  %v1286_v7 = vadd.f32 %v1285_v38, %v1271_v36  ;;  %v1369_v8 = vrot.slane %v1355_v39, 4 }
 0x31f   : > { %4646 = vst [vmem:[#allocation9_spill] sm:$0xff] %v4278_v41  ;;  %v1453_v11 = vrot.slane %v1439_v42, 4  ;;  %v1722_v12 = vrot.slane %v1708_v15, 4  ;;  %v1806_v13 = vrot.slane %v1792_v43, 4  ;;  %v1876_v14 = vmul.f32 %v4191_v49, %v4256_v17 }
 0x320   : > { %v1815_v18 = vadd.f32 %v1814_v52, %v1813_v6  ;;  %v1898_v59 = vrot.slane %v1897_v1, 2  ;;  %v1287_v60 = vrot.slane %v1286_v7, 2  ;;  %v1370_v16 = vadd.f32 %v1369_v8, %v1355_v39  ;;  %v1103_v6 = vpop.permute.xlu0 %1102 }
 0x321   : > { %v1454_v24 = vadd.f32 %v1453_v11, %v1439_v42  ;;  %v1723_v26 = vadd.f32 %v1722_v12, %v1708_v15  ;;  %v1807_v25 = vadd.f32 %v1806_v13, %v1792_v43  ;;  %v1890_v20 = vrot.slane %v1876_v14, 4  ;;  %v3548_v15 = vpop.f32.mrf.mxu1 }
 0x322   : > { %v1816_v5 = vrot.slane %v1815_v18, 1  ;;  %v1899_v58 = vadd.f32 %v1898_v59, %v1897_v1  ;;  %v1288_v21 = vadd.f32 %v1287_v60, %v1286_v7  ;;  %v1371_v27 = vrot.slane %v1370_v16, 2 }
 0x323   : > { %v1455_v29 = vrot.slane %v1454_v24, 2  ;;  %v1724_v33 = vrot.slane %v1723_v26, 2  ;;  %v1808_v34 = vrot.slane %v1807_v25, 2  ;;  %v1891_v36 = vadd.f32 %v1890_v20, %v1876_v14 }
 0x324   : > { %v1817_v37 = vadd.f32 %v1816_v5, %v1815_v18  ;;  %v1900_v31 = vrot.slane %v1899_v58, 1  ;;  %v1289_v30 = vrot.slane %v1288_v21, 1  ;;  %v1372_v17 = vadd.f32 %v1371_v27, %v1370_v16  ;;  %v1540_v27 = vpop.permute.xlu0 %1539 }
 0x325   : > { %v1456_v38 = vadd.f32 %v1455_v29, %v1454_v24  ;;  %v1725_v52 = vadd.f32 %v1724_v33, %v1723_v26  ;;  %v1809_v39 = vadd.f32 %v1808_v34, %v1807_v25  ;;  %v1892_v42 = vrot.slane %v1891_v36, 2 }
 0x326   : > { %v4288_v43 = vadd.f32 %v1817_v37, %v1380_v53  ;;  %v1901_v8 = vadd.f32 %v1900_v31, %v1899_v58  ;;  %v1290_v1 = vadd.f32 %v1289_v30, %v1288_v21  ;;  %v1373_v7 = vrot.slane %v1372_v17, 1 }
 0x327   : > { %v1457_v11 = vrot.slane %v1456_v38, 1  ;;  %v1726_v12 = vrot.slane %v1725_v52, 1  ;;  %v1810_v13 = vrot.slane %v1809_v39, 1  ;;  %v1893_v59 = vadd.f32 %v1892_v42, %v1891_v36 }
 0x328   : > { %4647 = vst [vmem:[#allocation10_spill] sm:$0xff] %v4288_v43  ;;  %v4290_v14 = vadd.f32 %v1901_v8, %v1464_v4  ;;  %v1374_v18 = vadd.f32 %v1373_v7, %v1372_v17  ;;  %v1236_v60 = vadd.f32 %v3548_v15, %v4199_v56  ;;  %v1673_v16 = vadd.f32 %v4229_v51, %v4201_v57  ;;  %v1230_v4 = vpop.f32.mrf.mxu1 }
 0x329   : > { %v1458_v24 = vadd.f32 %v1457_v11, %v1456_v38  ;;  %v1727_v26 = vadd.f32 %v1726_v12, %v1725_v52  ;;  %v1811_v25 = vadd.f32 %v1810_v13, %v1809_v39  ;;  %v1894_v53 = vrot.slane %v1893_v59, 1 }
 0x32a   : > { %4648 = vst [vmem:[#allocation11_spill] sm:$0xff] %v4290_v14  ;;  %v1302_v20 = vmul.f32 %v4181_v44, %v1236_v60  ;;  %v1386_v5 = vmul.f32 %v4183_v45, %v1236_v60  ;;  %v1470_v58 = vmul.f32 %v4185_v46, %v1236_v60  ;;  %v1739_v21 = vmul.f32 %v4187_v47, %v1673_v16  ;;  %v4309_v60 = vpop.permute.xlu0 %1112 }
 0x32b   : > { %v4299_v29 = vadd.f32 %v1727_v26, %v1290_v1  ;;  %v4301_v56 = vadd.f32 %v1811_v25, %v1374_v18  ;;  %v1895_v33 = vadd.f32 %v1894_v53, %v1893_v59  ;;  %v1823_v57 = vmul.f32 %v4189_v48, %v1673_v16 }
 0x32c   : > { %v1311_v51 = vrot.slane %v1302_v20, 4  ;;  %v1395_v34 = vrot.slane %v1386_v5, 4  ;;  %v1479_v36 = vrot.slane %v1470_v58, 4  ;;  %v1748_v37 = vrot.slane %v1739_v21, 4 }
 0x32d   : > { %v4304_v31 = vadd.f32 %v1895_v33, %v1458_v24  ;;  %v1832_v30 = vrot.slane %v1823_v57, 4  ;;  %v1907_v17 = vmul.f32 %v4191_v49, %v1673_v16  ;;  %v1231_v38 = vadd.f32 %v1230_v4, %v1103_v6 }
 0x32e   : > { %v1312_v52 = vadd.f32 %v1311_v51, %v1302_v20  ;;  %v1396_v39 = vadd.f32 %v1395_v34, %v1386_v5  ;;  %v1480_v42 = vadd.f32 %v1479_v36, %v1470_v58  ;;  %v1749_v15 = vadd.f32 %v1748_v37, %v1739_v21  ;;  %v3551_v37 = vpop.f32.mrf.mxu1 }
 0x32f   : > { %v1833_v8 = vadd.f32 %v1832_v30, %v1823_v57  ;;  %v1916_v1 = vrot.slane %v1907_v17, 4  ;;  %v1301_v7 = vmul.f32 %v4181_v44, %v1231_v38  ;;  %v1385_v11 = vmul.f32 %v4183_v45, %v1231_v38 }
 0x330   : > { %v1313_v12 = vrot.slane %v1312_v52, 2  ;;  %v1397_v13 = vrot.slane %v1396_v39, 2  ;;  %v1481_v59 = vrot.slane %v1480_v42, 2  ;;  %v1750_v18 = vrot.slane %v1749_v15, 2 }
 0x331   : > { %v1834_v24 = vrot.slane %v1833_v8, 2  ;;  %v1917_v26 = vadd.f32 %v1916_v1, %v1907_v17  ;;  %v1305_v16 = vrot.slane %v1301_v7, 4  ;;  %v1389_v6 = vrot.slane %v1385_v11, 4 }
 0x332   : > { %v1314_v25 = vadd.f32 %v1313_v12, %v1312_v52  ;;  %v1398_v53 = vadd.f32 %v1397_v13, %v1396_v39  ;;  %v1482_v20 = vadd.f32 %v1481_v59, %v1480_v42  ;;  %v1751_v5 = vadd.f32 %v1750_v18, %v1749_v15  ;;  %v1118_v52 = vpop.permute.xlu0 %1117  ;;  %v4315_v59 = vpop.f32.mrf.mxu1 }
 0x333   : > { %v1835_v58 = vadd.f32 %v1834_v24, %v1833_v8  ;;  %v1918_v21 = vrot.slane %v1917_v26, 2  ;;  %v1306_v4 = vadd.f32 %v1305_v16, %v1301_v7  ;;  %v1390_v33 = vadd.f32 %v1389_v6, %v1385_v11 }
 0x334   : > { %v1315_v57 = vrot.slane %v1314_v25, 1  ;;  %v1399_v51 = vrot.slane %v1398_v53, 1  ;;  %v1483_v34 = vrot.slane %v1482_v20, 1  ;;  %v1752_v36 = vrot.slane %v1751_v5, 1 }
 0x335   : > { %v1836_v30 = vrot.slane %v1835_v58, 1  ;;  %v1919_v32 = vadd.f32 %v1918_v21, %v1917_v26  ;;  %v1307_v10 = vrot.slane %v1306_v4, 2  ;;  %v1391_v19 = vrot.slane %v1390_v33, 2  ;;  %v1962_v21 = vpop.permute.xlu1 %1961 }
 0x336   : > { %v1316_v17 = vadd.f32 %v1315_v57, %v1314_v25  ;;  %v1400_v1 = vadd.f32 %v1399_v51, %v1398_v53  ;;  %v1753_v28 = vadd.f32 %v1752_v36, %v1751_v5  ;;  %v4311_v12 = vadd.f32 %v1483_v34, %v1482_v20 }
 0x337   : > { %v1837_v39 = vadd.f32 %v1836_v30, %v1835_v58  ;;  %v1920_v42 = vrot.slane %v1919_v32, 1  ;;  %v1308_v15 = vadd.f32 %v1307_v10, %v1306_v4  ;;  %v1392_v8 = vadd.f32 %v1391_v19, %v1390_v33 }
 0x338   : > { %v1469_v7 = vmul.f32 %v4185_v46, %v1231_v38  ;;  %v1668_v11 = vadd.f32 %v4231_v9, %v1540_v27  ;;  %v1246_v13 = vadd.f32 %v3551_v37, %v1118_v52  ;;  %v4317_v18 = vadd.f32 %v1753_v28, %v1316_v17 }
 0x339   : > { %v4319_v24 = vadd.f32 %v1837_v39, %v1400_v1  ;;  %v4321_v26 = vadd.f32 %v1920_v42, %v1919_v32  ;;  %v1309_v16 = vrot.slane %v1308_v15, 1  ;;  %v1393_v53 = vrot.slane %v1392_v8, 1  ;;  %v3582_v32 = vpop.f32.mrf.mxu1 }
 0x33a   : > { %v1473_v6 = vrot.slane %v1469_v7, 4  ;;  %v1738_v10 = vmul.f32 %v4187_v47, %v1668_v11  ;;  %v1822_v19 = vmul.f32 %v4189_v48, %v1668_v11  ;;  %v1906_v25 = vmul.f32 %v4191_v49, %v1668_v11 }
 0x33b   : > { %4649 = vst [vmem:[#allocation12_spill] sm:$0xff] %v4319_v24  ;;  %v1310_v38 = vadd.f32 %v1309_v16, %v1308_v15  ;;  %v1304_v9 = vmul.f32 %v4181_v44, %v1246_v13  ;;  %v1388_v27 = vmul.f32 %v4183_v45, %v1246_v13  ;;  %v1472_v57 = vmul.f32 %v4185_v46, %v1246_v13  ;;  %v4332_v16 = vpop.f32.mrf.mxu1 }
 0x33c   : > { %v1474_v28 = vadd.f32 %v1473_v6, %v1469_v7  ;;  %v1742_v20 = vrot.slane %v1738_v10, 4  ;;  %v1826_v5 = vrot.slane %v1822_v19, 4  ;;  %v1910_v58 = vrot.slane %v1906_v25, 4  ;;  %4650 = vst [vmem:[#allocation13_spill] sm:$0xff] %v4332_v16 }
 0x33d   : > { %v1323_v4 = vrot.slane %v1304_v9, 4  ;;  %v1407_v33 = vrot.slane %v1388_v27, 4  ;;  %v1683_v51 = vadd.f32 %v4233_v22, %v4205_v62  ;;  %v1491_v52 = vrot.slane %v1472_v57, 4 }
 0x33e   : > { %v1475_v34 = vrot.slane %v1474_v28, 2  ;;  %v1743_v36 = vadd.f32 %v1742_v20, %v1738_v10  ;;  %v1827_v37 = vadd.f32 %v1826_v5, %v1822_v19  ;;  %v1911_v30 = vadd.f32 %v1910_v58, %v1906_v25  ;;  %v1967_v25 = vpop.permute.xlu1 %1966 }
 0x33f   : > { %v1324_v17 = vadd.f32 %v1323_v4, %v1304_v9  ;;  %v1408_v1 = vadd.f32 %v1407_v33, %v1388_v27  ;;  %v1741_v39 = vmul.f32 %v4187_v47, %v1683_v51  ;;  %v1492_v23 = vadd.f32 %v1491_v52, %v1472_v57 }
 0x340   : > { %v1476_v42 = vadd.f32 %v1475_v34, %v1474_v28  ;;  %v1744_v15 = vrot.slane %v1743_v36, 2  ;;  %v1828_v7 = vrot.slane %v1827_v37, 2  ;;  %v1912_v11 = vrot.slane %v1911_v30, 2  ;;  %v3585_v34 = vpop.f32.mrf.mxu1 }
 0x341   : > { %v1325_v6 = vrot.slane %v1324_v17, 2  ;;  %v1409_v13 = vrot.slane %v1408_v1, 2  ;;  %v1760_v14 = vrot.slane %v1741_v39, 4  ;;  %v1493_v20 = vrot.slane %v1492_v23, 2 }
 0x342   : > { %v1477_v62 = vrot.slane %v1476_v42, 1  ;;  %v1745_v22 = vadd.f32 %v1744_v15, %v1743_v36  ;;  %v1829_v10 = vadd.f32 %v1828_v7, %v1827_v37  ;;  %v1913_v19 = vadd.f32 %v1912_v11, %v1911_v30  ;;  %v1972_v7 = vpop.permute.xlu1 %1971 }
 0x343   : > { %v1326_v9 = vadd.f32 %v1325_v6, %v1324_v17  ;;  %v1410_v27 = vadd.f32 %v1409_v13, %v1408_v1  ;;  %v1761_v5 = vadd.f32 %v1760_v14, %v1741_v39  ;;  %v1394_v58 = vadd.f32 %v1393_v53, %v1392_v8 }
 0x344   : > { %v1746_v28 = vrot.slane %v1745_v22, 1  ;;  %v1830_v4 = vrot.slane %v1829_v10, 1  ;;  %v1914_v33 = vrot.slane %v1913_v19, 1  ;;  %v4334_v41 = vadd.f32 %v1493_v20, %v1492_v23 }
 0x345   : > { %v1327_v43 = vrot.slane %v1326_v9, 1  ;;  %v1411_v16 = vrot.slane %v1410_v27, 1  ;;  %v1762_v57 = vrot.slane %v1761_v5, 2  ;;  %v4336_v52 = vadd.f32 %v1477_v62, %v1476_v42  ;;  %v2094_v42 = vpop.f32.mrf.mxu1 }
 0x346   : > { %v1747_v36 = vadd.f32 %v1746_v28, %v1745_v22  ;;  %v1831_v37 = vadd.f32 %v1830_v4, %v1829_v10  ;;  %v1825_v30 = vmul.f32 %v4189_v48, %v1683_v51  ;;  %v4339_v17 = vadd.f32 %v1914_v33, %v1913_v19 }
 0x347   : > { %v4341_v1 = vadd.f32 %v1327_v43, %v1326_v9  ;;  %v4343_v14 = vadd.f32 %v1411_v16, %v1410_v27  ;;  %v1763_v8 = vadd.f32 %v1762_v57, %v1761_v5  ;;  %v1909_v15 = vmul.f32 %v4191_v49, %v1683_v51 }
 0x348   : > { %v4345_v53 = vadd.f32 %v1747_v36, %v1310_v38  ;;  %v1844_v23 = vrot.slane %v1825_v30, 4  ;;  %v4349_v11 = vadd.f32 %v1831_v37, %v1394_v58  ;;  %v1241_v13 = vadd.f32 %v4315_v59, %v4309_v60 }
 0x349   : > { %v1764_v6 = vrot.slane %v1763_v8, 1  ;;  %v1678_v43 = vadd.f32 %v4235_v35, %v4203_v61  ;;  %v1928_v62 = vrot.slane %v1909_v15, 4  ;;  %v2090_v38 = vadd.f32 %v3582_v32, %v1962_v21 }
 0x34a   : > { %4651 = vst [vmem:[#allocation14_spill] sm:$0xff] %v4349_v11  ;;  %v1845_v16 = vadd.f32 %v1844_v23, %v1825_v30  ;;  %v4355_v22 = vadd.f32 %v3585_v34, %v1972_v7  ;;  %v1303_v10 = vmul.f32 %v4181_v44, %v1241_v13  ;;  %v1387_v51 = vmul.f32 %v4183_v45, %v1241_v13 }
 0x34b   : > { %v1471_v19 = vmul.f32 %v4185_v46, %v1241_v13  ;;  %v4360_v9 = vadd.f32 %v2094_v42, %v1967_v25  ;;  %v1929_v20 = vadd.f32 %v1928_v62, %v1909_v15  ;;  %v1740_v60 = vmul.f32 %v4187_v47, %v1678_v43 }
 0x34c   : > { %v1846_v27 = vrot.slane %v1845_v16, 2  ;;  %v1824_v59 = vmul.f32 %v4189_v48, %v1678_v43  ;;  %v1317_v61 = vrot.slane %v1303_v10, 4  ;;  %v1401_v35 = vrot.slane %v1387_v51, 4 }
 0x34d   : > { %v1485_v5 = vrot.slane %v1471_v19, 4  ;;  %v1908_v32 = vmul.f32 %v4191_v49, %v1678_v43  ;;  %v1930_v58 = vrot.slane %v1929_v20, 2  ;;  %v1754_v44 = vrot.slane %v1740_v60, 4 }
 0x34e   : > { %v1847_v21 = vadd.f32 %v1846_v27, %v1845_v16  ;;  %v1838_v28 = vrot.slane %v1824_v59, 4  ;;  %v1318_v45 = vadd.f32 %v1317_v61, %v1303_v10  ;;  %v1402_v4 = vadd.f32 %v1401_v35, %v1387_v51 }
 0x34f   : > { %v1486_v46 = vadd.f32 %v1485_v5, %v1471_v19  ;;  %v1922_v25 = vrot.slane %v1908_v32, 4  ;;  %v4365_v33 = vadd.f32 %v1764_v6, %v1763_v8  ;;  %v1755_v57 = vadd.f32 %v1754_v44, %v1740_v60 }
 0x350   : > { %v1848_v34 = vrot.slane %v1847_v21, 1  ;;  %v1839_v47 = vadd.f32 %v1838_v28, %v1824_v59  ;;  %v1319_v36 = vrot.slane %v1318_v45, 2  ;;  %v1403_v48 = vrot.slane %v1402_v4, 2 }
 0x351   : > { %v1487_v37 = vrot.slane %v1486_v46, 2  ;;  %v1923_v30 = vadd.f32 %v1922_v25, %v1908_v32  ;;  %v4369_v49 = vadd.f32 %v1930_v58, %v1929_v20  ;;  %v1756_v15 = vrot.slane %v1755_v57, 2 }
 0x352   : > { %v4367_v23 = vadd.f32 %v1848_v34, %v1847_v21  ;;  %v1840_v42 = vrot.slane %v1839_v47, 2  ;;  %v1320_v7 = vadd.f32 %v1319_v36, %v1318_v45  ;;  %v1404_v13 = vadd.f32 %v1403_v48, %v1402_v4 }
 0x353   : > { %v1488_v43 = vadd.f32 %v1487_v37, %v1486_v46  ;;  %v1924_v16 = vrot.slane %v1923_v30, 2  ;;  %v1757_v62 = vadd.f32 %v1756_v15, %v1755_v57  ;;  %v2144_v6 = vmul.f32 %v4193_v50, %v2090_v38 }
 0x354   : > { %v1841_v8 = vadd.f32 %v1840_v42, %v1839_v47  ;;  %v2228_v10 = vmul.f32 %v4195_v54, %v2090_v38  ;;  %v1321_v51 = vrot.slane %v1320_v7, 1  ;;  %v1405_v19 = vrot.slane %v1404_v13, 1 }
 0x355   : > { %v1489_v27 = vrot.slane %v1488_v43, 1  ;;  %v1925_v60 = vadd.f32 %v1924_v16, %v1923_v30  ;;  %v1758_v59 = vrot.slane %v1757_v62, 1  ;;  %v2153_v20 = vrot.slane %v2144_v6, 4 }
 0x356   : > { %v1842_v61 = vrot.slane %v1841_v8, 1  ;;  %v2237_v35 = vrot.slane %v2228_v10, 4  ;;  %v4374_v32 = vadd.f32 %v1321_v51, %v1320_v7  ;;  %v4376_v21 = vadd.f32 %v1405_v19, %v1404_v13 }
 0x357   : > { %v4378_v58 = vadd.f32 %v1489_v27, %v1488_v43  ;;  %v4380_v44 = vadd.f32 %v1758_v59, %v1757_v62  ;;  %v1926_v28 = vrot.slane %v1925_v60, 1  ;;  %v2154_v45 = vadd.f32 %v2153_v20, %v2144_v6  ;;  %v3588_v59 = vpop.f32.mrf.mxu1 }
 0x358   : > { %v2238_v4 = vadd.f32 %v2237_v35, %v2228_v10  ;;  %v4382_v46 = vadd.f32 %v1842_v61, %v1841_v8  ;;  %v2312_v25 = vmul.f32 %v4197_v55, %v2090_v38  ;;  %v2146_v34 = vmul.f32 %v4193_v50, %v4355_v22 }
 0x359   : > { %v2230_v57 = vmul.f32 %v4195_v54, %v4355_v22  ;;  %v2155_v47 = vrot.slane %v2154_v45, 2  ;;  %v2314_v48 = vmul.f32 %v4197_v55, %v4355_v22  ;;  %v2145_v37 = vmul.f32 %v4193_v50, %v4360_v9 }
 0x35a   : > { %v2239_v36 = vrot.slane %v2238_v4, 2  ;;  %v2321_v30 = vrot.slane %v2312_v25, 4  ;;  %v2165_v15 = vrot.slane %v2146_v34, 4  ;;  %v2229_v38 = vmul.f32 %v4195_v54, %v4360_v9 }
 0x35b   : > { %v2249_v42 = vrot.slane %v2230_v57, 4  ;;  %v2156_v7 = vadd.f32 %v2155_v47, %v2154_v45  ;;  %v2333_v43 = vrot.slane %v2314_v48, 4  ;;  %v2159_v16 = vrot.slane %v2145_v37, 4 }
 0x35c   : > { %v2240_v13 = vadd.f32 %v2239_v36, %v2238_v4  ;;  %v2322_v62 = vadd.f32 %v2321_v30, %v2312_v25  ;;  %v2166_v8 = vadd.f32 %v2165_v15, %v2146_v34  ;;  %v2243_v10 = vrot.slane %v2229_v38, 4  ;;  %v2104_v30 = vpop.f32.mrf.mxu1 }
 0x35d   : > { %v2250_v6 = vadd.f32 %v2249_v42, %v2230_v57  ;;  %v2157_v51 = vrot.slane %v2156_v7, 1  ;;  %v2334_v22 = vadd.f32 %v2333_v43, %v2314_v48  ;;  %v2160_v27 = vadd.f32 %v2159_v16, %v2145_v37 }
 0x35e   : > { %v2241_v19 = vrot.slane %v2240_v13, 1  ;;  %v2323_v61 = vrot.slane %v2322_v62, 2  ;;  %v2167_v20 = vrot.slane %v2166_v8, 2  ;;  %v2244_v5 = vadd.f32 %v2243_v10, %v2229_v38 }
 0x35f   : > { %v2251_v35 = vrot.slane %v2250_v6, 2  ;;  %v2158_v39 = vadd.f32 %v2157_v51, %v2156_v7  ;;  %v2335_v11 = vrot.slane %v2334_v22, 2  ;;  %v2161_v45 = vrot.slane %v2160_v27, 2 }
 0x360   : > { %v2242_v24 = vadd.f32 %v2241_v19, %v2240_v13  ;;  %v2324_v4 = vadd.f32 %v2323_v61, %v2322_v62  ;;  %v2168_v47 = vadd.f32 %v2167_v20, %v2166_v8  ;;  %v2245_v25 = vrot.slane %v2244_v5, 2 }
 0x361   : > { %v2252_v36 = vadd.f32 %v2251_v35, %v2250_v6  ;;  %v4396_v34 = vadd.f32 %v2158_v39, %v4237_v40  ;;  %v4401_v48 = vadd.f32 %v2335_v11, %v2334_v22  ;;  %v2162_v37 = vadd.f32 %v2161_v45, %v2160_v27 }
 0x362   : > { %v4399_v57 = vadd.f32 %v2242_v24, %v4244_v2  ;;  %v2325_v15 = vrot.slane %v2324_v4, 1  ;;  %v2169_v42 = vrot.slane %v2168_v47, 1  ;;  %v2246_v7 = vadd.f32 %v2245_v25, %v2244_v5 }
 0x363   : > { %v2253_v38 = vrot.slane %v2252_v36, 1  ;;  %v4403_v13 = vadd.f32 %v1926_v28, %v1925_v60  ;;  %v2163_v43 = vrot.slane %v2162_v37, 1  ;;  %v2313_v16 = vmul.f32 %v4197_v55, %v4360_v9  ;;  %v3591_v60 = vpop.f32.mrf.mxu1  ;;  %v1977_v28 = vpop.permute.xlu0 %1976 }
 0x364   : > { %v2110_v40 = vadd.f32 %v3588_v59, %v4207_v63  ;;  %v2326_v39 = vadd.f32 %v2325_v15, %v2324_v4  ;;  %v4408_v62 = vadd.f32 %v2169_v42, %v2168_v47  ;;  %v2337_v2 = vrot.slane %v4401_v48, 1 }
 0x365   : > { %v2247_v24 = vrot.slane %v2246_v7, 1  ;;  %v4411_v11 = vadd.f32 %v2253_v38, %v2252_v36  ;;  %v2164_v8 = vadd.f32 %v2163_v43, %v2162_v37  ;;  %v2327_v6 = vrot.slane %v2313_v16, 4 }
 0x366   : > { %v2176_v5 = vmul.f32 %v4193_v50, %v2110_v40  ;;  %v4415_v10 = vadd.f32 %v2326_v39, %v4246_v3  ;;  %v2260_v63 = vmul.f32 %v4195_v54, %v2110_v40  ;;  %v2344_v51 = vmul.f32 %v4197_v55, %v2110_v40 }
 0x367   : > { %v2248_v9 = vadd.f32 %v2247_v24, %v2246_v7  ;;  %v4420_v19 = vadd.f32 %v2164_v8, %v4299_v29  ;;  %v2328_v22 = vadd.f32 %v2327_v6, %v2313_v16  ;;  %v2105_v59 = vadd.f32 %v2104_v30, %v1977_v28 }
 0x368   : > { %v2185_v27 = vrot.slane %v2176_v5, 4  ;;  %v2269_v20 = vrot.slane %v2260_v63, 4  ;;  %v2353_v35 = vrot.slane %v2344_v51, 4  ;;  %v2120_v45 = vadd.f32 %v3591_v60, %v4209_v0 }
 0x369   : > { %v4423_v61 = vadd.f32 %v2248_v9, %v4301_v56  ;;  %v2329_v3 = vrot.slane %v2328_v22, 2  ;;  %v2175_v47 = vmul.f32 %v4193_v50, %v2105_v59  ;;  %v2259_v36 = vmul.f32 %v4195_v54, %v2105_v59 }
 0x36a   : > { %v2186_v4 = vadd.f32 %v2185_v27, %v2176_v5  ;;  %v2270_v25 = vadd.f32 %v2269_v20, %v2260_v63  ;;  %v2354_v37 = vadd.f32 %v2353_v35, %v2344_v51  ;;  %v2343_v29 = vmul.f32 %v4197_v55, %v2105_v59 }
 0x36b   : > { %4652 = vst [vmem:[#allocation15_spill] sm:$0xff] %v4423_v61  ;;  %v2178_v15 = vmul.f32 %v4193_v50, %v2120_v45  ;;  %v2330_v30 = vadd.f32 %v2329_v3, %v2328_v22  ;;  %v2179_v56 = vrot.slane %v2175_v47, 4  ;;  %v2263_v38 = vrot.slane %v2259_v36, 4 }
 0x36c   : > { %v2187_v42 = vrot.slane %v2186_v4, 2  ;;  %v2271_v7 = vrot.slane %v2270_v25, 2  ;;  %v2355_v43 = vrot.slane %v2354_v37, 2  ;;  %v2347_v16 = vrot.slane %v2343_v29, 4 }
 0x36d   : > { %v2197_v0 = vrot.slane %v2178_v15, 4  ;;  %v2331_v40 = vrot.slane %v2330_v30, 1  ;;  %v2180_v24 = vadd.f32 %v2179_v56, %v2175_v47  ;;  %v2264_v8 = vadd.f32 %v2263_v38, %v2259_v36  ;;  %v2114_v36 = vpop.f32.mrf.mxu1 }
 0x36e   : > { %v2188_v39 = vadd.f32 %v2187_v42, %v2186_v4  ;;  %v2272_v6 = vadd.f32 %v2271_v7, %v2270_v25  ;;  %v2356_v5 = vadd.f32 %v2355_v43, %v2354_v37  ;;  %v2348_v60 = vadd.f32 %v2347_v16, %v2343_v29 }
 0x36f   : > { %v2198_v28 = vadd.f32 %v2197_v0, %v2178_v15  ;;  %v2332_v9 = vadd.f32 %v2331_v40, %v2330_v30  ;;  %v2181_v51 = vrot.slane %v2180_v24, 2  ;;  %v2265_v27 = vrot.slane %v2264_v8, 2  ;;  %v1987_v30 = vpop.permute.xlu0 %1986 }
 0x370   : > { %v2189_v63 = vrot.slane %v2188_v39, 1  ;;  %v2273_v22 = vrot.slane %v2272_v6, 1  ;;  %v2357_v59 = vrot.slane %v2356_v5, 1  ;;  %v2349_v20 = vrot.slane %v2348_v60, 2 }
 0x371   : > { %v2199_v35 = vrot.slane %v2198_v28, 2  ;;  %v4431_v3 = vadd.f32 %v2337_v2, %v4401_v48  ;;  %v4434_v61 = vadd.f32 %v2332_v9, %v4304_v31  ;;  %v2182_v4 = vadd.f32 %v2181_v51, %v2180_v24 }
 0x372   : > { %v2266_v47 = vadd.f32 %v2265_v27, %v2264_v8  ;;  %v4436_v25 = vadd.f32 %v2189_v63, %v2188_v39  ;;  %v4438_v37 = vadd.f32 %v2273_v22, %v2272_v6  ;;  %v2350_v29 = vadd.f32 %v2349_v20, %v2348_v60 }
 0x373   : > { %v2200_v15 = vadd.f32 %v2199_v35, %v2198_v28  ;;  %v2183_v42 = vrot.slane %v2182_v4, 1  ;;  %v2262_v38 = vmul.f32 %v4195_v54, %v2120_v45  ;;  %v2346_v48 = vmul.f32 %v4197_v55, %v2120_v45 }
 0x374   : > { %v2267_v56 = vrot.slane %v2266_v47, 1  ;;  %v2358_v2 = vadd.f32 %v2357_v59, %v2356_v5  ;;  %v2351_v7 = vrot.slane %v2350_v29, 1  ;;  %v2115_v43 = vadd.f32 %v2114_v36, %v1987_v30 }
 0x375   : > { %v2201_v31 = vrot.slane %v2200_v15, 1  ;;  %v2184_v16 = vadd.f32 %v2183_v42, %v2182_v4  ;;  %v2281_v0 = vrot.slane %v2262_v38, 4  ;;  %v2365_v40 = vrot.slane %v2346_v48, 4 }
 0x376   : > { %v4653_v39 = vrot.slane %v4334_v41, 1  ;;  %v2352_v8 = vadd.f32 %v2351_v7, %v2350_v29  ;;  %v2177_v6 = vmul.f32 %v4193_v50, %v2115_v43  ;;  %v2261_v60 = vmul.f32 %v4195_v54, %v2115_v43 }
 0x377   : > { %v2345_v28 = vmul.f32 %v4197_v55, %v2115_v43  ;;  %v2268_v9 = vadd.f32 %v2267_v56, %v2266_v47  ;;  %v2282_v45 = vadd.f32 %v2281_v0, %v2262_v38  ;;  %v2366_v5 = vadd.f32 %v2365_v40, %v2346_v48 }
 0x378   : > { %v1496_v24 = vadd.f32 %v4653_v39, %v4334_v41  ;;  %v4654_v63 = vrot.slane %v4369_v49, 1  ;;  %v2191_v27 = vrot.slane %v2177_v6, 4  ;;  %v2275_v22 = vrot.slane %v2261_v60, 4 }
 0x379   : > { %v2359_v59 = vrot.slane %v2345_v28, 4  ;;  %v1934_v41 = vadd.f32 %v4339_v17, %v4336_v52  ;;  %v2283_v20 = vrot.slane %v2282_v45, 2  ;;  %v2367_v35 = vrot.slane %v2366_v5, 2 }
 0x37a   : > { %v1933_v51 = vadd.f32 %v4654_v63, %v4369_v49  ;;  %v1935_v4 = vadd.f32 %v4321_v26, %v4311_v12  ;;  %v1936_v47 = vadd.f32 %v4403_v13, %v4378_v58  ;;  %v2192_v36 = vadd.f32 %v2191_v27, %v2177_v6 }
 0x37b   : > { %v2276_v29 = vadd.f32 %v2275_v22, %v2261_v60  ;;  %v2360_v30 = vadd.f32 %v2359_v59, %v2345_v28  ;;  %v2371_v42 = vadd.f32 %v2352_v8, %v1934_v41  ;;  %v2284_v56 = vadd.f32 %v2283_v20, %v2282_v45 }
 0x37c   : > { %v2368_v49 = vadd.f32 %v2367_v35, %v2366_v5  ;;  %v2372_v38 = vadd.f32 %v2358_v2, %v1935_v4  ;;  %v2193_v48 = vrot.slane %v2192_v36, 2  ;;  %v1937_v52 = vadd.f32 %v1933_v51, %v1496_v24  ;;  %v4657_v35 = vld [vmem:[#allocation9_spill] sm:$0xff] }
 0x37d   : > { %v2277_v7 = vrot.slane %v2276_v29, 2  ;;  %v2361_v43 = vrot.slane %v2360_v30, 2  ;;  %v2285_v17 = vrot.slane %v2284_v56, 1  ;;  %v1768_v39 = vadd.f32 %v4380_v44, %v4374_v32  ;;  %v4655_v44 = vld [vmem:[#allocation14_spill] sm:$0xff] }
 0x37e   : > { %v2369_v0 = vrot.slane %v2368_v49, 1  ;;  %v2426_v12 = vsel %vm2379_vm13, %v2372_v38, %v2371_v42  ;;  %v2194_v26 = vadd.f32 %v2193_v48, %v2192_v36  ;;  %v1769_v2 = vadd.f32 %v4365_v33, %v4341_v1  ;;  %v4658_v36 = vld [vmem:[#allocation10_spill] sm:$0xff] }
 0x37f   : > { %v2278_v40 = vadd.f32 %v2277_v7, %v2276_v29  ;;  %v2362_v58 = vadd.f32 %v2361_v43, %v2360_v30  ;;  %v1852_v8 = vadd.f32 %v4382_v46, %v4376_v21  ;;  %v2202_v28 = vadd.f32 %v2201_v31, %v2200_v15  ;;  %v4656_v46 = vld [vmem:[#allocation12_spill] sm:$0xff]  ;;  %v4659_v30 = vld [vmem:[#allocation11_spill] sm:$0xff] }
 0x380   : > { %v2370_v13 = vadd.f32 %v2369_v0, %v2368_v49  ;;  %v2195_v24 = vrot.slane %v2194_v26, 1  ;;  %v1853_v5 = vadd.f32 %v4367_v23, %v4343_v14  ;;  %v2203_v63 = vadd.f32 %v2184_v16, %v4345_v53  ;;  %v3703_v0 = vld [vmem:[%s3978_s18 + $0x10] sm:$0xff] }
 0x381   : > { %v2279_v6 = vrot.slane %v2278_v40, 1  ;;  %v2363_v60 = vrot.slane %v2362_v58, 1  ;;  %v2286_v51 = vadd.f32 %v2285_v17, %v2284_v56  ;;  %v2204_v1 = vadd.f32 %v4436_v25, %v4317_v18  ;;  %v2596_v56 = vld [vmem:[%s4627_s12] sm:$0x1]  ;;  %v4664_v17 = vld [vmem:[#allocation5_spill] sm:$0xff] }
 0x382   : > { %v2374_v45 = vadd.f32 %v2370_v13, %v1937_v52  ;;  %v2196_v27 = vadd.f32 %v2195_v24, %v2194_v26  ;;  %v2206_v33 = vadd.f32 %v2202_v28, %v1769_v2  ;;  %v2287_v21 = vadd.f32 %v2268_v9, %v4655_v44  ;;  %v4663_v52 = vld [vmem:[#allocation4_spill] sm:$0xff]  ;;  %v4665_v24 = vld [vmem:[#allocation13_spill] sm:$0xff] }
 0x383   : > { %v2280_v22 = vadd.f32 %v2279_v6, %v2278_v40  ;;  %v2364_v32 = vadd.f32 %v2363_v60, %v2362_v58  ;;  %v2288_v59 = vadd.f32 %v4438_v37, %v4656_v46  ;;  %v2290_v14 = vadd.f32 %v2286_v51, %v1853_v5  ;;  %v1946_v58 = vld [vmem:[%s4623_s8 + $0x80] sm:$0xff] }
 0x384   : > { %v2205_v31 = vadd.f32 %v2196_v27, %v1768_v39  ;;  %v2410_v53 = vsel %vm2379_vm13, %v2204_v1, %v2203_v63  ;;  %v4482_v4 = vadd.f32 %v4408_v62, %v4657_v35  ;;  %v4487_v29 = vadd.f32 %v4411_v11, %v4658_v36  ;;  %v4661_v11 = vld [vmem:[#allocation2_spill] sm:$0xff] }
 0x385   : > { %v2373_v15 = vadd.f32 %v2364_v32, %v1936_v47  ;;  %v2289_v41 = vadd.f32 %v2280_v22, %v1852_v8  ;;  %v2418_v23 = vsel %vm2390_vm0, %v2288_v59, %v2287_v21  ;;  %v4491_v42 = vadd.f32 %v4431_v3, %v4659_v30  ;;  %v4662_v3 = vld [vmem:[#allocation3_spill] sm:$0xff] }
 0x386   : > { %v2411_v18 = vsel %vm2381_vm14, %v2205_v31, %v2410_v53  ;;  %v2597_v7 = vunpack.c.l.bf16 %v2596_v56  ;;  %v4660_v43 = vmov 0.0   ;;  %v3704_v31 = vld [vmem:[%s3978_s18 + $0x8] sm:$0xff] }
 0x387   : > { %v2427_v16 = vsel %vm2381_vm14, %v2373_v15, %v2426_v12  ;;  %v2419_v25 = vsel %vm2392_vm3, %v2289_v41, %v2418_v23  ;;  %v2412_v37 = vsel %vm2383_vm15, %v2206_v33, %v2411_v18  ;;  %v3705_v23 = vld [vmem:[%s3978_s18] sm:$0xff]  ;;  %v4669_v56 = vld [vmem:[#allocation15_spill] sm:$0xff] }
 0x388   : > { %v2428_v9 = vsel %vm2383_vm15, %v2374_v45, %v2427_v16  ;;  %v2420_v20 = vsel %vm2394_vm4, %v2290_v14, %v2419_v25  ;;  %v4666_v16 = vld [vmem:[#allocation6_spill] sm:$0xff]  ;;  %v4667_v25 = vld [vmem:[#allocation7_spill] sm:$0xff] }
 0x389   : > { %v2430_v47 = vsel %vm556_vm1, %v2412_v37, %v2420_v20  ;;  %v4668_v37 = vld [vmem:[#allocation8_spill] sm:$0xff] }
 0x3ce   : > { %v3611_v49 = vpop.f32.mrf.mxu0 }
 0x3cf   : > { %v2599_v38 = vmul.f32 %v3611_v49, %v2428_v9 }
 0x3d0   : > { %v2587_v48 = vpop.f32.mrf.mxu0 }
 0x3d1   : > { %v2598_v62 = vmul.f32 %v2587_v48, %v2430_v47  ;;  %3613 = vmatpush3.msk.msra.mxu0 %vm556_vm1, %v2599_v38 }
 0x3d2   : > { %3614 = vmatprep.subr.mxu0 %v4660_v43 }
 0x3d3   : > { %3615 = vmatpush3.msra.mxu0 %v2598_v62 }
 0x3d4   : > { %3617 = vmatmul.mubr.msk.f32.vlgmr.msra.gmra.mxu0 %vm2600_vm5, %v2597_v7  ;;  %3619 = vmatprep.subr.mxu0 %v4660_v43 }
 0x3d5   : > { %3620 = vmatpush3.xpose.msra.mxu0 %v4661_v11  ;;  %3627 = vmatprep.mubr.msk.f32.mxu0 %vm3716_vm7, %v4660_v43  ;;  %vm2834_vm7 = vcmask 1040384  }
 0x3d6   : > { %3621 = vmatprep.subr.mxu0 %v4660_v43 }
 0x3d9   : > { %3622 = vmatpush3.xpose.msra.mxu0 %v4662_v3 }
 0x3da   : > { %3623 = vmatprep.subr.mxu0 %v4660_v43 }
 0x3dd   : > { %3624 = vmatpush3.xpose.msra.mxu0 %v4663_v52 }
 0x3de   : > { %3625 = vmatprep.subr.mxu0 %v4660_v43 }
 0x3e1   : > { %3626 = vmatpush3.xpose.msra.mxu0 %v4664_v17 }
 0x3e2   : > { %3652 = vmatprep.subr.mxu0 %v3703_v0 }
 0x494   : > { %v2673_v12 = vpop.f32.mrf.mxu0 }
 0x495   : > { %v2678_v26 = vsel %vm2677_vm6, %v2673_v12, -inf }
 0x496   : > { %2679 = vmax.xlane.f32.xlu0 %v2678_v26  ;;  %v3618_v40 = vpop.f32.mrf.mxu0 }
 0x4ac   : > { %1956 = vperm.xlu0 %3693, %v1946_v58   ;;  %v2920_v58 = vld [vmem:[%s4625_s10] sm:$0xff] }
 0x51f   : > { %v2680_v13 = vpop.xlane.xlu0 %2679 }
 0x520   : > { %v2681_v39 = vsub.f32 %v2673_v12, %v2680_v13  ;;  %v2927_v13 = vld [vmem:[%s4626_s11 + $0x8] sm:$0xff] }
 0x522   : > { %v2682_v2 = vmul.f32 1.442695, %v2681_v39  ;;  %v2928_v39 = vld [vmem:[%s4626_s11 + $0x10] sm:$0xff] }
 0x524   : > { %3699 = vpow2.f32 %v2682_v2  ;;  %v2929_v2 = vld [vmem:[%s4626_s11 + $0x18] sm:$0xff] }
 0x527   : > { %v1957_v8 = vpop.permute.xlu0 %1956 }
 0x528   : > { %v2085_v6 = vadd.f32 %v4665_v24, %v1957_v8  ;;  %v2930_v8 = vld [vmem:[%s4626_s11 + $0x20] sm:$0xff]  ;;  %v2931_v24 = vld [vmem:[%s4626_s11 + $0x28] sm:$0xff] }
 0x52a   : > { %v2143_v60 = vmul.f32 %v4193_v50, %v2085_v6  ;;  %v2227_v28 = vmul.f32 %v4195_v54, %v2085_v6  ;;  %v2311_v45 = vmul.f32 %v4197_v55, %v2085_v6 }
 0x52c   : > { %v2147_v5 = vrot.slane %v2143_v60, 4  ;;  %v2231_v63 = vrot.slane %v2227_v28, 4  ;;  %v2315_v51 = vrot.slane %v2311_v45, 4 }
 0x52e   : > { %v2148_v27 = vadd.f32 %v2147_v5, %v2143_v60  ;;  %v2232_v22 = vadd.f32 %v2231_v63, %v2227_v28  ;;  %v2316_v32 = vadd.f32 %v2315_v51, %v2311_v45  ;;  %v2921_v28 = vld [vmem:[%s4625_s10 + $0x8] sm:$0xff]  ;;  %v2922_v45 = vld [vmem:[%s4625_s10 + $0x10] sm:$0xff]  ;;  %v2923_v5 = vld [vmem:[%s4625_s10 + $0x18] sm:$0xff] }
 0x52f   : > { %v2924_v63 = vld [vmem:[%s4625_s10 + $0x20] sm:$0xff]  ;;  %v2925_v51 = vld [vmem:[%s4625_s10 + $0x28] sm:$0xff] }
 0x530   : > { %v2149_v1 = vrot.slane %v2148_v27, 2  ;;  %v2233_v33 = vrot.slane %v2232_v22, 2  ;;  %v2317_v44 = vrot.slane %v2316_v32, 2 }
 0x531   : > { %v3700_v21 = vpop.eup %3699 }
 0x532   : > { %v2150_v46 = vadd.f32 %v2149_v1, %v2148_v27  ;;  %v2234_v59 = vadd.f32 %v2233_v33, %v2232_v22  ;;  %v2318_v15 = vadd.f32 %v2317_v44, %v2316_v32  ;;  %3628 = vmatmul.mubr.f32.vlgmr.msra.gmra.mxu0 %v3700_v21 }
 0x533   : > { %3653 = vmatpush3.msra.mxu0 %v3703_v0 }
 0x534   : > { %v2151_v50 = vrot.slane %v2150_v46, 1  ;;  %v2235_v54 = vrot.slane %v2234_v59, 1  ;;  %v2319_v55 = vrot.slane %v2318_v15, 1  ;;  %3654 = vmatprep.subr.mxu0 %v3704_v31 }
 0x535   : > { %3655 = vmatpush3.msra.mxu0 %v3704_v31 }
 0x536   : > { %v2152_v41 = vadd.f32 %v2151_v50, %v2150_v46  ;;  %v2236_v14 = vadd.f32 %v2235_v54, %v2234_v59  ;;  %v2320_v53 = vadd.f32 %v2319_v55, %v2318_v15  ;;  %3656 = vmatprep.subr.mxu0 %v3705_v23 }
 0x537   : > { %3657 = vmatpush3.msra.mxu0 %v3705_v23 }
 0x538   : > { %v2171_v18 = vadd.f32 %v2152_v41, %v4666_v16  ;;  %v2255_v9 = vadd.f32 %v2236_v14, %v4667_v25  ;;  %v2339_v20 = vadd.f32 %v2320_v53, %v4668_v37 }
 0x53a   : > { %v2380_v35 = vsel %vm2379_vm13, %v4396_v34, %v2171_v18  ;;  %v2391_v47 = vsel %vm2390_vm0, %v4399_v57, %v2255_v9  ;;  %v2401_v36 = vsel %vm2379_vm13, %v4415_v10, %v2339_v20 }
 0x53b   : > { %v2382_v30 = vsel %vm2381_vm14, %v4420_v19, %v2380_v35  ;;  %v2393_v49 = vsel %vm2392_vm3, %v4669_v56, %v2391_v47  ;;  %v2402_v38 = vsel %vm2381_vm14, %v4434_v61, %v2401_v36 }
 0x53c   : > { %v2384_v48 = vsel %vm2383_vm15, %v4482_v4, %v2382_v30  ;;  %v2395_v34 = vsel %vm2394_vm4, %v4487_v29, %v2393_v49  ;;  %v2403_v57 = vsel %vm2383_vm15, %v4491_v42, %v2402_v38 }
 0x53d   : > { %v2405_v10 = vsel %vm556_vm1, %v2384_v48, %v2395_v34 }
 0x5f2   : > { %v2750_v7 = vpop.f32.mrf.mxu0 }
 0x5f3   : > { %3639 = vmatmul.mubr.msk.f32.vlgmr.msra.gmra.mxu1 %vm764_vm2, %v2750_v7 }
 0x5f4   : > { %v3629_v19 = vpop.f32.mrf.mxu0  ;;  %3642 = vmatpush3.xpose.msra.mxu1 %v4661_v11 }
 0x5f5   : > { %3643 = vmatprep.subr.mxu1 %v4662_v3 }
 0x5f8   : > { %3644 = vmatpush3.xpose.msra.mxu1 %v4662_v3 }
 0x5f9   : > { %3645 = vmatprep.subr.mxu1 %v4663_v52 }
 0x5fc   : > { %3646 = vmatpush3.xpose.msra.mxu1 %v4663_v52 }
 0x5fd   : > { %3647 = vmatprep.subr.mxu1 %v4664_v17 }
 0x600   : > { %3648 = vmatpush3.xpose.msra.mxu1 %v4664_v17  ;;  %v2926_v17 = vld [vmem:[%s4626_s11] sm:$0xff] }
 0x601   : > { %3658 = vmatprep.mubr.msk.f32.mxu0 %vm2433_vm12, %v2926_v17 }
 0x602   : > { %3659 = vmatmul.mubr.msk.f32.vlgmr.msra.gmra.mxu0 %vm2433_vm12, %v2927_v13 }
 0x603   : > { %3661 = vmatprep.mubr.msk.f32.mxu0 %vm2433_vm12, %v2928_v39 }
 0x606   : > { %3662 = vmatmul.mubr.msk.f32.gmra.mxu0 %vm2433_vm12, %v2929_v2 }
 0x607   : > { %3664 = vmatprep.mubr.msk.f32.mxu0 %vm2433_vm12, %v2930_v8 }
 0x60a   : > { %3665 = vmatmul.mubr.msk.f32.gmra.mxu0 %vm2433_vm12, %v2931_v24 }
 0x6b3   : > { %v2823_v61 = vpop.f32.mrf.mxu1 }
 0x6b4   : > { %3701 = vrcp.f32 %v2823_v61 }
 0x6b5   : > { %v3640_v4 = vpop.f32.mrf.mxu1 }
 0x6c1   : > { %v3702_v29 = vpop.eup %3701 }
 0x6c2   : > { %v2828_v42 = vmul.f32 %v3702_v29, %v3700_v21  ;;  %v3660_v27 = vpop.f32.mrf.mxu0 }
 0x6c4   : > { %v2830_v62 = vrot.slane %v2828_v42, 7  ;;  %v2832_v43 = vrot.slane %v2828_v42, 6  ;;  %v3016_v22 = vpop.f32.mrf.mxu0 }
 0x6c6   : > { %v2835_v11 = vsel %vm2834_vm7, %v2828_v42, %v2830_v62  ;;  %v3663_v32 = vpop.f32.mrf.mxu0 }
 0x6c7   : > { %v2836_v3 = vsel %vm2677_vm6, %v2835_v11, %v2830_v62 }
 0x6c8   : > { %v2838_v0 = vsel %vm2837_vm8, %v2836_v3, %v2832_v43  ;;  %v3026_v21 = vpop.f32.mrf.mxu0 }
 0x6c9   : > { %v2840_v12 = vrot.slane %v2838_v0, 4  ;;  %v2844_v40 = vmul.f32 %v2838_v0, %v2403_v57 }
 0x6ca   : > { %v3666_v54 = vpop.f32.mrf.mxu0 }
 0x6cb   : > { %v2842_v52 = vsel %vm556_vm1, %v2838_v0, %v2840_v12 }
 0x6cc   : > { %v2843_v26 = vmul.f32 %v2842_v52, %v2405_v10  ;;  %v3036_v14 = vpop.f32.mrf.mxu0 }
 0x6ce   : > { %3649 = vmatprep.mubr.f32.mxu1 %v2843_v26 }
 0x6cf   : > { %3650 = vmatmul.mubr.f32.vlgmr.msra.gmra.mxu1 %v2844_v40 }
 0x6d0   : > { %3671 = vmatprep.mubr.msk.f32.mxu1 %vm2600_vm5, %v2920_v58 }
 0x78f   : > { %v3651_v6 = vpop.f32.mrf.mxu1 }
 0x790   : > { %3667 = vmatprep.subr.msk.mxu1 %vm556_vm1, %v3651_v6 }
 0x791   : > { %v2911_v60 = vpop.f32.mrf.mxu1  ;;  %3668 = vmatpush3.msk.msra.mxu1 %vm556_vm1, %v3651_v6 }
 0x792   : > { %3669 = vmatprep.subr.mxu1 %v2911_v60 }
 0x793   : > { %3670 = vmatpush3.msra.mxu1 %v2911_v60 }
 0x794   : > { %3672 = vmatmul.mubr.msk.f32.vlgmr.msra.gmra.mxu1 %vm2600_vm5, %v2921_v28 }
 0x795   : > { %3674 = vmatprep.mubr.msk.f32.mxu1 %vm2600_vm5, %v2922_v45 }
 0x798   : > { %3675 = vmatmul.mubr.msk.f32.gmra.mxu1 %vm2600_vm5, %v2923_v5 }
 0x799   : > { %3677 = vmatprep.mubr.msk.f32.mxu1 %vm2600_vm5, %v2924_v63 }
 0x79c   : > { %3678 = vmatmul.mubr.msk.f32.gmra.mxu1 %vm2600_vm5, %v2925_v51 }
 0x854   : > { %v3673_v1 = vpop.f32.mrf.mxu1 }
 0x855   : > { %v3138_v33 = vadd.f32 %v3673_v1, %v3660_v27 }
 0x856   : > { %v3132_v44 = vpop.f32.mrf.mxu1 }
 0x857   : > { %3162 = vst.msk [vmem:[%s517_s24 + $0x8] sm:$0xff] %vm764_vm2, %v3138_v33  ;;  %v3133_v46 = vadd.f32 %v3132_v44, %v3016_v22 }
 0x858   : > { %v3676_v59 = vpop.f32.mrf.mxu1 }
 0x859   : > { %3161 = vst.msk [vmem:[%s517_s24] sm:$0xff] %vm764_vm2, %v3133_v46  ;;  %v3148_v15 = vadd.f32 %v3676_v59, %v3663_v32 }
 0x85a   : > { %v3142_v50 = vpop.f32.mrf.mxu1 }
 0x85b   : > { %3164 = vst.msk [vmem:[%s517_s24 + $0x18] sm:$0xff] %vm764_vm2, %v3148_v15  ;;  %v3143_v55 = vadd.f32 %v3142_v50, %v3026_v21 }
 0x85c   : > { %v3679_v31 = vpop.f32.mrf.mxu1 }
 0x85d   : > { %3163 = vst.msk [vmem:[%s517_s24 + $0x10] sm:$0xff] %vm764_vm2, %v3143_v55  ;;  %v3158_v41 = vadd.f32 %v3679_v31, %v3666_v54 }
 0x85e   : > { %v3152_v53 = vpop.f32.mrf.mxu1 }
 0x85f   : > { %3166 = vst.msk [vmem:[%s517_s24 + $0x28] sm:$0xff] %vm764_vm2, %v3158_v41  ;;  %v3153_v23 = vadd.f32 %v3152_v53, %v3036_v14 }
 0x861   : > { %3165 = vst.msk [vmem:[%s517_s24 + $0x20] sm:$0xff] %vm764_vm2, %v3153_v23 }
 0x862 PF: > { %s23_s25 = sadd.s32 1, %s3712_s25  }
 0x863   : > { %p20_p4 = scmp.ge.s32.totalorder %s23_s25, 4  }
 0x865   :  { %22 = sbr.rel (!%p20_p4) target bundleno = 1 (0x1), region = 114 }

</bundles_post_ra>
